<compile_context>
chip_gen: v7x
topology: tpu7x:2x2x1
jax: 0.10.0
libtpu: 0.0.40
codegen_flags: <defaults>
</compile_context>

<pallas_src>
import math
import functools

import jax
import jax.numpy as jnp
from jax.experimental import pallas as pl
from jax.experimental.pallas import tpu as pltpu

# ----------------------------- config (small, consistent with the module) ----
B = 2            # batch
S = 16           # n_patches (sequence length)
H = 32           # hidden_size
N_HEADS = 4
DH = H // N_HEADS
FF = 64          # feedforward_size
N_LAYERS = 2
EPS = 1e-12      # nn.LayerNorm(hidden, 1e-12)


# ----------------------------- in-kernel helpers ------------------------------
def _gelu(x):
    # x * 0.5 * (1 + erf(x / sqrt(2))) -- exact erf gelu, same as the torch code
    return x * 0.5 * (1.0 + jax.lax.erf(x / math.sqrt(2.0)))


def _layer_norm(x, gamma, beta, eps=EPS):
    mu = jnp.mean(x, axis=-1, keepdims=True)
    var = jnp.mean((x - mu) ** 2, axis=-1, keepdims=True)
    return (x - mu) * jax.lax.rsqrt(var + eps) * gamma + beta


# ----------------------------- fused kernel -----------------------------------
def fused_encoder_kernel(bb, x_ref, wqkv_ref, bqkv_ref, wo_ref, bo_ref,
                         gm_ref, bm_ref, w1_ref, b1_ref, w2_ref, b2_ref,
                         gf_ref, bf_ref, o_ref):
    # bb: batch elements handled by this program (static).
    # x_ref / o_ref: (bb * S, H) -- batch folded into the sublane dimension.
    scale = 1.0 / math.sqrt(DH)
    h = x_ref[...]                                                 # (bb*S, H)
    for l in range(N_LAYERS):                                      # static unroll
        # ---------------- multi-head self-attention ----------------
        # fused QKV projection over the whole folded batch (one MXU push, N=3H)
        qkv = jnp.dot(h, wqkv_ref[l],
                      preferred_element_type=jnp.float32) + bqkv_ref[l]   # (bb*S, 3H)
        q = qkv[:, 0 * H:1 * H] * scale
        k = qkv[:, 1 * H:2 * H]
        v = qkv[:, 2 * H:3 * H]

        mha_rows = []
        for bi in range(bb):                                       # static unroll
            r0 = bi * S
            # head-batched layout (N_HEADS, S, DH) via aligned lane slices
            qh = jnp.stack([q[r0:r0 + S, j * DH:(j + 1) * DH]
                            for j in range(N_HEADS)], axis=0)
            kh = jnp.stack([k[r0:r0 + S, j * DH:(j + 1) * DH]
                            for j in range(N_HEADS)], axis=0)
            vh = jnp.stack([v[r0:r0 + S, j * DH:(j + 1) * DH]
                            for j in range(N_HEADS)], axis=0)

            s = jnp.einsum("hqd,hkd->hqk", qh, kh,
                           preferred_element_type=jnp.float32)     # (NH, S, S)
            s = s - jnp.max(s, axis=-1, keepdims=True)
            p = jnp.exp(s)
            denom = jnp.sum(p, axis=-1, keepdims=True)             # (NH, S, 1)
            ctx = jnp.einsum("hqk,hkd->hqd", p, vh,
                             preferred_element_type=jnp.float32)   # (NH, S, DH)
            # normalize on the narrow (S, DH) context instead of (S, S) probs
            ctx = ctx * pl.reciprocal(denom, approx=True)
            # output projection folded over heads (no lane-axis concat):
            # wo_ref[l] is (NH, DH, H); contract DH per head, then sum heads.
            proj = jnp.einsum("hqd,hdo->hqo", ctx, wo_ref[l],
                              preferred_element_type=jnp.float32)  # (NH, S, H)
            mha_rows.append(jnp.sum(proj, axis=0))                 # (S, H)

        mha = mha_rows[0] if bb == 1 else jnp.concatenate(mha_rows, axis=0)
        mha = mha + bo_ref[l]                                      # (bb*S, H)
        h = _layer_norm(mha + h, gm_ref[l], bm_ref[l])

        # ---------------- feed-forward (whole folded batch) ----------------
        ff = _gelu(jnp.dot(h, w1_ref[l],
                           preferred_element_type=jnp.float32) + b1_ref[l])
        ff = jnp.dot(ff, w2_ref[l],
                     preferred_element_type=jnp.float32) + b2_ref[l]
        h = _layer_norm(ff + h, gf_ref[l], bf_ref[l])
    o_ref[...] = h
    # TODO(synk): dropout is treated as identity (eval mode); attention mask=None path only.


# ----------------------------- pallas_call wrapper -----------------------------
def _const_spec(shape):
    # full-array block, same block every grid step (weights stay resident)
    return pl.BlockSpec(shape, lambda b: tuple(0 for _ in shape))


def _default_batch_block():
    # Dual-TensorCore chips (v7x): 1 batch element per program so the 'parallel'
    # grid axis shards across cores.  Single-TC chips (v5e/v6e): whole batch in
    # one program (no per-grid-step pipeline overhead).
    try:
        kind = jax.devices()[0].device_kind.lower()
    except Exception:
        return B
    return 1 if "v7" in kind else B


def transformer_encoder_forward(x, params, *, batch_block=None):
    if batch_block is None:
        batch_block = _default_batch_block()
    assert B % batch_block == 0
    nb = B // batch_block

    weights = (params["wqkv"], params["bqkv"], params["wo"], params["bo"],
               params["ln_mha_g"], params["ln_mha_b"],
               params["w1"], params["b1"], params["w2"], params["b2"],
               params["ln_ff_g"], params["ln_ff_b"])

    # fold batch into the row dimension: token-wise ops run on (bb*S, H) slabs
    x2 = x.reshape(B * S, H)
    rows = batch_block * S
    act_spec = pl.BlockSpec((rows, H), lambda b: (b, 0))
    in_specs = [act_spec] + [_const_spec(w.shape) for w in weights]

    out2 = pl.pallas_call(
        functools.partial(fused_encoder_kernel, batch_block),
        out_shape=jax.ShapeDtypeStruct((B * S, H), jnp.float32),
        grid=(nb,),
        in_specs=in_specs,
        out_specs=pl.BlockSpec((rows, H), lambda b: (b, 0)),
        compiler_params=pltpu.CompilerParams(dimension_semantics=("parallel",)),
    )(x2, *weights)
    return out2.reshape(B, S, H)


# ----------------------------- deterministic params ----------------------------
def init_params(key):
    def lin(k, din, dout):
        kw, kb = jax.random.split(k)
        w = jax.random.normal(kw, (din, dout), jnp.float32) * 0.02
        b = jax.random.normal(kb, (dout,), jnp.float32) * 0.02
        return w, b

    lkeys = jax.random.split(key, N_LAYERS + 1)
    gk = lkeys[-1]
    wqkv, bqkv, wo, bo, w1, b1, w2, b2 = [], [], [], [], [], [], [], []
    for lk in lkeys[:N_LAYERS]:
        kq, kk, kv, ko, k1, k2 = jax.random.split(lk, 6)
        wq, bq_ = lin(kq, H, H)
        wk, bk_ = lin(kk, H, H)
        wv, bv_ = lin(kv, H, H)
        wo_l, bo_l = lin(ko, H, H)
        w1_l, b1_l = lin(k1, H, FF)
        w2_l, b2_l = lin(k2, FF, H)
        wqkv.append(jnp.concatenate([wq, wk, wv], axis=1))        # (H, 3H)
        bqkv.append(jnp.concatenate([bq_, bk_, bv_])[None, :])    # (1, 3H)
        wo.append(wo_l.reshape(N_HEADS, DH, H))                   # (NH, DH, H)
        bo.append(bo_l[None, :])
        w1.append(w1_l)
        b1.append(b1_l[None, :])
        w2.append(w2_l)
        b2.append(b2_l[None, :])

    kg1, kg2, kb1, kb2 = jax.random.split(gk, 4)
    p = {
        "wqkv": jnp.stack(wqkv), "bqkv": jnp.stack(bqkv),
        "wo": jnp.stack(wo), "bo": jnp.stack(bo),
        "ln_mha_g": 1.0 + 0.02 * jax.random.normal(kg1, (N_LAYERS, 1, H), jnp.float32),
        "ln_mha_b": 0.02 * jax.random.normal(kb1, (N_LAYERS, 1, H), jnp.float32),
        "w1": jnp.stack(w1), "b1": jnp.stack(b1),
        "w2": jnp.stack(w2), "b2": jnp.stack(b2),
        "ln_ff_g": 1.0 + 0.02 * jax.random.normal(kg2, (N_LAYERS, 1, H), jnp.float32),
        "ln_ff_b": 0.02 * jax.random.normal(kb2, (N_LAYERS, 1, H), jnp.float32),
    }
    return p


# ----------------------------- pure-JAX reference (sanity check) ---------------
def ref_forward(x, p):
    def ln(v, g, b):
        mu = jnp.mean(v, axis=-1, keepdims=True)
        var = jnp.mean((v - mu) ** 2, axis=-1, keepdims=True)
        return (v - mu) / jnp.sqrt(var + EPS) * g + b

    def gelu(v):
        return v * 0.5 * (1.0 + jax.lax.erf(v / math.sqrt(2.0)))

    h = x
    for l in range(N_LAYERS):
        qkv = h @ p["wqkv"][l] + p["bqkv"][l]
        q, k, v = qkv[..., :H], qkv[..., H:2 * H], qkv[..., 2 * H:]
        q = q.reshape(B, S, N_HEADS, DH).transpose(0, 2, 1, 3)
        k = k.reshape(B, S, N_HEADS, DH).transpose(0, 2, 1, 3)
        v = v.reshape(B, S, N_HEADS, DH).transpose(0, 2, 1, 3)
        s = jnp.einsum("bhqd,bhkd->bhqk", q, k) / math.sqrt(DH)
        pr = jax.nn.softmax(s, axis=-1)
        ctx = jnp.einsum("bhqk,bhkd->bhqd", pr, v).transpose(0, 2, 1, 3).reshape(B, S, H)
        mha = ctx @ p["wo"][l].reshape(H, H) + p["bo"][l]
        h = ln(mha + h, p["ln_mha_g"][l], p["ln_mha_b"][l])
        ff = gelu(h @ p["w1"][l] + p["b1"][l]) @ p["w2"][l] + p["b2"][l]
        h = ln(ff + h, p["ln_ff_g"][l], p["ln_ff_b"][l])
    return h


# ----------------------------- main --------------------------------------------
if __name__ == "__main__":
    key = jax.random.PRNGKey(0)
    k_x, k_p = jax.random.split(key)
    x = jax.random.normal(k_x, (B, S, H), jnp.float32)
    params = init_params(k_p)

    out = transformer_encoder_forward(x, params)
    out = jax.block_until_ready(out)

    ref = ref_forward(x, params)
    assert out.shape == (B, S, H)
    # tolerance allows for pl.reciprocal(approx=True) in the softmax normalization
    assert jnp.allclose(out, ref, atol=2e-3, rtol=2e-3), "mismatch vs JAX reference"

    print("KERNEL_OK")
</pallas_src>

<mosaic_0001>
module attributes {stable_mosaic.version = 11 : i64} {
  func.func @fused_encoder_kernel(%arg0: i32, %arg1: memref<32x32xf32, #tpu.memory_space<vmem>>, %arg2: memref<2x32x96xf32, #tpu.memory_space<vmem>>, %arg3: memref<2x1x96xf32, #tpu.memory_space<vmem>>, %arg4: memref<2x4x8x32xf32, #tpu.memory_space<vmem>>, %arg5: memref<2x1x32xf32, #tpu.memory_space<vmem>>, %arg6: memref<2x1x32xf32, #tpu.memory_space<vmem>>, %arg7: memref<2x1x32xf32, #tpu.memory_space<vmem>>, %arg8: memref<2x32x64xf32, #tpu.memory_space<vmem>>, %arg9: memref<2x1x64xf32, #tpu.memory_space<vmem>>, %arg10: memref<2x64x32xf32, #tpu.memory_space<vmem>>, %arg11: memref<2x1x32xf32, #tpu.memory_space<vmem>>, %arg12: memref<2x1x32xf32, #tpu.memory_space<vmem>>, %arg13: memref<2x1x32xf32, #tpu.memory_space<vmem>>, %arg14: memref<32x32xf32, #tpu.memory_space<vmem>>) attributes {dimension_semantics = [#tpu.dimension_semantics<parallel>], iteration_bounds = array<i64: 1>, scalar_prefetch = 0 : i64, scratch_operands = 0 : i64, tpu.core_type = #tpu.core_type<tc>, window_params = [{transform_indices = @transform_0, window_bounds = array<i64: 32, 32>}, {pipeline_mode = #tpu.pipeline_mode<synchronous>, transform_indices = @transform_1, window_bounds = array<i64: 2, 32, 96>}, {pipeline_mode = #tpu.pipeline_mode<synchronous>, transform_indices = @transform_2, window_bounds = array<i64: 2, 1, 96>}, {pipeline_mode = #tpu.pipeline_mode<synchronous>, transform_indices = @transform_3, window_bounds = array<i64: 2, 4, 8, 32>}, {pipeline_mode = #tpu.pipeline_mode<synchronous>, transform_indices = @transform_4, window_bounds = array<i64: 2, 1, 32>}, {pipeline_mode = #tpu.pipeline_mode<synchronous>, transform_indices = @transform_5, window_bounds = array<i64: 2, 1, 32>}, {pipeline_mode = #tpu.pipeline_mode<synchronous>, transform_indices = @transform_6, window_bounds = array<i64: 2, 1, 32>}, {pipeline_mode = #tpu.pipeline_mode<synchronous>, transform_indices = @transform_7, window_bounds = array<i64: 2, 32, 64>}, {pipeline_mode = #tpu.pipeline_mode<synchronous>, transform_indices = @transform_8, window_bounds = array<i64: 2, 1, 64>}, {pipeline_mode = #tpu.pipeline_mode<synchronous>, transform_indices = @transform_9, window_bounds = array<i64: 2, 64, 32>}, {pipeline_mode = #tpu.pipeline_mode<synchronous>, transform_indices = @transform_10, window_bounds = array<i64: 2, 1, 32>}, {pipeline_mode = #tpu.pipeline_mode<synchronous>, transform_indices = @transform_11, window_bounds = array<i64: 2, 1, 32>}, {pipeline_mode = #tpu.pipeline_mode<synchronous>, transform_indices = @transform_12, window_bounds = array<i64: 2, 1, 32>}, {transform_indices = @transform_13, window_bounds = array<i64: 32, 32>}]} {
    %c0 = arith.constant 0 : index
    %c0_0 = arith.constant 0 : index
    %0 = vector.load %arg1[%c0, %c0_0] : memref<32x32xf32, #tpu.memory_space<vmem>>, vector<32x32xf32>
    %c0_1 = arith.constant 0 : index
    %c0_2 = arith.constant 0 : index
    %c0_3 = arith.constant 0 : index
    %1 = vector.load %arg2[%c0_1, %c0_2, %c0_3] : memref<2x32x96xf32, #tpu.memory_space<vmem>>, vector<1x32x96xf32>
    %2 = vector.shape_cast %1 : vector<1x32x96xf32> to vector<32x96xf32>
    %cst = arith.constant dense<0.000000e+00> : vector<32x96xf32>
    %3 = tpu.matmul %0, %2, %cst {dimension_numbers = #tpu.dot_dimension_numbers<[1], [0], [0], [1], [0, 0, 1, 1], [], []>} : vector<32x32xf32>, vector<32x96xf32>, vector<32x96xf32> -> vector<32x96xf32>
    %c0_4 = arith.constant 0 : index
    %c0_5 = arith.constant 0 : index
    %c0_6 = arith.constant 0 : index
    %4 = vector.load %arg3[%c0_4, %c0_5, %c0_6] : memref<2x1x96xf32, #tpu.memory_space<vmem>>, vector<1x1x96xf32>
    %5 = vector.shape_cast %4 : vector<1x1x96xf32> to vector<1x96xf32>
    %6 = vector.broadcast %5 : vector<1x96xf32> to vector<32x96xf32>
    %7 = arith.addf %3, %6 : vector<32x96xf32>
    %8 = vector.extract_strided_slice %7 {offsets = [0, 0], sizes = [32, 32], strides = [1, 1]} : vector<32x96xf32> to vector<32x32xf32>
    %cst_7 = arith.constant 0.353553385 : f32
    %9 = vector.broadcast %cst_7 : f32 to vector<32x32xf32>
    %10 = arith.mulf %8, %9 : vector<32x32xf32>
    %11 = vector.extract_strided_slice %7 {offsets = [0, 32], sizes = [32, 32], strides = [1, 1]} : vector<32x96xf32> to vector<32x32xf32>
    %12 = vector.extract_strided_slice %7 {offsets = [0, 64], sizes = [32, 32], strides = [1, 1]} : vector<32x96xf32> to vector<32x32xf32>
    %13 = vector.extract_strided_slice %10 {offsets = [0, 0], sizes = [16, 8], strides = [1, 1]} : vector<32x32xf32> to vector<16x8xf32>
    %14 = vector.extract_strided_slice %10 {offsets = [0, 8], sizes = [16, 8], strides = [1, 1]} : vector<32x32xf32> to vector<16x8xf32>
    %15 = vector.extract_strided_slice %10 {offsets = [0, 16], sizes = [16, 8], strides = [1, 1]} : vector<32x32xf32> to vector<16x8xf32>
    %16 = vector.extract_strided_slice %10 {offsets = [0, 24], sizes = [16, 8], strides = [1, 1]} : vector<32x32xf32> to vector<16x8xf32>
    %17 = vector.shape_cast %13 : vector<16x8xf32> to vector<1x16x8xf32>
    %18 = vector.shape_cast %14 : vector<16x8xf32> to vector<1x16x8xf32>
    %19 = vector.shape_cast %15 : vector<16x8xf32> to vector<1x16x8xf32>
    %20 = vector.shape_cast %16 : vector<16x8xf32> to vector<1x16x8xf32>
    %21 = tpu.concatenate %17, %18, %19, %20 in 0 : vector<1x16x8xf32>, vector<1x16x8xf32>, vector<1x16x8xf32>, vector<1x16x8xf32> -> vector<4x16x8xf32>
    %22 = vector.extract_strided_slice %11 {offsets = [0, 0], sizes = [16, 8], strides = [1, 1]} : vector<32x32xf32> to vector<16x8xf32>
    %23 = vector.extract_strided_slice %11 {offsets = [0, 8], sizes = [16, 8], strides = [1, 1]} : vector<32x32xf32> to vector<16x8xf32>
    %24 = vector.extract_strided_slice %11 {offsets = [0, 16], sizes = [16, 8], strides = [1, 1]} : vector<32x32xf32> to vector<16x8xf32>
    %25 = vector.extract_strided_slice %11 {offsets = [0, 24], sizes = [16, 8], strides = [1, 1]} : vector<32x32xf32> to vector<16x8xf32>
    %26 = vector.shape_cast %22 : vector<16x8xf32> to vector<1x16x8xf32>
    %27 = vector.shape_cast %23 : vector<16x8xf32> to vector<1x16x8xf32>
    %28 = vector.shape_cast %24 : vector<16x8xf32> to vector<1x16x8xf32>
    %29 = vector.shape_cast %25 : vector<16x8xf32> to vector<1x16x8xf32>
    %30 = tpu.concatenate %26, %27, %28, %29 in 0 : vector<1x16x8xf32>, vector<1x16x8xf32>, vector<1x16x8xf32>, vector<1x16x8xf32> -> vector<4x16x8xf32>
    %31 = vector.extract_strided_slice %12 {offsets = [0, 0], sizes = [16, 8], strides = [1, 1]} : vector<32x32xf32> to vector<16x8xf32>
    %32 = vector.extract_strided_slice %12 {offsets = [0, 8], sizes = [16, 8], strides = [1, 1]} : vector<32x32xf32> to vector<16x8xf32>
    %33 = vector.extract_strided_slice %12 {offsets = [0, 16], sizes = [16, 8], strides = [1, 1]} : vector<32x32xf32> to vector<16x8xf32>
    %34 = vector.extract_strided_slice %12 {offsets = [0, 24], sizes = [16, 8], strides = [1, 1]} : vector<32x32xf32> to vector<16x8xf32>
    %35 = vector.shape_cast %31 : vector<16x8xf32> to vector<1x16x8xf32>
    %36 = vector.shape_cast %32 : vector<16x8xf32> to vector<1x16x8xf32>
    %37 = vector.shape_cast %33 : vector<16x8xf32> to vector<1x16x8xf32>
    %38 = vector.shape_cast %34 : vector<16x8xf32> to vector<1x16x8xf32>
    %39 = tpu.concatenate %35, %36, %37, %38 in 0 : vector<1x16x8xf32>, vector<1x16x8xf32>, vector<1x16x8xf32>, vector<1x16x8xf32> -> vector<4x16x8xf32>
    "tpu.trace_start"() <{level = 10 : i32, message = "hqd,hkd->hqk"}> : () -> ()
    %cst_8 = arith.constant dense<0.000000e+00> : vector<4x16x16xf32>
    %40 = tpu.matmul %21, %30, %cst_8 {dimension_numbers = #tpu.dot_dimension_numbers<[2], [2], [1], [1], [0, 0, 0, 1, 1, 1], [0], [0]>} : vector<4x16x8xf32>, vector<4x16x8xf32>, vector<4x16x16xf32> -> vector<4x16x16xf32>
    "tpu.trace_stop"() : () -> ()
    %cst_9 = arith.constant dense<0xFF800000> : vector<4x16xf32>
    %41 = vector.multi_reduction <maximumf>, %40, %cst_9 [2] : vector<4x16x16xf32> to vector<4x16xf32>
    %42 = vector.shape_cast %41 : vector<4x16xf32> to vector<4x16x1xf32>
    %43 = vector.broadcast %42 : vector<4x16x1xf32> to vector<4x16x16xf32>
    %44 = arith.subf %40, %43 : vector<4x16x16xf32>
    %45 = math.exp %44 : vector<4x16x16xf32>
    %cst_10 = arith.constant dense<0.000000e+00> : vector<4x16xf32>
    %46 = vector.multi_reduction <add>, %45, %cst_10 [2] : vector<4x16x16xf32> to vector<4x16xf32>
    %47 = vector.shape_cast %46 : vector<4x16xf32> to vector<4x16x1xf32>
    "tpu.trace_start"() <{level = 10 : i32, message = "hqk,hkd->hqd"}> : () -> ()
    %cst_11 = arith.constant dense<0.000000e+00> : vector<4x16x8xf32>
    %48 = tpu.matmul %45, %39, %cst_11 {dimension_numbers = #tpu.dot_dimension_numbers<[2], [1], [1], [2], [0, 0, 0, 1, 1, 2], [0], [0]>} : vector<4x16x16xf32>, vector<4x16x8xf32>, vector<4x16x8xf32> -> vector<4x16x8xf32>
    "tpu.trace_stop"() : () -> ()
    %49 = tpu.reciprocal %47 {approx = true} : vector<4x16x1xf32> -> vector<4x16x1xf32>
    %50 = vector.broadcast %49 : vector<4x16x1xf32> to vector<4x16x8xf32>
    %51 = arith.mulf %48, %50 : vector<4x16x8xf32>
    %c0_12 = arith.constant 0 : index
    %c0_13 = arith.constant 0 : index
    %c0_14 = arith.constant 0 : index
    %c0_15 = arith.constant 0 : index
    %52 = vector.load %arg4[%c0_12, %c0_13, %c0_14, %c0_15] : memref<2x4x8x32xf32, #tpu.memory_space<vmem>>, vector<1x4x8x32xf32>
    %53 = vector.shape_cast %52 : vector<1x4x8x32xf32> to vector<4x8x32xf32>
    "tpu.trace_start"() <{level = 10 : i32, message = "hqd,hdo->hqo"}> : () -> ()
    %cst_16 = arith.constant dense<0.000000e+00> : vector<4x16x32xf32>
    %54 = tpu.matmul %51, %53, %cst_16 {dimension_numbers = #tpu.dot_dimension_numbers<[2], [1], [1], [2], [0, 0, 0, 1, 1, 2], [0], [0]>} : vector<4x16x8xf32>, vector<4x8x32xf32>, vector<4x16x32xf32> -> vector<4x16x32xf32>
    "tpu.trace_stop"() : () -> ()
    %cst_17 = arith.constant dense<0.000000e+00> : vector<16x32xf32>
    %55 = vector.multi_reduction <add>, %54, %cst_17 [0] : vector<4x16x32xf32> to vector<16x32xf32>
    %56 = vector.extract_strided_slice %10 {offsets = [16, 0], sizes = [16, 8], strides = [1, 1]} : vector<32x32xf32> to vector<16x8xf32>
    %57 = vector.extract_strided_slice %10 {offsets = [16, 8], sizes = [16, 8], strides = [1, 1]} : vector<32x32xf32> to vector<16x8xf32>
    %58 = vector.extract_strided_slice %10 {offsets = [16, 16], sizes = [16, 8], strides = [1, 1]} : vector<32x32xf32> to vector<16x8xf32>
    %59 = vector.extract_strided_slice %10 {offsets = [16, 24], sizes = [16, 8], strides = [1, 1]} : vector<32x32xf32> to vector<16x8xf32>
    %60 = vector.shape_cast %56 : vector<16x8xf32> to vector<1x16x8xf32>
    %61 = vector.shape_cast %57 : vector<16x8xf32> to vector<1x16x8xf32>
    %62 = vector.shape_cast %58 : vector<16x8xf32> to vector<1x16x8xf32>
    %63 = vector.shape_cast %59 : vector<16x8xf32> to vector<1x16x8xf32>
    %64 = tpu.concatenate %60, %61, %62, %63 in 0 : vector<1x16x8xf32>, vector<1x16x8xf32>, vector<1x16x8xf32>, vector<1x16x8xf32> -> vector<4x16x8xf32>
    %65 = vector.extract_strided_slice %11 {offsets = [16, 0], sizes = [16, 8], strides = [1, 1]} : vector<32x32xf32> to vector<16x8xf32>
    %66 = vector.extract_strided_slice %11 {offsets = [16, 8], sizes = [16, 8], strides = [1, 1]} : vector<32x32xf32> to vector<16x8xf32>
    %67 = vector.extract_strided_slice %11 {offsets = [16, 16], sizes = [16, 8], strides = [1, 1]} : vector<32x32xf32> to vector<16x8xf32>
    %68 = vector.extract_strided_slice %11 {offsets = [16, 24], sizes = [16, 8], strides = [1, 1]} : vector<32x32xf32> to vector<16x8xf32>
    %69 = vector.shape_cast %65 : vector<16x8xf32> to vector<1x16x8xf32>
    %70 = vector.shape_cast %66 : vector<16x8xf32> to vector<1x16x8xf32>
    %71 = vector.shape_cast %67 : vector<16x8xf32> to vector<1x16x8xf32>
    %72 = vector.shape_cast %68 : vector<16x8xf32> to vector<1x16x8xf32>
    %73 = tpu.concatenate %69, %70, %71, %72 in 0 : vector<1x16x8xf32>, vector<1x16x8xf32>, vector<1x16x8xf32>, vector<1x16x8xf32> -> vector<4x16x8xf32>
    %74 = vector.extract_strided_slice %12 {offsets = [16, 0], sizes = [16, 8], strides = [1, 1]} : vector<32x32xf32> to vector<16x8xf32>
    %75 = vector.extract_strided_slice %12 {offsets = [16, 8], sizes = [16, 8], strides = [1, 1]} : vector<32x32xf32> to vector<16x8xf32>
    %76 = vector.extract_strided_slice %12 {offsets = [16, 16], sizes = [16, 8], strides = [1, 1]} : vector<32x32xf32> to vector<16x8xf32>
    %77 = vector.extract_strided_slice %12 {offsets = [16, 24], sizes = [16, 8], strides = [1, 1]} : vector<32x32xf32> to vector<16x8xf32>
    %78 = vector.shape_cast %74 : vector<16x8xf32> to vector<1x16x8xf32>
    %79 = vector.shape_cast %75 : vector<16x8xf32> to vector<1x16x8xf32>
    %80 = vector.shape_cast %76 : vector<16x8xf32> to vector<1x16x8xf32>
    %81 = vector.shape_cast %77 : vector<16x8xf32> to vector<1x16x8xf32>
    %82 = tpu.concatenate %78, %79, %80, %81 in 0 : vector<1x16x8xf32>, vector<1x16x8xf32>, vector<1x16x8xf32>, vector<1x16x8xf32> -> vector<4x16x8xf32>
    "tpu.trace_start"() <{level = 10 : i32, message = "hqd,hkd->hqk"}> : () -> ()
    %cst_18 = arith.constant dense<0.000000e+00> : vector<4x16x16xf32>
    %83 = tpu.matmul %64, %73, %cst_18 {dimension_numbers = #tpu.dot_dimension_numbers<[2], [2], [1], [1], [0, 0, 0, 1, 1, 1], [0], [0]>} : vector<4x16x8xf32>, vector<4x16x8xf32>, vector<4x16x16xf32> -> vector<4x16x16xf32>
    "tpu.trace_stop"() : () -> ()
    %cst_19 = arith.constant dense<0xFF800000> : vector<4x16xf32>
    %84 = vector.multi_reduction <maximumf>, %83, %cst_19 [2] : vector<4x16x16xf32> to vector<4x16xf32>
    %85 = vector.shape_cast %84 : vector<4x16xf32> to vector<4x16x1xf32>
    %86 = vector.broadcast %85 : vector<4x16x1xf32> to vector<4x16x16xf32>
    %87 = arith.subf %83, %86 : vector<4x16x16xf32>
    %88 = math.exp %87 : vector<4x16x16xf32>
    %cst_20 = arith.constant dense<0.000000e+00> : vector<4x16xf32>
    %89 = vector.multi_reduction <add>, %88, %cst_20 [2] : vector<4x16x16xf32> to vector<4x16xf32>
    %90 = vector.shape_cast %89 : vector<4x16xf32> to vector<4x16x1xf32>
    "tpu.trace_start"() <{level = 10 : i32, message = "hqk,hkd->hqd"}> : () -> ()
    %cst_21 = arith.constant dense<0.000000e+00> : vector<4x16x8xf32>
    %91 = tpu.matmul %88, %82, %cst_21 {dimension_numbers = #tpu.dot_dimension_numbers<[2], [1], [1], [2], [0, 0, 0, 1, 1, 2], [0], [0]>} : vector<4x16x16xf32>, vector<4x16x8xf32>, vector<4x16x8xf32> -> vector<4x16x8xf32>
    "tpu.trace_stop"() : () -> ()
    %92 = tpu.reciprocal %90 {approx = true} : vector<4x16x1xf32> -> vector<4x16x1xf32>
    %93 = vector.broadcast %92 : vector<4x16x1xf32> to vector<4x16x8xf32>
    %94 = arith.mulf %91, %93 : vector<4x16x8xf32>
    %c0_22 = arith.constant 0 : index
    %c0_23 = arith.constant 0 : index
    %c0_24 = arith.constant 0 : index
    %c0_25 = arith.constant 0 : index
    %95 = vector.load %arg4[%c0_22, %c0_23, %c0_24, %c0_25] : memref<2x4x8x32xf32, #tpu.memory_space<vmem>>, vector<1x4x8x32xf32>
    %96 = vector.shape_cast %95 : vector<1x4x8x32xf32> to vector<4x8x32xf32>
    "tpu.trace_start"() <{level = 10 : i32, message = "hqd,hdo->hqo"}> : () -> ()
    %cst_26 = arith.constant dense<0.000000e+00> : vector<4x16x32xf32>
    %97 = tpu.matmul %94, %96, %cst_26 {dimension_numbers = #tpu.dot_dimension_numbers<[2], [1], [1], [2], [0, 0, 0, 1, 1, 2], [0], [0]>} : vector<4x16x8xf32>, vector<4x8x32xf32>, vector<4x16x32xf32> -> vector<4x16x32xf32>
    "tpu.trace_stop"() : () -> ()
    %cst_27 = arith.constant dense<0.000000e+00> : vector<16x32xf32>
    %98 = vector.multi_reduction <add>, %97, %cst_27 [0] : vector<4x16x32xf32> to vector<16x32xf32>
    %99 = tpu.concatenate %55, %98 in 0 : vector<16x32xf32>, vector<16x32xf32> -> vector<32x32xf32>
    %c0_28 = arith.constant 0 : index
    %c0_29 = arith.constant 0 : index
    %c0_30 = arith.constant 0 : index
    %100 = vector.load %arg5[%c0_28, %c0_29, %c0_30] : memref<2x1x32xf32, #tpu.memory_space<vmem>>, vector<1x1x32xf32>
    %101 = vector.shape_cast %100 : vector<1x1x32xf32> to vector<1x32xf32>
    %102 = vector.broadcast %101 : vector<1x32xf32> to vector<32x32xf32>
    %103 = arith.addf %99, %102 : vector<32x32xf32>
    %104 = arith.addf %103, %0 : vector<32x32xf32>
    %c0_31 = arith.constant 0 : index
    %c0_32 = arith.constant 0 : index
    %c0_33 = arith.constant 0 : index
    %105 = vector.load %arg6[%c0_31, %c0_32, %c0_33] : memref<2x1x32xf32, #tpu.memory_space<vmem>>, vector<1x1x32xf32>
    %106 = vector.shape_cast %105 : vector<1x1x32xf32> to vector<1x32xf32>
    %c0_34 = arith.constant 0 : index
    %c0_35 = arith.constant 0 : index
    %c0_36 = arith.constant 0 : index
    %107 = vector.load %arg7[%c0_34, %c0_35, %c0_36] : memref<2x1x32xf32, #tpu.memory_space<vmem>>, vector<1x1x32xf32>
    %108 = vector.shape_cast %107 : vector<1x1x32xf32> to vector<1x32xf32>
    %cst_37 = arith.constant dense<0.000000e+00> : vector<32xf32>
    %109 = vector.multi_reduction <add>, %104, %cst_37 [1] : vector<32x32xf32> to vector<32xf32>
    %110 = vector.shape_cast %109 : vector<32xf32> to vector<32x1xf32>
    %cst_38 = arith.constant 3.200000e+01 : f32
    %111 = vector.broadcast %cst_38 : f32 to vector<32x1xf32>
    %112 = arith.divf %110, %111 : vector<32x1xf32>
    %113 = vector.broadcast %112 : vector<32x1xf32> to vector<32x32xf32>
    %114 = arith.subf %104, %113 : vector<32x32xf32>
    %115 = arith.mulf %114, %114 : vector<32x32xf32>
    %cst_39 = arith.constant dense<0.000000e+00> : vector<32xf32>
    %116 = vector.multi_reduction <add>, %115, %cst_39 [1] : vector<32x32xf32> to vector<32xf32>
    %117 = vector.shape_cast %116 : vector<32xf32> to vector<32x1xf32>
    %cst_40 = arith.constant 3.200000e+01 : f32
    %118 = vector.broadcast %cst_40 : f32 to vector<32x1xf32>
    %119 = arith.divf %117, %118 : vector<32x1xf32>
    %120 = vector.broadcast %112 : vector<32x1xf32> to vector<32x32xf32>
    %121 = arith.subf %104, %120 : vector<32x32xf32>
    %cst_41 = arith.constant 9.99999996E-13 : f32
    %122 = vector.broadcast %cst_41 : f32 to vector<32x1xf32>
    %123 = arith.addf %119, %122 : vector<32x1xf32>
    %124 = math.rsqrt %123 : vector<32x1xf32>
    %125 = vector.broadcast %124 : vector<32x1xf32> to vector<32x32xf32>
    %126 = arith.mulf %121, %125 : vector<32x32xf32>
    %127 = vector.broadcast %106 : vector<1x32xf32> to vector<32x32xf32>
    %128 = arith.mulf %126, %127 : vector<32x32xf32>
    %129 = vector.broadcast %108 : vector<1x32xf32> to vector<32x32xf32>
    %130 = arith.addf %128, %129 : vector<32x32xf32>
    %c0_42 = arith.constant 0 : index
    %c0_43 = arith.constant 0 : index
    %c0_44 = arith.constant 0 : index
    %131 = vector.load %arg8[%c0_42, %c0_43, %c0_44] : memref<2x32x64xf32, #tpu.memory_space<vmem>>, vector<1x32x64xf32>
    %132 = vector.shape_cast %131 : vector<1x32x64xf32> to vector<32x64xf32>
    %cst_45 = arith.constant dense<0.000000e+00> : vector<32x64xf32>
    %133 = tpu.matmul %130, %132, %cst_45 {dimension_numbers = #tpu.dot_dimension_numbers<[1], [0], [0], [1], [0, 0, 1, 1], [], []>} : vector<32x32xf32>, vector<32x64xf32>, vector<32x64xf32> -> vector<32x64xf32>
    %c0_46 = arith.constant 0 : index
    %c0_47 = arith.constant 0 : index
    %c0_48 = arith.constant 0 : index
    %134 = vector.load %arg9[%c0_46, %c0_47, %c0_48] : memref<2x1x64xf32, #tpu.memory_space<vmem>>, vector<1x1x64xf32>
    %135 = vector.shape_cast %134 : vector<1x1x64xf32> to vector<1x64xf32>
    %136 = vector.broadcast %135 : vector<1x64xf32> to vector<32x64xf32>
    %137 = arith.addf %133, %136 : vector<32x64xf32>
    %cst_49 = arith.constant 5.000000e-01 : f32
    %138 = vector.broadcast %cst_49 : f32 to vector<32x64xf32>
    %139 = arith.mulf %137, %138 : vector<32x64xf32>
    %cst_50 = arith.constant 1.41421354 : f32
    %140 = vector.broadcast %cst_50 : f32 to vector<32x64xf32>
    %141 = arith.divf %137, %140 : vector<32x64xf32>
    %142 = math.erf %141 : vector<32x64xf32>
    %cst_51 = arith.constant 1.000000e+00 : f32
    %143 = vector.broadcast %cst_51 : f32 to vector<32x64xf32>
    %144 = arith.addf %143, %142 : vector<32x64xf32>
    %145 = arith.mulf %139, %144 : vector<32x64xf32>
    %c0_52 = arith.constant 0 : index
    %c0_53 = arith.constant 0 : index
    %c0_54 = arith.constant 0 : index
    %146 = vector.load %arg10[%c0_52, %c0_53, %c0_54] : memref<2x64x32xf32, #tpu.memory_space<vmem>>, vector<1x64x32xf32>
    %147 = vector.shape_cast %146 : vector<1x64x32xf32> to vector<64x32xf32>
    %cst_55 = arith.constant dense<0.000000e+00> : vector<32x32xf32>
    %148 = tpu.matmul %145, %147, %cst_55 {dimension_numbers = #tpu.dot_dimension_numbers<[1], [0], [0], [1], [0, 0, 1, 1], [], []>} : vector<32x64xf32>, vector<64x32xf32>, vector<32x32xf32> -> vector<32x32xf32>
    %c0_56 = arith.constant 0 : index
    %c0_57 = arith.constant 0 : index
    %c0_58 = arith.constant 0 : index
    %149 = vector.load %arg11[%c0_56, %c0_57, %c0_58] : memref<2x1x32xf32, #tpu.memory_space<vmem>>, vector<1x1x32xf32>
    %150 = vector.shape_cast %149 : vector<1x1x32xf32> to vector<1x32xf32>
    %151 = vector.broadcast %150 : vector<1x32xf32> to vector<32x32xf32>
    %152 = arith.addf %148, %151 : vector<32x32xf32>
    %153 = arith.addf %152, %130 : vector<32x32xf32>
    %c0_59 = arith.constant 0 : index
    %c0_60 = arith.constant 0 : index
    %c0_61 = arith.constant 0 : index
    %154 = vector.load %arg12[%c0_59, %c0_60, %c0_61] : memref<2x1x32xf32, #tpu.memory_space<vmem>>, vector<1x1x32xf32>
    %155 = vector.shape_cast %154 : vector<1x1x32xf32> to vector<1x32xf32>
    %c0_62 = arith.constant 0 : index
    %c0_63 = arith.constant 0 : index
    %c0_64 = arith.constant 0 : index
    %156 = vector.load %arg13[%c0_62, %c0_63, %c0_64] : memref<2x1x32xf32, #tpu.memory_space<vmem>>, vector<1x1x32xf32>
    %157 = vector.shape_cast %156 : vector<1x1x32xf32> to vector<1x32xf32>
    %cst_65 = arith.constant dense<0.000000e+00> : vector<32xf32>
    %158 = vector.multi_reduction <add>, %153, %cst_65 [1] : vector<32x32xf32> to vector<32xf32>
    %159 = vector.shape_cast %158 : vector<32xf32> to vector<32x1xf32>
    %cst_66 = arith.constant 3.200000e+01 : f32
    %160 = vector.broadcast %cst_66 : f32 to vector<32x1xf32>
    %161 = arith.divf %159, %160 : vector<32x1xf32>
    %162 = vector.broadcast %161 : vector<32x1xf32> to vector<32x32xf32>
    %163 = arith.subf %153, %162 : vector<32x32xf32>
    %164 = arith.mulf %163, %163 : vector<32x32xf32>
    %cst_67 = arith.constant dense<0.000000e+00> : vector<32xf32>
    %165 = vector.multi_reduction <add>, %164, %cst_67 [1] : vector<32x32xf32> to vector<32xf32>
    %166 = vector.shape_cast %165 : vector<32xf32> to vector<32x1xf32>
    %cst_68 = arith.constant 3.200000e+01 : f32
    %167 = vector.broadcast %cst_68 : f32 to vector<32x1xf32>
    %168 = arith.divf %166, %167 : vector<32x1xf32>
    %169 = vector.broadcast %161 : vector<32x1xf32> to vector<32x32xf32>
    %170 = arith.subf %153, %169 : vector<32x32xf32>
    %cst_69 = arith.constant 9.99999996E-13 : f32
    %171 = vector.broadcast %cst_69 : f32 to vector<32x1xf32>
    %172 = arith.addf %168, %171 : vector<32x1xf32>
    %173 = math.rsqrt %172 : vector<32x1xf32>
    %174 = vector.broadcast %173 : vector<32x1xf32> to vector<32x32xf32>
    %175 = arith.mulf %170, %174 : vector<32x32xf32>
    %176 = vector.broadcast %155 : vector<1x32xf32> to vector<32x32xf32>
    %177 = arith.mulf %175, %176 : vector<32x32xf32>
    %178 = vector.broadcast %157 : vector<1x32xf32> to vector<32x32xf32>
    %179 = arith.addf %177, %178 : vector<32x32xf32>
    %c1 = arith.constant 1 : index
    %c0_70 = arith.constant 0 : index
    %c0_71 = arith.constant 0 : index
    %180 = vector.load %arg2[%c1, %c0_70, %c0_71] : memref<2x32x96xf32, #tpu.memory_space<vmem>>, vector<1x32x96xf32>
    %181 = vector.shape_cast %180 : vector<1x32x96xf32> to vector<32x96xf32>
    %cst_72 = arith.constant dense<0.000000e+00> : vector<32x96xf32>
    %182 = tpu.matmul %179, %181, %cst_72 {dimension_numbers = #tpu.dot_dimension_numbers<[1], [0], [0], [1], [0, 0, 1, 1], [], []>} : vector<32x32xf32>, vector<32x96xf32>, vector<32x96xf32> -> vector<32x96xf32>
    %c1_73 = arith.constant 1 : index
    %c0_74 = arith.constant 0 : index
    %c0_75 = arith.constant 0 : index
    %183 = vector.load %arg3[%c1_73, %c0_74, %c0_75] : memref<2x1x96xf32, #tpu.memory_space<vmem>>, vector<1x1x96xf32>
    %184 = vector.shape_cast %183 : vector<1x1x96xf32> to vector<1x96xf32>
    %185 = vector.broadcast %184 : vector<1x96xf32> to vector<32x96xf32>
    %186 = arith.addf %182, %185 : vector<32x96xf32>
    %187 = vector.extract_strided_slice %186 {offsets = [0, 0], sizes = [32, 32], strides = [1, 1]} : vector<32x96xf32> to vector<32x32xf32>
    %cst_76 = arith.constant 0.353553385 : f32
    %188 = vector.broadcast %cst_76 : f32 to vector<32x32xf32>
    %189 = arith.mulf %187, %188 : vector<32x32xf32>
    %190 = vector.extract_strided_slice %186 {offsets = [0, 32], sizes = [32, 32], strides = [1, 1]} : vector<32x96xf32> to vector<32x32xf32>
    %191 = vector.extract_strided_slice %186 {offsets = [0, 64], sizes = [32, 32], strides = [1, 1]} : vector<32x96xf32> to vector<32x32xf32>
    %192 = vector.extract_strided_slice %189 {offsets = [0, 0], sizes = [16, 8], strides = [1, 1]} : vector<32x32xf32> to vector<16x8xf32>
    %193 = vector.extract_strided_slice %189 {offsets = [0, 8], sizes = [16, 8], strides = [1, 1]} : vector<32x32xf32> to vector<16x8xf32>
    %194 = vector.extract_strided_slice %189 {offsets = [0, 16], sizes = [16, 8], strides = [1, 1]} : vector<32x32xf32> to vector<16x8xf32>
    %195 = vector.extract_strided_slice %189 {offsets = [0, 24], sizes = [16, 8], strides = [1, 1]} : vector<32x32xf32> to vector<16x8xf32>
    %196 = vector.shape_cast %192 : vector<16x8xf32> to vector<1x16x8xf32>
    %197 = vector.shape_cast %193 : vector<16x8xf32> to vector<1x16x8xf32>
    %198 = vector.shape_cast %194 : vector<16x8xf32> to vector<1x16x8xf32>
    %199 = vector.shape_cast %195 : vector<16x8xf32> to vector<1x16x8xf32>
    %200 = tpu.concatenate %196, %197, %198, %199 in 0 : vector<1x16x8xf32>, vector<1x16x8xf32>, vector<1x16x8xf32>, vector<1x16x8xf32> -> vector<4x16x8xf32>
    %201 = vector.extract_strided_slice %190 {offsets = [0, 0], sizes = [16, 8], strides = [1, 1]} : vector<32x32xf32> to vector<16x8xf32>
    %202 = vector.extract_strided_slice %190 {offsets = [0, 8], sizes = [16, 8], strides = [1, 1]} : vector<32x32xf32> to vector<16x8xf32>
    %203 = vector.extract_strided_slice %190 {offsets = [0, 16], sizes = [16, 8], strides = [1, 1]} : vector<32x32xf32> to vector<16x8xf32>
    %204 = vector.extract_strided_slice %190 {offsets = [0, 24], sizes = [16, 8], strides = [1, 1]} : vector<32x32xf32> to vector<16x8xf32>
    %205 = vector.shape_cast %201 : vector<16x8xf32> to vector<1x16x8xf32>
    %206 = vector.shape_cast %202 : vector<16x8xf32> to vector<1x16x8xf32>
    %207 = vector.shape_cast %203 : vector<16x8xf32> to vector<1x16x8xf32>
    %208 = vector.shape_cast %204 : vector<16x8xf32> to vector<1x16x8xf32>
    %209 = tpu.concatenate %205, %206, %207, %208 in 0 : vector<1x16x8xf32>, vector<1x16x8xf32>, vector<1x16x8xf32>, vector<1x16x8xf32> -> vector<4x16x8xf32>
    %210 = vector.extract_strided_slice %191 {offsets = [0, 0], sizes = [16, 8], strides = [1, 1]} : vector<32x32xf32> to vector<16x8xf32>
    %211 = vector.extract_strided_slice %191 {offsets = [0, 8], sizes = [16, 8], strides = [1, 1]} : vector<32x32xf32> to vector<16x8xf32>
    %212 = vector.extract_strided_slice %191 {offsets = [0, 16], sizes = [16, 8], strides = [1, 1]} : vector<32x32xf32> to vector<16x8xf32>
    %213 = vector.extract_strided_slice %191 {offsets = [0, 24], sizes = [16, 8], strides = [1, 1]} : vector<32x32xf32> to vector<16x8xf32>
    %214 = vector.shape_cast %210 : vector<16x8xf32> to vector<1x16x8xf32>
    %215 = vector.shape_cast %211 : vector<16x8xf32> to vector<1x16x8xf32>
    %216 = vector.shape_cast %212 : vector<16x8xf32> to vector<1x16x8xf32>
    %217 = vector.shape_cast %213 : vector<16x8xf32> to vector<1x16x8xf32>
    %218 = tpu.concatenate %214, %215, %216, %217 in 0 : vector<1x16x8xf32>, vector<1x16x8xf32>, vector<1x16x8xf32>, vector<1x16x8xf32> -> vector<4x16x8xf32>
    "tpu.trace_start"() <{level = 10 : i32, message = "hqd,hkd->hqk"}> : () -> ()
    %cst_77 = arith.constant dense<0.000000e+00> : vector<4x16x16xf32>
    %219 = tpu.matmul %200, %209, %cst_77 {dimension_numbers = #tpu.dot_dimension_numbers<[2], [2], [1], [1], [0, 0, 0, 1, 1, 1], [0], [0]>} : vector<4x16x8xf32>, vector<4x16x8xf32>, vector<4x16x16xf32> -> vector<4x16x16xf32>
    "tpu.trace_stop"() : () -> ()
    %cst_78 = arith.constant dense<0xFF800000> : vector<4x16xf32>
    %220 = vector.multi_reduction <maximumf>, %219, %cst_78 [2] : vector<4x16x16xf32> to vector<4x16xf32>
    %221 = vector.shape_cast %220 : vector<4x16xf32> to vector<4x16x1xf32>
    %222 = vector.broadcast %221 : vector<4x16x1xf32> to vector<4x16x16xf32>
    %223 = arith.subf %219, %222 : vector<4x16x16xf32>
    %224 = math.exp %223 : vector<4x16x16xf32>
    %cst_79 = arith.constant dense<0.000000e+00> : vector<4x16xf32>
    %225 = vector.multi_reduction <add>, %224, %cst_79 [2] : vector<4x16x16xf32> to vector<4x16xf32>
    %226 = vector.shape_cast %225 : vector<4x16xf32> to vector<4x16x1xf32>
    "tpu.trace_start"() <{level = 10 : i32, message = "hqk,hkd->hqd"}> : () -> ()
    %cst_80 = arith.constant dense<0.000000e+00> : vector<4x16x8xf32>
    %227 = tpu.matmul %224, %218, %cst_80 {dimension_numbers = #tpu.dot_dimension_numbers<[2], [1], [1], [2], [0, 0, 0, 1, 1, 2], [0], [0]>} : vector<4x16x16xf32>, vector<4x16x8xf32>, vector<4x16x8xf32> -> vector<4x16x8xf32>
    "tpu.trace_stop"() : () -> ()
    %228 = tpu.reciprocal %226 {approx = true} : vector<4x16x1xf32> -> vector<4x16x1xf32>
    %229 = vector.broadcast %228 : vector<4x16x1xf32> to vector<4x16x8xf32>
    %230 = arith.mulf %227, %229 : vector<4x16x8xf32>
    %c1_81 = arith.constant 1 : index
    %c0_82 = arith.constant 0 : index
    %c0_83 = arith.constant 0 : index
    %c0_84 = arith.constant 0 : index
    %231 = vector.load %arg4[%c1_81, %c0_82, %c0_83, %c0_84] : memref<2x4x8x32xf32, #tpu.memory_space<vmem>>, vector<1x4x8x32xf32>
    %232 = vector.shape_cast %231 : vector<1x4x8x32xf32> to vector<4x8x32xf32>
    "tpu.trace_start"() <{level = 10 : i32, message = "hqd,hdo->hqo"}> : () -> ()
    %cst_85 = arith.constant dense<0.000000e+00> : vector<4x16x32xf32>
    %233 = tpu.matmul %230, %232, %cst_85 {dimension_numbers = #tpu.dot_dimension_numbers<[2], [1], [1], [2], [0, 0, 0, 1, 1, 2], [0], [0]>} : vector<4x16x8xf32>, vector<4x8x32xf32>, vector<4x16x32xf32> -> vector<4x16x32xf32>
    "tpu.trace_stop"() : () -> ()
    %cst_86 = arith.constant dense<0.000000e+00> : vector<16x32xf32>
    %234 = vector.multi_reduction <add>, %233, %cst_86 [0] : vector<4x16x32xf32> to vector<16x32xf32>
    %235 = vector.extract_strided_slice %189 {offsets = [16, 0], sizes = [16, 8], strides = [1, 1]} : vector<32x32xf32> to vector<16x8xf32>
    %236 = vector.extract_strided_slice %189 {offsets = [16, 8], sizes = [16, 8], strides = [1, 1]} : vector<32x32xf32> to vector<16x8xf32>
    %237 = vector.extract_strided_slice %189 {offsets = [16, 16], sizes = [16, 8], strides = [1, 1]} : vector<32x32xf32> to vector<16x8xf32>
    %238 = vector.extract_strided_slice %189 {offsets = [16, 24], sizes = [16, 8], strides = [1, 1]} : vector<32x32xf32> to vector<16x8xf32>
    %239 = vector.shape_cast %235 : vector<16x8xf32> to vector<1x16x8xf32>
    %240 = vector.shape_cast %236 : vector<16x8xf32> to vector<1x16x8xf32>
    %241 = vector.shape_cast %237 : vector<16x8xf32> to vector<1x16x8xf32>
    %242 = vector.shape_cast %238 : vector<16x8xf32> to vector<1x16x8xf32>
    %243 = tpu.concatenate %239, %240, %241, %242 in 0 : vector<1x16x8xf32>, vector<1x16x8xf32>, vector<1x16x8xf32>, vector<1x16x8xf32> -> vector<4x16x8xf32>
    %244 = vector.extract_strided_slice %190 {offsets = [16, 0], sizes = [16, 8], strides = [1, 1]} : vector<32x32xf32> to vector<16x8xf32>
    %245 = vector.extract_strided_slice %190 {offsets = [16, 8], sizes = [16, 8], strides = [1, 1]} : vector<32x32xf32> to vector<16x8xf32>
    %246 = vector.extract_strided_slice %190 {offsets = [16, 16], sizes = [16, 8], strides = [1, 1]} : vector<32x32xf32> to vector<16x8xf32>
    %247 = vector.extract_strided_slice %190 {offsets = [16, 24], sizes = [16, 8], strides = [1, 1]} : vector<32x32xf32> to vector<16x8xf32>
    %248 = vector.shape_cast %244 : vector<16x8xf32> to vector<1x16x8xf32>
    %249 = vector.shape_cast %245 : vector<16x8xf32> to vector<1x16x8xf32>
    %250 = vector.shape_cast %246 : vector<16x8xf32> to vector<1x16x8xf32>
    %251 = vector.shape_cast %247 : vector<16x8xf32> to vector<1x16x8xf32>
    %252 = tpu.concatenate %248, %249, %250, %251 in 0 : vector<1x16x8xf32>, vector<1x16x8xf32>, vector<1x16x8xf32>, vector<1x16x8xf32> -> vector<4x16x8xf32>
    %253 = vector.extract_strided_slice %191 {offsets = [16, 0], sizes = [16, 8], strides = [1, 1]} : vector<32x32xf32> to vector<16x8xf32>
    %254 = vector.extract_strided_slice %191 {offsets = [16, 8], sizes = [16, 8], strides = [1, 1]} : vector<32x32xf32> to vector<16x8xf32>
    %255 = vector.extract_strided_slice %191 {offsets = [16, 16], sizes = [16, 8], strides = [1, 1]} : vector<32x32xf32> to vector<16x8xf32>
    %256 = vector.extract_strided_slice %191 {offsets = [16, 24], sizes = [16, 8], strides = [1, 1]} : vector<32x32xf32> to vector<16x8xf32>
    %257 = vector.shape_cast %253 : vector<16x8xf32> to vector<1x16x8xf32>
    %258 = vector.shape_cast %254 : vector<16x8xf32> to vector<1x16x8xf32>
    %259 = vector.shape_cast %255 : vector<16x8xf32> to vector<1x16x8xf32>
    %260 = vector.shape_cast %256 : vector<16x8xf32> to vector<1x16x8xf32>
    %261 = tpu.concatenate %257, %258, %259, %260 in 0 : vector<1x16x8xf32>, vector<1x16x8xf32>, vector<1x16x8xf32>, vector<1x16x8xf32> -> vector<4x16x8xf32>
    "tpu.trace_start"() <{level = 10 : i32, message = "hqd,hkd->hqk"}> : () -> ()
    %cst_87 = arith.constant dense<0.000000e+00> : vector<4x16x16xf32>
    %262 = tpu.matmul %243, %252, %cst_87 {dimension_numbers = #tpu.dot_dimension_numbers<[2], [2], [1], [1], [0, 0, 0, 1, 1, 1], [0], [0]>} : vector<4x16x8xf32>, vector<4x16x8xf32>, vector<4x16x16xf32> -> vector<4x16x16xf32>
    "tpu.trace_stop"() : () -> ()
    %cst_88 = arith.constant dense<0xFF800000> : vector<4x16xf32>
    %263 = vector.multi_reduction <maximumf>, %262, %cst_88 [2] : vector<4x16x16xf32> to vector<4x16xf32>
    %264 = vector.shape_cast %263 : vector<4x16xf32> to vector<4x16x1xf32>
    %265 = vector.broadcast %264 : vector<4x16x1xf32> to vector<4x16x16xf32>
    %266 = arith.subf %262, %265 : vector<4x16x16xf32>
    %267 = math.exp %266 : vector<4x16x16xf32>
    %cst_89 = arith.constant dense<0.000000e+00> : vector<4x16xf32>
    %268 = vector.multi_reduction <add>, %267, %cst_89 [2] : vector<4x16x16xf32> to vector<4x16xf32>
    %269 = vector.shape_cast %268 : vector<4x16xf32> to vector<4x16x1xf32>
    "tpu.trace_start"() <{level = 10 : i32, message = "hqk,hkd->hqd"}> : () -> ()
    %cst_90 = arith.constant dense<0.000000e+00> : vector<4x16x8xf32>
    %270 = tpu.matmul %267, %261, %cst_90 {dimension_numbers = #tpu.dot_dimension_numbers<[2], [1], [1], [2], [0, 0, 0, 1, 1, 2], [0], [0]>} : vector<4x16x16xf32>, vector<4x16x8xf32>, vector<4x16x8xf32> -> vector<4x16x8xf32>
    "tpu.trace_stop"() : () -> ()
    %271 = tpu.reciprocal %269 {approx = true} : vector<4x16x1xf32> -> vector<4x16x1xf32>
    %272 = vector.broadcast %271 : vector<4x16x1xf32> to vector<4x16x8xf32>
    %273 = arith.mulf %270, %272 : vector<4x16x8xf32>
    %c1_91 = arith.constant 1 : index
    %c0_92 = arith.constant 0 : index
    %c0_93 = arith.constant 0 : index
    %c0_94 = arith.constant 0 : index
    %274 = vector.load %arg4[%c1_91, %c0_92, %c0_93, %c0_94] : memref<2x4x8x32xf32, #tpu.memory_space<vmem>>, vector<1x4x8x32xf32>
    %275 = vector.shape_cast %274 : vector<1x4x8x32xf32> to vector<4x8x32xf32>
    "tpu.trace_start"() <{level = 10 : i32, message = "hqd,hdo->hqo"}> : () -> ()
    %cst_95 = arith.constant dense<0.000000e+00> : vector<4x16x32xf32>
    %276 = tpu.matmul %273, %275, %cst_95 {dimension_numbers = #tpu.dot_dimension_numbers<[2], [1], [1], [2], [0, 0, 0, 1, 1, 2], [0], [0]>} : vector<4x16x8xf32>, vector<4x8x32xf32>, vector<4x16x32xf32> -> vector<4x16x32xf32>
    "tpu.trace_stop"() : () -> ()
    %cst_96 = arith.constant dense<0.000000e+00> : vector<16x32xf32>
    %277 = vector.multi_reduction <add>, %276, %cst_96 [0] : vector<4x16x32xf32> to vector<16x32xf32>
    %278 = tpu.concatenate %234, %277 in 0 : vector<16x32xf32>, vector<16x32xf32> -> vector<32x32xf32>
    %c1_97 = arith.constant 1 : index
    %c0_98 = arith.constant 0 : index
    %c0_99 = arith.constant 0 : index
    %279 = vector.load %arg5[%c1_97, %c0_98, %c0_99] : memref<2x1x32xf32, #tpu.memory_space<vmem>>, vector<1x1x32xf32>
    %280 = vector.shape_cast %279 : vector<1x1x32xf32> to vector<1x32xf32>
    %281 = vector.broadcast %280 : vector<1x32xf32> to vector<32x32xf32>
    %282 = arith.addf %278, %281 : vector<32x32xf32>
    %283 = arith.addf %282, %179 : vector<32x32xf32>
    %c1_100 = arith.constant 1 : index
    %c0_101 = arith.constant 0 : index
    %c0_102 = arith.constant 0 : index
    %284 = vector.load %arg6[%c1_100, %c0_101, %c0_102] : memref<2x1x32xf32, #tpu.memory_space<vmem>>, vector<1x1x32xf32>
    %285 = vector.shape_cast %284 : vector<1x1x32xf32> to vector<1x32xf32>
    %c1_103 = arith.constant 1 : index
    %c0_104 = arith.constant 0 : index
    %c0_105 = arith.constant 0 : index
    %286 = vector.load %arg7[%c1_103, %c0_104, %c0_105] : memref<2x1x32xf32, #tpu.memory_space<vmem>>, vector<1x1x32xf32>
    %287 = vector.shape_cast %286 : vector<1x1x32xf32> to vector<1x32xf32>
    %cst_106 = arith.constant dense<0.000000e+00> : vector<32xf32>
    %288 = vector.multi_reduction <add>, %283, %cst_106 [1] : vector<32x32xf32> to vector<32xf32>
    %289 = vector.shape_cast %288 : vector<32xf32> to vector<32x1xf32>
    %cst_107 = arith.constant 3.200000e+01 : f32
    %290 = vector.broadcast %cst_107 : f32 to vector<32x1xf32>
    %291 = arith.divf %289, %290 : vector<32x1xf32>
    %292 = vector.broadcast %291 : vector<32x1xf32> to vector<32x32xf32>
    %293 = arith.subf %283, %292 : vector<32x32xf32>
    %294 = arith.mulf %293, %293 : vector<32x32xf32>
    %cst_108 = arith.constant dense<0.000000e+00> : vector<32xf32>
    %295 = vector.multi_reduction <add>, %294, %cst_108 [1] : vector<32x32xf32> to vector<32xf32>
    %296 = vector.shape_cast %295 : vector<32xf32> to vector<32x1xf32>
    %cst_109 = arith.constant 3.200000e+01 : f32
    %297 = vector.broadcast %cst_109 : f32 to vector<32x1xf32>
    %298 = arith.divf %296, %297 : vector<32x1xf32>
    %299 = vector.broadcast %291 : vector<32x1xf32> to vector<32x32xf32>
    %300 = arith.subf %283, %299 : vector<32x32xf32>
    %cst_110 = arith.constant 9.99999996E-13 : f32
    %301 = vector.broadcast %cst_110 : f32 to vector<32x1xf32>
    %302 = arith.addf %298, %301 : vector<32x1xf32>
    %303 = math.rsqrt %302 : vector<32x1xf32>
    %304 = vector.broadcast %303 : vector<32x1xf32> to vector<32x32xf32>
    %305 = arith.mulf %300, %304 : vector<32x32xf32>
    %306 = vector.broadcast %285 : vector<1x32xf32> to vector<32x32xf32>
    %307 = arith.mulf %305, %306 : vector<32x32xf32>
    %308 = vector.broadcast %287 : vector<1x32xf32> to vector<32x32xf32>
    %309 = arith.addf %307, %308 : vector<32x32xf32>
    %c1_111 = arith.constant 1 : index
    %c0_112 = arith.constant 0 : index
    %c0_113 = arith.constant 0 : index
    %310 = vector.load %arg8[%c1_111, %c0_112, %c0_113] : memref<2x32x64xf32, #tpu.memory_space<vmem>>, vector<1x32x64xf32>
    %311 = vector.shape_cast %310 : vector<1x32x64xf32> to vector<32x64xf32>
    %cst_114 = arith.constant dense<0.000000e+00> : vector<32x64xf32>
    %312 = tpu.matmul %309, %311, %cst_114 {dimension_numbers = #tpu.dot_dimension_numbers<[1], [0], [0], [1], [0, 0, 1, 1], [], []>} : vector<32x32xf32>, vector<32x64xf32>, vector<32x64xf32> -> vector<32x64xf32>
    %c1_115 = arith.constant 1 : index
    %c0_116 = arith.constant 0 : index
    %c0_117 = arith.constant 0 : index
    %313 = vector.load %arg9[%c1_115, %c0_116, %c0_117] : memref<2x1x64xf32, #tpu.memory_space<vmem>>, vector<1x1x64xf32>
    %314 = vector.shape_cast %313 : vector<1x1x64xf32> to vector<1x64xf32>
    %315 = vector.broadcast %314 : vector<1x64xf32> to vector<32x64xf32>
    %316 = arith.addf %312, %315 : vector<32x64xf32>
    %cst_118 = arith.constant 5.000000e-01 : f32
    %317 = vector.broadcast %cst_118 : f32 to vector<32x64xf32>
    %318 = arith.mulf %316, %317 : vector<32x64xf32>
    %cst_119 = arith.constant 1.41421354 : f32
    %319 = vector.broadcast %cst_119 : f32 to vector<32x64xf32>
    %320 = arith.divf %316, %319 : vector<32x64xf32>
    %321 = math.erf %320 : vector<32x64xf32>
    %cst_120 = arith.constant 1.000000e+00 : f32
    %322 = vector.broadcast %cst_120 : f32 to vector<32x64xf32>
    %323 = arith.addf %322, %321 : vector<32x64xf32>
    %324 = arith.mulf %318, %323 : vector<32x64xf32>
    %c1_121 = arith.constant 1 : index
    %c0_122 = arith.constant 0 : index
    %c0_123 = arith.constant 0 : index
    %325 = vector.load %arg10[%c1_121, %c0_122, %c0_123] : memref<2x64x32xf32, #tpu.memory_space<vmem>>, vector<1x64x32xf32>
    %326 = vector.shape_cast %325 : vector<1x64x32xf32> to vector<64x32xf32>
    %cst_124 = arith.constant dense<0.000000e+00> : vector<32x32xf32>
    %327 = tpu.matmul %324, %326, %cst_124 {dimension_numbers = #tpu.dot_dimension_numbers<[1], [0], [0], [1], [0, 0, 1, 1], [], []>} : vector<32x64xf32>, vector<64x32xf32>, vector<32x32xf32> -> vector<32x32xf32>
    %c1_125 = arith.constant 1 : index
    %c0_126 = arith.constant 0 : index
    %c0_127 = arith.constant 0 : index
    %328 = vector.load %arg11[%c1_125, %c0_126, %c0_127] : memref<2x1x32xf32, #tpu.memory_space<vmem>>, vector<1x1x32xf32>
    %329 = vector.shape_cast %328 : vector<1x1x32xf32> to vector<1x32xf32>
    %330 = vector.broadcast %329 : vector<1x32xf32> to vector<32x32xf32>
    %331 = arith.addf %327, %330 : vector<32x32xf32>
    %332 = arith.addf %331, %309 : vector<32x32xf32>
    %c1_128 = arith.constant 1 : index
    %c0_129 = arith.constant 0 : index
    %c0_130 = arith.constant 0 : index
    %333 = vector.load %arg12[%c1_128, %c0_129, %c0_130] : memref<2x1x32xf32, #tpu.memory_space<vmem>>, vector<1x1x32xf32>
    %334 = vector.shape_cast %333 : vector<1x1x32xf32> to vector<1x32xf32>
    %c1_131 = arith.constant 1 : index
    %c0_132 = arith.constant 0 : index
    %c0_133 = arith.constant 0 : index
    %335 = vector.load %arg13[%c1_131, %c0_132, %c0_133] : memref<2x1x32xf32, #tpu.memory_space<vmem>>, vector<1x1x32xf32>
    %336 = vector.shape_cast %335 : vector<1x1x32xf32> to vector<1x32xf32>
    %cst_134 = arith.constant dense<0.000000e+00> : vector<32xf32>
    %337 = vector.multi_reduction <add>, %332, %cst_134 [1] : vector<32x32xf32> to vector<32xf32>
    %338 = vector.shape_cast %337 : vector<32xf32> to vector<32x1xf32>
    %cst_135 = arith.constant 3.200000e+01 : f32
    %339 = vector.broadcast %cst_135 : f32 to vector<32x1xf32>
    %340 = arith.divf %338, %339 : vector<32x1xf32>
    %341 = vector.broadcast %340 : vector<32x1xf32> to vector<32x32xf32>
    %342 = arith.subf %332, %341 : vector<32x32xf32>
    %343 = arith.mulf %342, %342 : vector<32x32xf32>
    %cst_136 = arith.constant dense<0.000000e+00> : vector<32xf32>
    %344 = vector.multi_reduction <add>, %343, %cst_136 [1] : vector<32x32xf32> to vector<32xf32>
    %345 = vector.shape_cast %344 : vector<32xf32> to vector<32x1xf32>
    %cst_137 = arith.constant 3.200000e+01 : f32
    %346 = vector.broadcast %cst_137 : f32 to vector<32x1xf32>
    %347 = arith.divf %345, %346 : vector<32x1xf32>
    %348 = vector.broadcast %340 : vector<32x1xf32> to vector<32x32xf32>
    %349 = arith.subf %332, %348 : vector<32x32xf32>
    %cst_138 = arith.constant 9.99999996E-13 : f32
    %350 = vector.broadcast %cst_138 : f32 to vector<32x1xf32>
    %351 = arith.addf %347, %350 : vector<32x1xf32>
    %352 = math.rsqrt %351 : vector<32x1xf32>
    %353 = vector.broadcast %352 : vector<32x1xf32> to vector<32x32xf32>
    %354 = arith.mulf %349, %353 : vector<32x32xf32>
    %355 = vector.broadcast %334 : vector<1x32xf32> to vector<32x32xf32>
    %356 = arith.mulf %354, %355 : vector<32x32xf32>
    %357 = vector.broadcast %336 : vector<1x32xf32> to vector<32x32xf32>
    %358 = arith.addf %356, %357 : vector<32x32xf32>
    %c0_139 = arith.constant 0 : index
    %c0_140 = arith.constant 0 : index
    %359 = vector.load %arg14[%c0_139, %c0_140] : memref<32x32xf32, #tpu.memory_space<vmem>>, vector<32x32xf32>
    tpu.vector_store %arg14[%c0_139, %c0_140], %358 {strides = array<i32>} : memref<32x32xf32, #tpu.memory_space<vmem>>, vector<32x32xf32>,
    return
  }
  func.func @transform_0(%arg0: i32) -> (i32, i32) {
    %c0_i32 = arith.constant 0 : i32
    %c0_i32_0 = arith.constant 0 : i32
    return %arg0, %c0_i32 : i32, i32
  }
  func.func @transform_1(%arg0: i32) -> (i32, i32, i32) {
    %c0_i32 = arith.constant 0 : i32
    %c0_i32_0 = arith.constant 0 : i32
    %c0_i32_1 = arith.constant 0 : i32
    %c0_i32_2 = arith.constant 0 : i32
    return %c0_i32, %c0_i32_0, %c0_i32_1 : i32, i32, i32
  }
  func.func @transform_2(%arg0: i32) -> (i32, i32, i32) {
    %c0_i32 = arith.constant 0 : i32
    %c0_i32_0 = arith.constant 0 : i32
    %c0_i32_1 = arith.constant 0 : i32
    %c0_i32_2 = arith.constant 0 : i32
    return %c0_i32, %c0_i32_0, %c0_i32_1 : i32, i32, i32
  }
  func.func @transform_3(%arg0: i32) -> (i32, i32, i32, i32) {
    %c0_i32 = arith.constant 0 : i32
    %c0_i32_0 = arith.constant 0 : i32
    %c0_i32_1 = arith.constant 0 : i32
    %c0_i32_2 = arith.constant 0 : i32
    %c0_i32_3 = arith.constant 0 : i32
    return %c0_i32, %c0_i32_0, %c0_i32_1, %c0_i32_2 : i32, i32, i32, i32
  }
  func.func @transform_4(%arg0: i32) -> (i32, i32, i32) {
    %c0_i32 = arith.constant 0 : i32
    %c0_i32_0 = arith.constant 0 : i32
    %c0_i32_1 = arith.constant 0 : i32
    %c0_i32_2 = arith.constant 0 : i32
    return %c0_i32, %c0_i32_0, %c0_i32_1 : i32, i32, i32
  }
  func.func @transform_5(%arg0: i32) -> (i32, i32, i32) {
    %c0_i32 = arith.constant 0 : i32
    %c0_i32_0 = arith.constant 0 : i32
    %c0_i32_1 = arith.constant 0 : i32
    %c0_i32_2 = arith.constant 0 : i32
    return %c0_i32, %c0_i32_0, %c0_i32_1 : i32, i32, i32
  }
  func.func @transform_6(%arg0: i32) -> (i32, i32, i32) {
    %c0_i32 = arith.constant 0 : i32
    %c0_i32_0 = arith.constant 0 : i32
    %c0_i32_1 = arith.constant 0 : i32
    %c0_i32_2 = arith.constant 0 : i32
    return %c0_i32, %c0_i32_0, %c0_i32_1 : i32, i32, i32
  }
  func.func @transform_7(%arg0: i32) -> (i32, i32, i32) {
    %c0_i32 = arith.constant 0 : i32
    %c0_i32_0 = arith.constant 0 : i32
    %c0_i32_1 = arith.constant 0 : i32
    %c0_i32_2 = arith.constant 0 : i32
    return %c0_i32, %c0_i32_0, %c0_i32_1 : i32, i32, i32
  }
  func.func @transform_8(%arg0: i32) -> (i32, i32, i32) {
    %c0_i32 = arith.constant 0 : i32
    %c0_i32_0 = arith.constant 0 : i32
    %c0_i32_1 = arith.constant 0 : i32
    %c0_i32_2 = arith.constant 0 : i32
    return %c0_i32, %c0_i32_0, %c0_i32_1 : i32, i32, i32
  }
  func.func @transform_9(%arg0: i32) -> (i32, i32, i32) {
    %c0_i32 = arith.constant 0 : i32
    %c0_i32_0 = arith.constant 0 : i32
    %c0_i32_1 = arith.constant 0 : i32
    %c0_i32_2 = arith.constant 0 : i32
    return %c0_i32, %c0_i32_0, %c0_i32_1 : i32, i32, i32
  }
  func.func @transform_10(%arg0: i32) -> (i32, i32, i32) {
    %c0_i32 = arith.constant 0 : i32
    %c0_i32_0 = arith.constant 0 : i32
    %c0_i32_1 = arith.constant 0 : i32
    %c0_i32_2 = arith.constant 0 : i32
    return %c0_i32, %c0_i32_0, %c0_i32_1 : i32, i32, i32
  }
  func.func @transform_11(%arg0: i32) -> (i32, i32, i32) {
    %c0_i32 = arith.constant 0 : i32
    %c0_i32_0 = arith.constant 0 : i32
    %c0_i32_1 = arith.constant 0 : i32
    %c0_i32_2 = arith.constant 0 : i32
    return %c0_i32, %c0_i32_0, %c0_i32_1 : i32, i32, i32
  }
  func.func @transform_12(%arg0: i32) -> (i32, i32, i32) {
    %c0_i32 = arith.constant 0 : i32
    %c0_i32_0 = arith.constant 0 : i32
    %c0_i32_1 = arith.constant 0 : i32
    %c0_i32_2 = arith.constant 0 : i32
    return %c0_i32, %c0_i32_0, %c0_i32_1 : i32, i32, i32
  }
  func.func @transform_13(%arg0: i32) -> (i32, i32) {
    %c0_i32 = arith.constant 0 : i32
    %c0_i32_0 = arith.constant 0 : i32
    return %arg0, %c0_i32 : i32, i32
  }
}

</mosaic_0001>

<bundles_post_ra>
// kernel: tpu_custom_call.1
= control target key start
LH: loop header
LB: loop body
LE: loop exit
PB: predicated region body
PF: predicated region fallthrough
CT: control target
= control target key end

     0   :  { %18 = vsyncpa [#allocation3], 0  ;;  %s8244_s0 = inlined_call_operand.hbm [shape: f32[32,32], index: 0, kind: input, shape index: {}]   ;;  %s8245_s1 = inlined_call_operand.vmem [shape: f32[2,32,96], index: 1, kind: input, shape index: {}]   ;;  %s8246_s2 = inlined_call_operand.vmem [shape: f32[2,1,96], index: 2, kind: input, shape index: {}]   ;;  %s8247_s3 = inlined_call_operand.vmem [shape: f32[2,4,8,32], index: 3, kind: input, shape index: {}]   ;;  %s8248_s4 = inlined_call_operand.vmem [shape: f32[2,1,32], index: 4, kind: input, shape index: {}]   ;;  %s8249_s5 = inlined_call_operand.vmem [shape: f32[2,1,32], index: 5, kind: input, shape index: {}]   ;;  %s8250_s6 = inlined_call_operand.vmem [shape: f32[2,1,32], index: 6, kind: input, shape index: {}]   ;;  %s8251_s7 = inlined_call_operand.vmem [shape: f32[2,32,64], index: 7, kind: input, shape index: {}]   ;;  %s8252_s8 = inlined_call_operand.vmem [shape: f32[2,1,64], index: 8, kind: input, shape index: {}]   ;;  %s8253_s9 = inlined_call_operand.vmem [shape: f32[2,64,32], index: 9, kind: input, shape index: {}]   ;;  %s8254_s10 = inlined_call_operand.vmem [shape: f32[2,1,32], index: 10, kind: input, shape index: {}]   ;;  %s8255_s11 = inlined_call_operand.vmem [shape: f32[2,1,32], index: 11, kind: input, shape index: {}]   ;;  %s8256_s12 = inlined_call_operand.vmem [shape: f32[2,1,32], index: 12, kind: input, shape index: {}]   ;;  %s8257_s13 = inlined_call_operand.hbm [shape: f32[32,32], index: 13, kind: output, shape index: {}]  }
   0x1   :  { %19 = vsyncpa [#allocation4], 0  ;;  %s7271_s25 = smov [#allocation2]   ;;  %s7223_s29 = scalar_lea.hbm %s8244_s0, 512 }
   0x2   :  { %s25_s26 = sshll.u32 %s7271_s25, 4  ;;  %p7224_p0 = scmp.ne.s32.totalorder %s8244_s0, %s7223_s29  ;;  %s26_s26 = int_to_ptr.vmem [resolvable:$true] %s25_s26 }
   0x3   :  { %p7227_p1 = scmp.lt.u32.totalorder %s7223_s29, %s8244_s0 }
   0x5   :  { %p7229_p2 = pnand %p7227_p1, %p7224_p0 }
   0x7   :  { %7232 = shalt.err (!%p7229_p2)
}
   0x8   :  { %s7233_s17 = scalar_lea.vmem %s26_s26, 512  ;;  %p7238_p4 = scmp.lt.s32.totalorder %s26_s26, %s26_s26 }
   0x9   :  { %p7234_p3 = scmp.ne.s32.totalorder %s26_s26, %s7233_s17  ;;  %p7239_p5 = scmp.lt.s32.totalorder %s7233_s17, %s7233_s17 }
   0xb   :  { %p7240_p6 = por %p7239_p5, %p7238_p4 }
   0xd   :  { %p7241_p7 = pnand %p7240_p6, %p7234_p3 }
   0xf   :  { %7244 = shalt.err (!%p7241_p7)
}
  0x10   :  { %s7272_s18 = smov 128   ;;  %s7273_s19 = smov 8  }
  0x11   :  { %31 = dma.hbm_to_vmem [thread:$0]  %s8244_s0, 512, %s26_s26, [#allocation3], %s7272_s18, %s7272_s18, %s7273_s19  }
  0x12   :  { %7267 = dma.done.wait [#allocation3], 512  }
  0x13   :  { %7268 = vsyncadd [#allocation3], 4294966784  ;;  %vm74_vm0 = vcmask 261120   ;;  %v63_v0 = vld [vmem:[%s8245_s1] sm:$0xff]  ;;  %v64_v1 = vld [vmem:[%s8245_s1 + $0x8] sm:$0xff]  ;;  %vm208_vm1 = vcmask 64512  }
  0x14   :  { %v65_v2 = vld [vmem:[%s8245_s1 + $0x10] sm:$0xff]  ;;  %v6592_v3 = vpack.c.bf16 %v64_v1, %v63_v0  ;;  %v66_v4 = vld [vmem:[%s8245_s1 + $0x18] sm:$0xff]  ;;  %v7377_v5 = vld [vmem:[#allocation2] sm:$0xff]  ;;  %s7274_s14 = smov 104   ;;  %s7275_s15 = smov 120   ;;  %vm553_vm3 = vcmask 130048  }
  0x15   :  { %v6596_v6 = vpack.c.bf16 %v66_v4, %v65_v2  ;;  %6196 = vmatprep.mubr.msk.f32.mxu0 %vm74_vm0, %v7377_v5  ;;  %v7381_v7 = vld [vmem:[#allocation2 + $0x8] sm:$0xff]  ;;  %v7388_v8 = vld [vmem:[%s8246_s2] ss:$0 sm:$0xff]  ;;  %s7276_s16 = smov 96   ;;  %s7277_s17 = smov 112   ;;  %v61_v15 = vld [vmem:[#allocation2 + $0x10] sm:$0xff] }
  0x16   :  { %6593 = vmatprep.subr.bf16.mxu0 %v6592_v3  ;;  %v62_v16 = vld [vmem:[#allocation2 + $0x18] sm:$0xff]  ;;  %vm7406_vm2 = vmpackc.low %vm208_vm1, %vm208_vm1  ;;  %s7278_s20 = smov 64   ;;  %vm2720_vm4 = vcmask 523264  }
  0x17   :  { %6595 = vmatpush3.bf16.msra.mxu0 %v6592_v3 }
  0x18   :  { %6597 = vmatprep.subr.bf16.mxu0 %v6596_v6 }
  0x1b   :  { %6599 = vmatpush3.bf16.msra.mxu0 %v6596_v6 }
  0x1e   :  { %6197 = vmatmul.mubr.msk.f32.vlgmr.msra.gmra.mrb[0].mxu0 %vm74_vm0, %v7381_v7 }
  0x1f   :  { %6199 = vmatprep.mubr.msk.f32.mxu0 %vm74_vm0, %v61_v15 }
  0x22   :  { %6200 = vmatmul.mubr.msk.f32.gmra.mrb[2].mxu0 %vm74_vm0, %v62_v16 }
  0xf1   :  { %v6198_v9 = vpop.f32.mrb[0].mxu0 }
  0xf2   :  { %v159_v10 = vadd.f32 %v6198_v9, %v7388_v8  ;;  %v153_v11 = vpop.f32.mrb[1].mxu0 }
  0xf3   :  { %v154_v12 = vadd.f32 %v7388_v8, %v153_v11 }
  0xf4   :  { %v173_v25 = vmul.f32 0.35355338, %v159_v10 }
  0xf5   :  { %v6835_v13 = vpack.i.bf16 %v159_v10, %v154_v12  ;;  %v172_v14 = vmul.f32 0.35355338, %v154_v12  ;;  %v6201_v52 = vpop.f32.mrb[2].mxu0 }
  0xf6   :  { %v7446_v53 = vadd.f32 %v6201_v52, %v7388_v8  ;;  %v163_v54 = vpop.f32.mrb[3].mxu0 }
  0xf7   :  { %6836 = vrot.lane.b32.xlu1 %v6835_v13, %s7274_s14  ;;  %6826 = vrot.lane.b32.xlu0 %v6835_v13, %s7275_s15  ;;  %v7449_v55 = vadd.f32 %v7388_v8, %v163_v54  ;;  %v7488_v54 = vld [vmem:[%s8247_s3] sm:$0xff] }
  0xf8   :  { %6206 = vmatprep.mubr.msk.f32.mxu1 %vm208_vm1, %v172_v14 }
  0xf9   :  { %v7453_v56 = vpack.i.bf16 %v7446_v53, %v7449_v55 }
  0xfb   :  { %6841 = vrot.lane.b32.xlu1 %v6835_v13, %s7276_s16  ;;  %6831 = vrot.lane.b32.xlu0 %v6835_v13, %s7277_s17 }
 0x169   :  { %v7398_v17 = vpop.permute.xlu1 %6836  ;;  %v6827_v18 = vpop.permute.xlu0 %6826 }
 0x16a   :  { %6846 = vrot.lane.b32.xlu0 %v6827_v18, %s7276_s16 }
 0x16d   :  { %v6842_v19 = vpop.permute.xlu1 %6841  ;;  %v7401_v20 = vpop.permute.xlu0 %6831 }
 0x16e   :  { %v6844_v21 = vunpack.i.h.bf16 %v6842_v19  ;;  %v6843_v22 = vunpack.i.l.bf16 %v6842_v19  ;;  %6851 = vrot.lane.b32.xlu1 %v7401_v20, %s7276_s16  ;;  %6856 = vrot.lane.b32.xlu0 %v7398_v17, %s7276_s16 }
 0x170   :  { %v6600_v24 = vpack.c.bf16 %v6844_v21, %v6843_v22 }
 0x172   :  { %6602 = vmatprep.subr.msk.bf16.mxu1 %vm7406_vm2, %v6600_v24  ;;  %178 = vrot.lane.b32.xlu1 %v172_v14, %s7275_s15 }
 0x173   :  { %6605 = vmatpush3.bf16.xpose.msk.msra.mxu1 %vm7406_vm2, %v6600_v24  ;;  %180 = vrot.lane.b32.xlu0 %v173_v25, %s7275_s15 }
 0x176   :  { %182 = vrot.lane.b32.xlu1 %v172_v14, %s7277_s17 }
 0x177   :  { %184 = vrot.lane.b32.xlu0 %v173_v25, %s7277_s17 }
 0x17a   :  { %6207 = vmatmul.mubr.msk.f32.vlgmr.msra.gmra.mrb[0].mxu1 %vm208_vm1, %v173_v25  ;;  %186 = vrot.lane.b32.xlu1 %v172_v14, %s7274_s14 }
 0x17b   :  { %188 = vrot.lane.b32.xlu0 %v173_v25, %s7274_s14 }
 0x17e   :  { %6866 = vrot.lane.b32.xlu1 %v6827_v18, %s7278_s20 }
 0x17f   :  { %6861 = vrot.lane.b32.xlu0 %v6835_v13, %s7278_s20 }
 0x1dc   :  { %v6847_v26 = vpop.permute.xlu0 %6846 }
 0x1dd   :  { %v6849_v27 = vunpack.i.h.bf16 %v6847_v26  ;;  %v6848_v28 = vunpack.i.l.bf16 %v6847_v26 }
 0x1df   :  { %v6606_v29 = vpack.c.bf16 %v6849_v27, %v6848_v28 }
 0x1e0   :  { %v6852_v30 = vpop.permute.xlu1 %6851  ;;  %v6857_v33 = vpop.permute.xlu0 %6856 }
 0x1e1   :  { %v6854_v31 = vunpack.i.h.bf16 %v6852_v30  ;;  %v6853_v32 = vunpack.i.l.bf16 %v6852_v30  ;;  %6608 = vmatprep.subr.msk.bf16.mxu0 %vm7406_vm2, %v6606_v29  ;;  %v6859_v34 = vunpack.i.h.bf16 %v6857_v33  ;;  %v6858_v35 = vunpack.i.l.bf16 %v6857_v33 }
 0x1e2   :  { %6611 = vmatpush3.bf16.xpose.msk.msra.mxu0 %vm7406_vm2, %v6606_v29 }
 0x1e3   :  { %v6612_v36 = vpack.c.bf16 %v6854_v31, %v6853_v32  ;;  %v6618_v37 = vpack.c.bf16 %v6859_v34, %v6858_v35 }
 0x1e4   :  { %v179_v38 = vpop.permute.xlu1 %178 }
 0x1e5   :  { %v181_v39 = vpop.permute.xlu0 %180  ;;  %6213 = vmatprep.mubr.msk.f32.mxu0 %vm208_vm1, %v179_v38  ;;  %6614 = vmatprep.subr.msk.bf16.mxu1 %vm7406_vm2, %v6612_v36 }
 0x1e6   :  { %6620 = vmatprep.subr.msk.bf16.mxu0 %vm7406_vm2, %v6618_v37  ;;  %6617 = vmatpush3.bf16.xpose.msk.msra.mxu1 %vm7406_vm2, %v6612_v36 }
 0x1e8   :  { %v183_v40 = vpop.permute.xlu1 %182 }
 0x1e9   :  { %v185_v41 = vpop.permute.xlu0 %184  ;;  %6214 = vmatmul.mubr.msk.f32.vlgmr.msra.gmra.mrb[4].mxu0 %vm208_vm1, %v181_v39  ;;  %6220 = vmatprep.mubr.msk.f32.mxu1 %vm208_vm1, %v183_v40 }
 0x1ea   :  { %6623 = vmatpush3.bf16.xpose.msk.msra.mxu0 %vm7406_vm2, %v6618_v37 }
 0x1ec   :  { %v187_v42 = vpop.permute.xlu1 %186 }
 0x1ed   :  { %v189_v43 = vpop.permute.xlu0 %188  ;;  %6221 = vmatmul.mubr.msk.f32.vlgmr.msra.gmra.mrb[2].mxu1 %vm208_vm1, %v185_v41  ;;  %6227 = vmatprep.mubr.msk.f32.mxu0 %vm208_vm1, %v187_v42 }
 0x1f0   :  { %v6867_v44 = vpop.permute.xlu1 %6866 }
 0x1f1   :  { %v6862_v45 = vpop.permute.xlu0 %6861  ;;  %v6869_v46 = vunpack.i.h.bf16 %v6867_v44  ;;  %v6868_v47 = vunpack.i.l.bf16 %v6867_v44  ;;  %6228 = vmatmul.mubr.msk.f32.vlgmr.msra.gmra.mrb[6].mxu0 %vm208_vm1, %v189_v43 }
 0x1f2   :  { %v6864_v48 = vunpack.i.h.bf16 %v6862_v45  ;;  %v6863_v49 = vunpack.i.l.bf16 %v6862_v45 }
 0x1f3   :  { %v6628_v50 = vpack.c.bf16 %v6869_v46, %v6868_v47 }
 0x1f4   :  { %v6624_v51 = vpack.c.bf16 %v6864_v48, %v6863_v49 }
 0x1f5   :  { %6629 = vmatprep.subr.bf16.mxu1 %v6628_v50 }
 0x1f6   :  { %6625 = vmatprep.subr.bf16.mxu0 %v6624_v51  ;;  %6631 = vmatpush3.bf16.msra.mxu1 %v6628_v50 }
 0x1f7   :  { %6627 = vmatpush3.bf16.msra.mxu0 %v6624_v51 }
 0x24d   :  { %v6208_v57 = vpop.f32.mrb[0].mxu1 }
 0x24e   :  { %v283_v58 = vpop.f32.mrb[1].mxu1  ;;  %v557_v59 = vsel %vm553_vm3, %v6208_v57, -inf }
 0x24f   :  { %558 = vmax.xlane.f32.xlu0 %v557_v59  ;;  %v554_v60 = vsel %vm553_vm3, %v283_v58, -inf }
 0x250   :  { %555 = vmax.xlane.f32.xlu1 %v554_v60 }
 0x2bc   :  { %v6215_v61 = vpop.f32.mrb[4].mxu0 }
 0x2bd   :  { %v370_v62 = vpop.f32.mrb[5].mxu0  ;;  %v563_v63 = vsel %vm553_vm3, %v6215_v61, -inf }
 0x2be   :  { %564 = vmax.xlane.f32.xlu1 %v563_v63  ;;  %v560_v0 = vsel %vm553_vm3, %v370_v62, -inf }
 0x2bf   :  { %561 = vmax.xlane.f32.xlu0 %v560_v0 }
 0x2c0   :  { %v6222_v1 = vpop.f32.mrb[2].mxu1 }
 0x2c1   :  { %v457_v2 = vpop.f32.mrb[3].mxu1  ;;  %v569_v3 = vsel %vm553_vm3, %v6222_v1, -inf }
 0x2c2   :  { %570 = vmax.xlane.f32.xlu1 %v569_v3  ;;  %v566_v4 = vsel %vm553_vm3, %v457_v2, -inf  ;;  %v7516_v3 = vmul.f32 0.35355338, %v7449_v55 }
 0x2c3   :  { %567 = vmax.xlane.f32.xlu0 %v566_v4 }
 0x2c4   :  { %v6229_v6 = vpop.f32.mrb[6].mxu0 }
 0x2c5   :  { %v544_v8 = vpop.f32.mrb[7].mxu0  ;;  %v575_v9 = vsel %vm553_vm3, %v6229_v6, -inf }
 0x2c6   :  { %576 = vmax.xlane.f32.xlu1 %v575_v9  ;;  %v572_v10 = vsel %vm553_vm3, %v544_v8, -inf }
 0x2c7   :  { %573 = vmax.xlane.f32.xlu0 %v572_v10  ;;  %v7535_v10 = vld [vmem:[%s8247_s3 + $0x8] sm:$0xff] }
 0x2d7   :  { %6871 = vrot.lane.b32.xlu1 %v7401_v20, %s7278_s20 }
 0x2db   :  { %6881 = vrot.lane.b32.xlu1 %v7453_v56, %s7275_s15 }
 0x2dc   :  { %v559_v11 = vpop.xlane.xlu0 %558 }
 0x2dd   :  { %v579_v12 = vsub.f32 %v6208_v57, %v559_v11  ;;  %v556_v13 = vpop.xlane.xlu1 %555  ;;  %6876 = vrot.lane.b32.xlu0 %v7398_v17, %s7278_s20 }
 0x2de   :  { %v578_v14 = vsub.f32 %v283_v58, %v556_v13 }
 0x2df   :  { %v588_v15 = vmul.f32 1.442695, %v579_v12  ;;  %6891 = vrot.lane.b32.xlu1 %v7453_v56, %s7274_s14 }
 0x2e0   :  { %v586_v16 = vmul.f32 1.442695, %v578_v14 }
 0x2e1   :  { %6886 = vrot.lane.b32.xlu0 %v7453_v56, %s7277_s17 }
 0x2e2   :  { %7045 = vpow2.f32 %v586_v16 }
 0x2e3   :  { %7047 = vpow2.f32 %v588_v15  ;;  %6896 = vrot.lane.b32.xlu1 %v7453_v56, %s7276_s16 }
 0x2ec   :  { %v7046_v18 = vpop.eup %7045 }
 0x2ed   :  { %v7048_v19 = vpop.eup %7047  ;;  %6234 = vmatprep.mubr.msk.f32.mxu0 %vm553_vm3, %v7046_v18  ;;  %v602_v20 = vsel %vm553_vm3, %v7046_v18, 0.0 }
 0x2ee   :  { %6235 = vmatmul.mubr.msk.f32.vlgmr.msra.gmra.mrb[8].mxu0 %vm553_vm3, %v7048_v19  ;;  %v605_v17 = vsel %vm553_vm3, %v7048_v19, 0.0 }
 0x300   :  { %603 = vadd.xlane.f32.xlu0 %v602_v20 }
 0x307   :  { %606 = vadd.xlane.f32.xlu1 %v605_v17 }
 0x34b   :  { %v565_v21 = vpop.xlane.xlu1 %564 }
 0x34c   :  { %v581_v22 = vsub.f32 %v6215_v61, %v565_v21  ;;  %v562_v24 = vpop.xlane.xlu0 %561 }
 0x34d   :  { %v580_v25 = vsub.f32 %v370_v62, %v562_v24  ;;  %v7500_v62 = vld [vmem:[%s8247_s3 + $0x10] sm:$0xff] }
 0x34e   :  { %v592_v26 = vmul.f32 1.442695, %v581_v22 }
 0x34f   :  { %v590_v27 = vmul.f32 1.442695, %v580_v25  ;;  %v571_v28 = vpop.xlane.xlu1 %570 }
 0x350   :  { %7049 = vpow2.f32 %v592_v26  ;;  %v583_v29 = vsub.f32 %v6222_v1, %v571_v28  ;;  %v568_v30 = vpop.xlane.xlu0 %567 }
 0x351   :  { %7051 = vpow2.f32 %v590_v27  ;;  %v582_v31 = vsub.f32 %v457_v2, %v568_v30 }
 0x352   :  { %v596_v32 = vmul.f32 1.442695, %v583_v29 }
 0x353   :  { %v594_v33 = vmul.f32 1.442695, %v582_v31  ;;  %v577_v34 = vpop.xlane.xlu1 %576 }
 0x354   :  { %7053 = vpow2.f32 %v596_v32  ;;  %v585_v35 = vsub.f32 %v6229_v6, %v577_v34  ;;  %v574_v36 = vpop.xlane.xlu0 %573  ;;  %v7526_v6 = vmul.f32 0.35355338, %v7446_v53  ;;  %v7544_v53 = vld [vmem:[%s8247_s3 + $0x18] sm:$0xff] }
 0x355   :  { %7055 = vpow2.f32 %v594_v33  ;;  %v584_v37 = vsub.f32 %v544_v8, %v574_v36 }
 0x356   :  { %v600_v38 = vmul.f32 1.442695, %v585_v35 }
 0x357   :  { %v598_v39 = vmul.f32 1.442695, %v584_v37  ;;  %v6872_v40 = vpop.permute.xlu1 %6871 }
 0x358   :  { %v6874_v41 = vunpack.i.h.bf16 %v6872_v40  ;;  %v6873_v42 = vunpack.i.l.bf16 %v6872_v40  ;;  %v6877_v43 = vpop.permute.xlu0 %6876 }
 0x359   :  { %7057 = vpow2.f32 %v598_v39  ;;  %v6879_v44 = vunpack.i.h.bf16 %v6877_v43  ;;  %v6878_v45 = vunpack.i.l.bf16 %v6877_v43 }
 0x35a   :  { %v7050_v46 = vpop.eup %7049  ;;  %7059 = vpow2.f32 %v600_v38  ;;  %v6632_v47 = vpack.c.bf16 %v6874_v41, %v6873_v42 }
 0x35b   :  { %v7052_v48 = vpop.eup %7051  ;;  %v7479_v49 = vpop.permute.xlu1 %6881  ;;  %v611_v50 = vsel %vm553_vm3, %v7050_v46, 0.0  ;;  %v6636_v51 = vpack.c.bf16 %v6879_v44, %v6878_v45 }
 0x35c   :  { %6241 = vmatprep.mubr.msk.f32.mxu1 %vm553_vm3, %v7052_v48  ;;  %6633 = vmatprep.subr.bf16.mxu0 %v6632_v47  ;;  %v7483_v52 = vpop.permute.xlu0 %6886  ;;  %v608_v1 = vsel %vm553_vm3, %v7052_v48, 0.0 }
 0x35d   :  { %612 = vadd.xlane.f32.xlu0 %v611_v50  ;;  %6242 = vmatmul.mubr.msk.f32.vlgmr.msra.gmra.mrb[4].mxu1 %vm553_vm3, %v7050_v46 }
 0x35e   :  { %v7054_v57 = vpop.eup %7053  ;;  %6635 = vmatpush3.bf16.msra.mxu0 %v6632_v47  ;;  %6637 = vmatprep.subr.bf16.mxu1 %v6636_v51 }
 0x35f   :  { %v7056_v58 = vpop.eup %7055  ;;  %6639 = vmatpush3.bf16.msra.mxu1 %v6636_v51  ;;  %v7491_v59 = vpop.permute.xlu1 %6891  ;;  %v617_v60 = vsel %vm553_vm3, %v7054_v57, 0.0  ;;  %6258 = vmatprep.subr.mxu0 %v7488_v54 }
 0x360   :  { %6248 = vmatprep.mubr.msk.f32.mxu0 %vm553_vm3, %v7056_v58  ;;  %v614_v61 = vsel %vm553_vm3, %v7056_v58, 0.0  ;;  %6263 = vmatprep.subr.mxu1 %v7535_v10 }
 0x361   :  { %618 = vadd.xlane.f32.xlu0 %v617_v60  ;;  %6249 = vmatmul.mubr.msk.f32.vlgmr.msra.gmra.mrb[10].mxu0 %vm553_vm3, %v7054_v57 }
 0x362   :  { %615 = vadd.xlane.f32.xlu1 %v614_v61  ;;  %6259 = vmatpush3.msra.mxu0 %v7488_v54 }
 0x363   :  { %v7058_v63 = vpop.eup %7057  ;;  %6268 = vmatprep.subr.mxu0 %v7500_v62  ;;  %v6897_v55 = vpop.permute.xlu1 %6896 }
 0x364   :  { %v7060_v0 = vpop.eup %7059  ;;  %6255 = vmatprep.mubr.msk.f32.mxu1 %vm553_vm3, %v7058_v63  ;;  %v620_v4 = vsel %vm553_vm3, %v7058_v63, 0.0  ;;  %v6899_v13 = vunpack.i.h.bf16 %v6897_v55  ;;  %v6898_v14 = vunpack.i.l.bf16 %v6897_v55 }
 0x365   :  { %609 = vadd.xlane.f32.xlu0 %v608_v1  ;;  %6256 = vmatmul.mubr.msk.f32.vlgmr.msra.gmra.mrb[6].mxu1 %vm553_vm3, %v7060_v0  ;;  %v623_v2 = vsel %vm553_vm3, %v7060_v0, 0.0 }
 0x366   :  { %6264 = vmatpush3.msra.mxu1 %v7535_v10  ;;  %v6640_v20 = vpack.c.bf16 %v6899_v13, %v6898_v14 }
 0x367   :  { %6273 = vmatprep.subr.mxu1 %v7544_v53 }
 0x369   :  { %624 = vadd.xlane.f32.xlu0 %v623_v2 }
 0x373   :  { %6906 = vrot.lane.b32.xlu1 %v7483_v52, %s7276_s16 }
 0x377   :  { %6911 = vrot.lane.b32.xlu1 %v7491_v59, %s7276_s16 }
 0x37f   :  { %6901 = vrot.lane.b32.xlu0 %v7479_v49, %s7276_s16 }
 0x383   :  { %1334 = vrot.lane.b32.xlu0 %v7516_v3, %s7275_s15 }
 0x387   :  { %1338 = vrot.lane.b32.xlu0 %v7516_v3, %s7277_s17 }
 0x38b   :  { %1342 = vrot.lane.b32.xlu0 %v7516_v3, %s7274_s14 }
 0x38d   :  { %v604_v8 = vpop.xlane.xlu0 %603 }
 0x38e   :  { %7061 = vrcp.f32 %v604_v8 }
 0x394   :  { %v607_v9 = vpop.xlane.xlu1 %606 }
 0x395   :  { %7063 = vrcp.f32 %v607_v9 }
 0x398   :  { %v7062_v12 = vpop.eup %7061 }
 0x39b   :  { %621 = vadd.xlane.f32.xlu1 %v620_v4 }
 0x39f   :  { %v7064_v16 = vpop.eup %7063 }
 0x3ac   :  { %1336 = vrot.lane.b32.xlu1 %v7526_v6, %s7275_s15 }
 0x3b0   :  { %1340 = vrot.lane.b32.xlu1 %v7526_v6, %s7277_s17 }
 0x3b4   :  { %1344 = vrot.lane.b32.xlu1 %v7526_v6, %s7274_s14 }
 0x3b8   :  { %6916 = vrot.lane.b32.xlu1 %v7453_v56, %s7278_s20 }
 0x3c1   :  { %v6236_v11 = vpop.f32.mrb[8].mxu0 }
 0x3c2   :  { %v704_v15 = vpop.f32.mrb[9].mxu0  ;;  %v983_v19 = vmul.f32 %v7064_v16, %v6236_v11 }
 0x3c3   :  { %v982_v18 = vmul.f32 %v7062_v12, %v704_v15 }
 0x3c5   :  { %6260 = vmatprep.mubr.msk.f32.mxu0 %vm208_vm1, %v982_v18 }
 0x3c6   :  { %6261 = vmatmul.mubr.msk.f32.vlgmr.msra.gmra.mrb[12].mxu0 %vm208_vm1, %v983_v19 }
 0x3c7   :  { %6269 = vmatpush3.msra.mxu0 %v7500_v62 }
 0x3c8   :  { %6642 = vmatprep.subr.msk.bf16.mxu0 %vm7406_vm2, %v6640_v20 }
 0x3ea   :  { %v613_v17 = vpop.xlane.xlu0 %612 }
 0x3ee   :  { %v619_v21 = vpop.xlane.xlu0 %618 }
 0x3ef   :  { %v616_v56 = vpop.xlane.xlu1 %615 }
 0x3f2   :  { %v610_v24 = vpop.xlane.xlu0 %609 }
 0x3f3   :  { %v6907_v22 = vpop.permute.xlu1 %6906  ;;  %7065 = vrcp.f32 %v610_v24 }
 0x3f4   :  { %7067 = vrcp.f32 %v613_v17  ;;  %v6909_v42 = vunpack.i.h.bf16 %v6907_v22  ;;  %v6908_v43 = vunpack.i.l.bf16 %v6907_v22 }
 0x3f5   :  { %7069 = vrcp.f32 %v616_v56 }
 0x3f6   :  { %v625_v26 = vpop.xlane.xlu0 %624  ;;  %7071 = vrcp.f32 %v619_v21  ;;  %v6652_v57 = vpack.c.bf16 %v6909_v42, %v6908_v43 }
 0x3f7   :  { %v6912_v25 = vpop.permute.xlu1 %6911 }
 0x3f8   :  { %v6914_v58 = vunpack.i.h.bf16 %v6912_v25  ;;  %v6913_v60 = vunpack.i.l.bf16 %v6912_v25 }
 0x3fa   :  { %v6902_v29 = vpop.permute.xlu0 %6901  ;;  %v6658_v55 = vpack.c.bf16 %v6914_v58, %v6913_v60 }
 0x3fb   :  { %v6904_v33 = vunpack.i.h.bf16 %v6902_v29  ;;  %v6903_v34 = vunpack.i.l.bf16 %v6902_v29 }
 0x3fd   :  { %v7066_v32 = vpop.eup %7065  ;;  %v6646_v44 = vpack.c.bf16 %v6904_v33, %v6903_v34 }
 0x3fe   :  { %v7068_v36 = vpop.eup %7067  ;;  %v1335_v61 = vpop.permute.xlu0 %1334 }
 0x3ff   :  { %v7070_v41 = vpop.eup %7069 }
 0x400   :  { %v7072_v46 = vpop.eup %7071 }
 0x402   :  { %v1339_v11 = vpop.permute.xlu0 %1338 }
 0x406   :  { %v1343_v12 = vpop.permute.xlu0 %1342 }
 0x428   :  { %v622_v27 = vpop.xlane.xlu1 %621 }
 0x429   :  { %7073 = vrcp.f32 %v622_v27 }
 0x42a   :  { %7075 = vrcp.f32 %v625_v26 }
 0x42c   :  { %v1337_v28 = vpop.permute.xlu1 %1336 }
 0x430   :  { %v1341_v30 = vpop.permute.xlu1 %1340  ;;  %v6243_v31 = vpop.f32.mrb[4].mxu1 }
 0x431   :  { %v791_v35 = vpop.f32.mrb[5].mxu1  ;;  %v985_v38 = vmul.f32 %v7068_v36, %v6243_v31 }
 0x432   :  { %v984_v37 = vmul.f32 %v7066_v32, %v791_v35 }
 0x433   :  { %v7074_v51 = vpop.eup %7073 }
 0x434   :  { %v1345_v39 = vpop.permute.xlu1 %1344  ;;  %v6250_v40 = vpop.f32.mrb[10].mxu0  ;;  %6265 = vmatprep.mubr.msk.f32.mxu1 %vm208_vm1, %v984_v37 }
 0x435   :  { %v878_v45 = vpop.f32.mrb[11].mxu0  ;;  %6266 = vmatmul.mubr.msk.f32.vlgmr.msra.gmra.mrb[8].mxu1 %vm208_vm1, %v985_v38  ;;  %v987_v48 = vmul.f32 %v7072_v46, %v6250_v40  ;;  %v7076_v0 = vpop.eup %7075 }
 0x436   :  { %v986_v47 = vmul.f32 %v7070_v41, %v878_v45  ;;  %6274 = vmatpush3.msra.mxu1 %v7544_v53 }
 0x437   :  { %6648 = vmatprep.subr.msk.bf16.mxu1 %vm7406_vm2, %v6646_v44 }
 0x438   :  { %v6257_v50 = vpop.f32.mrb[6].mxu1  ;;  %6270 = vmatprep.mubr.msk.f32.mxu0 %vm208_vm1, %v986_v47  ;;  %v6917_v1 = vpop.permute.xlu1 %6916 }
 0x439   :  { %v965_v63 = vpop.f32.mrb[7].mxu1  ;;  %6271 = vmatmul.mubr.msk.f32.vlgmr.msra.gmra.mrb[14].mxu0 %vm208_vm1, %v987_v48  ;;  %v989_v4 = vmul.f32 %v7076_v0, %v6257_v50  ;;  %v6919_v8 = vunpack.i.h.bf16 %v6917_v1  ;;  %v6918_v9 = vunpack.i.l.bf16 %v6917_v1  ;;  %v7609_v50 = vld [vmem:[%s8248_s4] ss:$0 sm:$0xff] }
 0x43a   :  { %v988_v2 = vmul.f32 %v7074_v51, %v965_v63  ;;  %6645 = vmatpush3.bf16.xpose.msk.msra.mxu0 %vm7406_vm2, %v6640_v20  ;;  %6282 = vmatprep.mubr.msk.f32.mxu0 %vm208_vm1, %v7516_v3 }
 0x43b   :  { %6654 = vmatprep.subr.msk.bf16.mxu0 %vm7406_vm2, %v6652_v57  ;;  %v6664_v3 = vpack.c.bf16 %v6919_v8, %v6918_v9 }
 0x43c   :  { %6275 = vmatprep.mubr.msk.f32.mxu1 %vm208_vm1, %v988_v2 }
 0x43d   :  { %6276 = vmatmul.mubr.msk.f32.vlgmr.msra.gmra.mrb[10].mxu1 %vm208_vm1, %v989_v4 }
 0x43e   :  { %6651 = vmatpush3.bf16.xpose.msk.msra.mxu1 %vm7406_vm2, %v6646_v44  ;;  %6289 = vmatprep.mubr.msk.f32.mxu1 %vm208_vm1, %v1335_v61 }
 0x43f   :  { %6660 = vmatprep.subr.msk.bf16.mxu1 %vm7406_vm2, %v6658_v55 }
 0x441   :  { %6283 = vmatmul.mubr.msk.f32.vlgmr.msra.gmra.mrb[16].mxu0 %vm208_vm1, %v7526_v6 }
 0x442   :  { %6657 = vmatpush3.bf16.xpose.msk.msra.mxu0 %vm7406_vm2, %v6652_v57  ;;  %6296 = vmatprep.mubr.msk.f32.mxu0 %vm208_vm1, %v1339_v11 }
 0x443   :  { %6665 = vmatprep.subr.bf16.mxu0 %v6664_v3 }
 0x445   :  { %6290 = vmatmul.mubr.msk.f32.vlgmr.msra.gmra.mrb[12].mxu1 %vm208_vm1, %v1337_v28 }
 0x446   :  { %6663 = vmatpush3.bf16.xpose.msk.msra.mxu1 %vm7406_vm2, %v6658_v55  ;;  %6303 = vmatprep.mubr.msk.f32.mxu1 %vm208_vm1, %v1343_v12 }
 0x449   :  { %6297 = vmatmul.mubr.msk.f32.vlgmr.msra.gmra.mrb[18].mxu0 %vm208_vm1, %v1341_v30 }
 0x44a   :  { %6667 = vmatpush3.bf16.msra.mxu0 %v6664_v3 }
 0x44d   :  { %6304 = vmatmul.mubr.msk.f32.vlgmr.msra.gmra.mrb[14].mxu1 %vm208_vm1, %v1345_v39 }
 0x499   :  { %v6262_v6 = vpop.f32.mrb[12].mxu0 }
 0x49a   :  { %v1066_v13 = vpop.f32.mrb[13].mxu0  ;;  %v1325_v15 = vsel %vm74_vm0, %v6262_v6, 0.0 }
 0x49b   :  { %v1318_v19 = vsel %vm74_vm0, %v1066_v13, 0.0 }
 0x508   :  { %v6267_v14 = vpop.f32.mrb[8].mxu1 }
 0x509   :  { %v1326_v16 = vsel %vm74_vm0, %v6267_v14, 0.0  ;;  %v1147_v18 = vpop.f32.mrb[9].mxu1 }
 0x50a   :  { %v1327_v20 = vadd.f32 %v1326_v16, %v1325_v15  ;;  %v1319_v17 = vsel %vm74_vm0, %v1147_v18, 0.0 }
 0x50b   :  { %v1320_v56 = vadd.f32 %v1319_v17, %v1318_v19 }
 0x50c   :  { %v6272_v21 = vpop.f32.mrb[14].mxu0 }
 0x50d   :  { %v1328_v22 = vsel %vm74_vm0, %v6272_v21, 0.0  ;;  %v1228_v24 = vpop.f32.mrb[15].mxu0 }
 0x50e   :  { %v1329_v25 = vadd.f32 %v1328_v22, %v1327_v20  ;;  %v1321_v26 = vsel %vm74_vm0, %v1228_v24, 0.0 }
 0x50f   :  { %v1322_v27 = vadd.f32 %v1321_v26, %v1320_v56 }
 0x510   :  { %v6277_v28 = vpop.f32.mrb[10].mxu1 }
 0x511   :  { %v1330_v29 = vsel %vm74_vm0, %v6277_v28, 0.0  ;;  %v1309_v30 = vpop.f32.mrb[11].mxu1 }
 0x512   :  { %v1331_v31 = vadd.f32 %v1330_v29, %v1329_v25  ;;  %v1323_v32 = vsel %vm74_vm0, %v1309_v30, 0.0 }
 0x513   :  { %v1324_v33 = vadd.f32 %v1323_v32, %v1322_v27 }
 0x514   :  { %v6284_v34 = vpop.f32.mrb[16].mxu0 }
 0x515   :  { %v1438_v35 = vpop.f32.mrb[17].mxu0  ;;  %v1711_v36 = vsel %vm553_vm3, %v6284_v34, -inf  ;;  %v2493_v51 = vadd.f32 %v7609_v50, %v1324_v33 }
 0x516   :  { %1712 = vmax.xlane.f32.xlu1 %v1711_v36  ;;  %v1708_v37 = vsel %vm553_vm3, %v1438_v35, -inf }
 0x517   :  { %1709 = vmax.xlane.f32.xlu0 %v1708_v37  ;;  %v7615_v58 = vadd.f32 %v2493_v51, %v7377_v5 }
 0x518   :  { %v6291_v38 = vpop.f32.mrb[12].mxu1 }
 0x519   :  { %v1525_v39 = vpop.f32.mrb[13].mxu1  ;;  %v1717_v40 = vsel %vm553_vm3, %v6291_v38, -inf }
 0x51a   :  { %v1714_v47 = vsel %vm553_vm3, %v1525_v39, -inf }
 0x51b   :  { %1718 = vmax.xlane.f32.xlu0 %v1717_v40 }
 0x51c   :  { %v6298_v41 = vpop.f32.mrb[18].mxu0 }
 0x51d   :  { %v1612_v42 = vpop.f32.mrb[19].mxu0  ;;  %v1723_v43 = vsel %vm553_vm3, %v6298_v41, -inf }
 0x51e   :  { %v1720_v44 = vsel %vm553_vm3, %v1612_v42, -inf }
 0x51f   :  { %1721 = vmax.xlane.f32.xlu1 %v1720_v44  ;;  %1724 = vmax.xlane.f32.xlu0 %v1723_v43 }
 0x520   :  { %v6305_v45 = vpop.f32.mrb[14].mxu1 }
 0x521   :  { %v7598_v46 = vpop.f32.mrb[15].mxu1  ;;  %v1729_v48 = vsel %vm553_vm3, %v6305_v45, -inf }
 0x522   :  { %v1726_v57 = vsel %vm553_vm3, %v7598_v46, -inf }
 0x523   :  { %1715 = vmax.xlane.f32.xlu0 %v1714_v47 }
 0x527   :  { %1730 = vmax.xlane.f32.xlu0 %v1729_v48 }
 0x530   :  { %6926 = vrot.lane.b32.xlu1 %v7483_v52, %s7278_s20  ;;  %v2503_v52 = vsel %vm74_vm0, %v7615_v58, 0.0 }
 0x53d   :  { %6921 = vrot.lane.b32.xlu0 %v7479_v49, %s7278_s20  ;;  %v2494_v49 = vadd.f32 %v7609_v50, %v1331_v31 }
 0x53f   :  { %v7623_v60 = vadd.f32 %v2494_v49, %v7381_v7 }
 0x541   :  { %v2506_v61 = vsel %vm74_vm0, %v7623_v60, 0.0 }
 0x554   :  { %1727 = vmax.xlane.f32.xlu1 %v1726_v57 }
 0x55c   :  { %2504 = vadd.xlane.f32.xlu0 %v2503_v52 }
 0x565   :  { %6931 = vrot.lane.b32.xlu1 %v7491_v59, %s7278_s20 }
 0x589   :  { %2507 = vadd.xlane.f32.xlu1 %v2506_v61 }
 0x5a3   :  { %v1713_v63 = vpop.xlane.xlu1 %1712 }
 0x5a4   :  { %v1733_v0 = vsub.f32 %v6284_v34, %v1713_v63  ;;  %v1710_v5 = vpop.xlane.xlu0 %1709 }
 0x5a5   :  { %v1732_v1 = vsub.f32 %v1438_v35, %v1710_v5 }
 0x5a6   :  { %v1742_v2 = vmul.f32 1.442695, %v1733_v0 }
 0x5a7   :  { %v1740_v4 = vmul.f32 1.442695, %v1732_v1 }
 0x5a8   :  { %7077 = vpow2.f32 %v1742_v2  ;;  %v1719_v55 = vpop.xlane.xlu0 %1718 }
 0x5a9   :  { %7079 = vpow2.f32 %v1740_v4  ;;  %v1735_v8 = vsub.f32 %v6291_v38, %v1719_v55 }
 0x5ab   :  { %v1746_v59 = vmul.f32 1.442695, %v1735_v8 }
 0x5ac   :  { %v1722_v9 = vpop.xlane.xlu1 %1721  ;;  %v1725_v11 = vpop.xlane.xlu0 %1724 }
 0x5ad   :  { %v1736_v3 = vsub.f32 %v1612_v42, %v1722_v9  ;;  %v1737_v7 = vsub.f32 %v6298_v41, %v1725_v11  ;;  %7081 = vpow2.f32 %v1746_v59 }
 0x5af   :  { %v1748_v12 = vmul.f32 1.442695, %v1736_v3  ;;  %v1750_v6 = vmul.f32 1.442695, %v1737_v7 }
 0x5b0   :  { %v6927_v13 = vpop.permute.xlu1 %6926  ;;  %v1716_v14 = vpop.xlane.xlu0 %1715 }
 0x5b1   :  { %7083 = vpow2.f32 %v1748_v12  ;;  %v6929_v15 = vunpack.i.h.bf16 %v6927_v13  ;;  %v6928_v16 = vunpack.i.l.bf16 %v6927_v13  ;;  %v1734_v18 = vsub.f32 %v1525_v39, %v1716_v14  ;;  %v2576_v12 = vld [vmem:[%s8251_s7] sm:$0xff] }
 0x5b2   :  { %v7078_v19 = vpop.eup %7077  ;;  %7085 = vpow2.f32 %v1750_v6  ;;  %v2577_v6 = vld [vmem:[%s8251_s7 + $0x8] sm:$0xff] }
 0x5b3   :  { %v7080_v20 = vpop.eup %7079  ;;  %v1744_v17 = vmul.f32 1.442695, %v1734_v18  ;;  %v1759_v56 = vsel %vm553_vm3, %v7078_v19, 0.0  ;;  %v6672_v21 = vpack.c.bf16 %v6929_v15, %v6928_v16 }
 0x5b4   :  { %6310 = vmatprep.mubr.msk.f32.mxu0 %vm553_vm3, %v7080_v20  ;;  %v1731_v22 = vpop.xlane.xlu0 %1730  ;;  %1760 = vadd.xlane.f32.xlu0 %v1759_v56  ;;  %v1756_v26 = vsel %vm553_vm3, %v7080_v20, 0.0  ;;  %v2578_v56 = vld [vmem:[%s8251_s7 + $0x10] sm:$0xff] }
 0x5b5   :  { %7087 = vpow2.f32 %v1744_v17  ;;  %v1739_v24 = vsub.f32 %v6305_v45, %v1731_v22  ;;  %6311 = vmatmul.mubr.msk.f32.vlgmr.msra.gmra.mrb[20].mxu0 %vm553_vm3, %v7078_v19  ;;  %6673 = vmatprep.subr.bf16.mxu0 %v6672_v21  ;;  %v6680_v19 = vpack.c.bf16 %v2577_v6, %v2576_v12 }
 0x5b6   :  { %6675 = vmatpush3.bf16.msra.mxu0 %v6672_v21  ;;  %v2579_v21 = vld [vmem:[%s8251_s7 + $0x18] sm:$0xff] }
 0x5b7   :  { %v1754_v25 = vmul.f32 1.442695, %v1739_v24  ;;  %6334 = vmatprep.subr.mxu0 %v7488_v54  ;;  %v7082_v27 = vpop.eup %7081 }
 0x5b8   :  { %v6922_v28 = vpop.permute.xlu0 %6921  ;;  %1757 = vadd.xlane.f32.xlu0 %v1756_v26  ;;  %v1765_v32 = vsel %vm553_vm3, %v7082_v27, 0.0 }
 0x5b9   :  { %7089 = vpow2.f32 %v1754_v25  ;;  %v6924_v29 = vunpack.i.h.bf16 %v6922_v28  ;;  %v6923_v30 = vunpack.i.l.bf16 %v6922_v28 }
 0x5bb   :  { %v7084_v31 = vpop.eup %7083  ;;  %v6668_v33 = vpack.c.bf16 %v6924_v29, %v6923_v30  ;;  %v6684_v29 = vpack.c.bf16 %v2579_v21, %v2578_v56 }
 0x5bc   :  { %v7086_v34 = vpop.eup %7085  ;;  %6324 = vmatprep.mubr.msk.f32.mxu0 %vm553_vm3, %v7084_v31  ;;  %1766 = vadd.xlane.f32.xlu0 %v1765_v32  ;;  %v1768_v39 = vsel %vm553_vm3, %v7084_v31, 0.0  ;;  %v7682_v31 = vld [vmem:[%s8250_s6] ss:$0 sm:$0xff] }
 0x5bd   :  { %6669 = vmatprep.subr.bf16.mxu1 %v6668_v33  ;;  %6325 = vmatmul.mubr.msk.f32.vlgmr.msra.gmra.mrb[22].mxu0 %vm553_vm3, %v7086_v34  ;;  %v1771_v36 = vsel %vm553_vm3, %v7086_v34, 0.0 }
 0x5be   :  { %6671 = vmatpush3.bf16.msra.mxu1 %v6668_v33  ;;  %6335 = vmatpush3.msra.mxu0 %v7488_v54 }
 0x5bf   :  { %v7088_v35 = vpop.eup %7087  ;;  %6344 = vmatprep.subr.mxu0 %v7500_v62 }
 0x5c0   :  { %6317 = vmatprep.mubr.msk.f32.mxu1 %vm553_vm3, %v7088_v35  ;;  %1772 = vadd.xlane.f32.xlu0 %v1771_v36  ;;  %v1762_v37 = vsel %vm553_vm3, %v7088_v35, 0.0 }
 0x5c1   :  { %6318 = vmatmul.mubr.msk.f32.vlgmr.msra.gmra.mrb[16].mxu1 %vm553_vm3, %v7082_v27  ;;  %1763 = vadd.xlane.f32.xlu1 %v1762_v37  ;;  %v7676_v27 = vld [vmem:[%s8249_s5] ss:$0 sm:$0xff] }
 0x5c3   :  { %v7090_v38 = vpop.eup %7089 }
 0x5c4   :  { %v1777_v40 = vsel %vm553_vm3, %v7090_v38, 0.0 }
 0x5c5   :  { %1769 = vadd.xlane.f32.xlu1 %v1768_v39  ;;  %1778 = vadd.xlane.f32.xlu0 %v1777_v40 }
 0x5e1   :  { %v1728_v54 = vpop.xlane.xlu1 %1727 }
 0x5e2   :  { %v1738_v41 = vsub.f32 %v7598_v46, %v1728_v54 }
 0x5e4   :  { %v1752_v42 = vmul.f32 1.442695, %v1738_v41 }
 0x5e5   :  { %v6932_v43 = vpop.permute.xlu1 %6931 }
 0x5e6   :  { %7091 = vpow2.f32 %v1752_v42  ;;  %v6934_v44 = vunpack.i.h.bf16 %v6932_v43  ;;  %v6933_v45 = vunpack.i.l.bf16 %v6932_v43 }
 0x5e8   :  { %v6676_v47 = vpack.c.bf16 %v6934_v44, %v6933_v45 }
 0x5e9   :  { %v2505_v48 = vpop.xlane.xlu0 %2504 }
 0x5ea   :  { %v2516_v51 = vmul.f32 0.03125, %v2505_v48  ;;  %6677 = vmatprep.subr.bf16.mxu1 %v6676_v47 }
 0x5eb   :  { %6679 = vmatpush3.bf16.msra.mxu1 %v6676_v47 }
 0x5ec   :  { %6339 = vmatprep.subr.mxu1 %v7535_v10  ;;  %v2520_v57 = vsub.f32 %v7615_v58, %v2516_v51 }
 0x5ee   :  { %v2524_v46 = vmul.f32 %v2520_v57, %v2520_v57 }
 0x5f0   :  { %v7092_v52 = vpop.eup %7091  ;;  %v2528_v61 = vsel %vm74_vm0, %v2524_v46, 0.0  ;;  %v2706_v46 = vld [vmem:[%s8253_s9 + $0x8] sm:$0xff] }
 0x5f1   :  { %6331 = vmatprep.mubr.msk.f32.mxu1 %vm553_vm3, %v7092_v52  ;;  %v1774_v49 = vsel %vm553_vm3, %v7092_v52, 0.0 }
 0x5f2   :  { %1775 = vadd.xlane.f32.xlu1 %v1774_v49  ;;  %6332 = vmatmul.mubr.msk.f32.vlgmr.msra.gmra.mrb[18].mxu1 %vm553_vm3, %v7090_v38  ;;  %v2705_v49 = vld [vmem:[%s8253_s9] sm:$0xff] }
 0x5f3   :  { %6340 = vmatpush3.msra.mxu1 %v7535_v10 }
 0x5f4   :  { %6349 = vmatprep.subr.mxu1 %v7544_v53 }
 0x5f6   :  { %2529 = vadd.xlane.f32.xlu1 %v2528_v61  ;;  %v6688_v61 = vpack.c.bf16 %v2706_v46, %v2705_v49 }
 0x616   :  { %v2508_v63 = vpop.xlane.xlu1 %2507 }
 0x617   :  { %v2517_v0 = vmul.f32 0.03125, %v2508_v63  ;;  %v2707_v63 = vld [vmem:[%s8253_s9 + $0x10] sm:$0xff] }
 0x619   :  { %v7653_v58 = vsub.f32 %v7623_v60, %v2517_v0  ;;  %v2708_v0 = vld [vmem:[%s8253_s9 + $0x18] sm:$0xff] }
 0x61b   :  { %v2525_v5 = vmul.f32 %v7653_v58, %v7653_v58 }
 0x61d   :  { %v2531_v1 = vsel %vm74_vm0, %v2525_v5, 0.0  ;;  %v2709_v5 = vld [vmem:[%s8253_s9 + $0x20] sm:$0xff] }
 0x61e   :  { %2532 = vadd.xlane.f32.xlu0 %v2531_v1  ;;  %v2710_v1 = vld [vmem:[%s8253_s9 + $0x28] sm:$0xff] }
 0x641   :  { %v1761_v2 = vpop.xlane.xlu0 %1760 }
 0x645   :  { %v1758_v55 = vpop.xlane.xlu0 %1757 }
 0x646   :  { %7093 = vrcp.f32 %v1758_v55  ;;  %v2712_v55 = vld [vmem:[%s8253_s9 + $0x38] sm:$0xff] }
 0x647   :  { %7095 = vrcp.f32 %v1761_v2  ;;  %v6696_v2 = vpack.c.bf16 %v2710_v1, %v2709_v5 }
 0x649   :  { %v1767_v8 = vpop.xlane.xlu0 %1766 }
 0x64d   :  { %v1773_v9 = vpop.xlane.xlu0 %1772 }
 0x64e   :  { %v1764_v4 = vpop.xlane.xlu1 %1763  ;;  %7097 = vrcp.f32 %v1773_v9 }
 0x650   :  { %v7094_v13 = vpop.eup %7093 }
 0x651   :  { %v7096_v15 = vpop.eup %7095 }
 0x652   :  { %v1770_v10 = vpop.xlane.xlu1 %1769  ;;  %v1779_v39 = vpop.xlane.xlu0 %1778 }
 0x653   :  { %7099 = vrcp.f32 %v1770_v10 }
 0x658   :  { %v7098_v20 = vpop.eup %7097 }
 0x65d   :  { %v7100_v22 = vpop.eup %7099 }
 0x67f   :  { %v1776_v59 = vpop.xlane.xlu1 %1775 }
 0x683   :  { %v2530_v11 = vpop.xlane.xlu1 %2529 }
 0x684   :  { %v2540_v3 = vmul.f32 0.03125, %v2530_v11 }
 0x686   :  { %v2544_v60 = vadd.f32 1e-12, %v2540_v3 }
 0x688   :  { %7101 = vrsqrt.f32 %v2544_v60  ;;  %v6312_v7 = vpop.f32.mrb[20].mxu0 }
 0x689   :  { %v1858_v14 = vpop.f32.mrb[21].mxu0  ;;  %7103 = vrcp.f32 %v1764_v4  ;;  %v2137_v18 = vmul.f32 %v7096_v15, %v6312_v7  ;;  %v2711_v4 = vld [vmem:[%s8253_s9 + $0x30] sm:$0xff] }
 0x68a   :  { %v2136_v16 = vmul.f32 %v7094_v13, %v1858_v14  ;;  %7105 = vrcp.f32 %v1767_v8  ;;  %v6700_v10 = vpack.c.bf16 %v2712_v55, %v2711_v4 }
 0x68c   :  { %6336 = vmatprep.mubr.msk.f32.mxu0 %vm208_vm1, %v2136_v16 }
 0x68d   :  { %6337 = vmatmul.mubr.msk.f32.vlgmr.msra.gmra.mrb[24].mxu0 %vm208_vm1, %v2137_v18 }
 0x68e   :  { %6345 = vmatpush3.msra.mxu0 %v7500_v62 }
 0x68f   :  { %6681 = vmatprep.subr.bf16.mxu0 %v6680_v19 }
 0x690   :  { %v6326_v17 = vpop.f32.mrb[22].mxu0 }
 0x691   :  { %v2032_v24 = vpop.f32.mrb[23].mxu0  ;;  %v2141_v62 = vmul.f32 %v7098_v20, %v6326_v17  ;;  %v7736_v17 = vld [vmem:[%s8252_s8] ss:$0 sm:$0xff] }
 0x692   :  { %v7102_v25 = vpop.eup %7101  ;;  %v2140_v26 = vmul.f32 %v7100_v22, %v2032_v24 }
 0x693   :  { %v2552_v28 = vmul.f32 %v7102_v25, %v2520_v57  ;;  %v7104_v32 = vpop.eup %7103 }
 0x694   :  { %v6319_v30 = vpop.f32.mrb[16].mxu1  ;;  %6346 = vmatprep.mubr.msk.f32.mxu0 %vm208_vm1, %v2140_v26  ;;  %v7106_v35 = vpop.eup %7105 }
 0x695   :  { %v1945_v33 = vpop.f32.mrb[17].mxu1  ;;  %6347 = vmatmul.mubr.msk.f32.vlgmr.msra.gmra.mrb[26].mxu0 %vm208_vm1, %v2141_v62  ;;  %v2562_v34 = vmul.f32 %v7676_v27, %v2552_v28  ;;  %v2139_v37 = vmul.f32 %v7106_v35, %v6319_v30 }
 0x696   :  { %v2138_v36 = vmul.f32 %v7104_v32, %v1945_v33  ;;  %6683 = vmatpush3.bf16.msra.mxu0 %v6680_v19 }
 0x697   :  { %v7687_v38 = vadd.f32 %v7682_v31, %v2562_v34  ;;  %6685 = vmatprep.subr.bf16.mxu0 %v6684_v29 }
 0x698   :  { %6341 = vmatprep.mubr.msk.f32.mxu1 %vm208_vm1, %v2138_v36 }
 0x699   :  { %6342 = vmatmul.mubr.msk.f32.vlgmr.msra.gmra.mrb[20].mxu1 %vm208_vm1, %v2139_v37  ;;  %6362 = vmatprep.mubr.msk.f32.mxu0 %vm74_vm0, %v7687_v38  ;;  %v7221_v37 = vld [vmem:[#allocation2 + $0x18] sm:$0xff] }
 0x69a   :  { %6687 = vmatpush3.bf16.msra.mxu0 %v6684_v29  ;;  %6350 = vmatpush3.msra.mxu1 %v7544_v53 }
 0x69b   :  { %6689 = vmatprep.subr.bf16.mxu1 %v6688_v61 }
 0x6ab   :  { %v2533_v40 = vpop.xlane.xlu0 %2532 }
 0x6ac   :  { %v2541_v54 = vmul.f32 0.03125, %v2533_v40 }
 0x6ae   :  { %v2545_v41 = vadd.f32 1e-12, %v2541_v54 }
 0x6b0   :  { %7107 = vrsqrt.f32 %v2545_v41  ;;  %v7222_v41 = vld [vmem:[#allocation2 + $0x10] sm:$0xff] }
 0x6b1   :  { %7109 = vrcp.f32 %v1776_v59 }
 0x6b2   :  { %7111 = vrcp.f32 %v1779_v39 }
 0x6ba   :  { %v7108_v42 = vpop.eup %7107 }
 0x6bb   :  { %v2553_v43 = vmul.f32 %v7108_v42, %v7653_v58  ;;  %v7110_v53 = vpop.eup %7109  ;;  %v6692_v58 = vpack.c.bf16 %v2708_v0, %v2707_v63 }
 0x6bc   :  { %v7112_v51 = vpop.eup %7111 }
 0x6bd   :  { %v2563_v44 = vmul.f32 %v7676_v27, %v2553_v43 }
 0x6bf   :  { %v7697_v45 = vadd.f32 %v7682_v31, %v2563_v44 }
 0x6c1   :  { %6363 = vmatmul.mubr.msk.f32.vlgmr.msra.gmra.mrb[28].mxu0 %vm74_vm0, %v7697_v45 }
 0x6c5   :  { %v6333_v47 = vpop.f32.mrb[18].mxu1 }
 0x6c6   :  { %v2119_v48 = vpop.f32.mrb[19].mxu1  ;;  %v2143_v52 = vmul.f32 %v7112_v51, %v6333_v47 }
 0x6c7   :  { %v2142_v57 = vmul.f32 %v7110_v53, %v2119_v48 }
 0x6c9   :  { %6351 = vmatprep.mubr.msk.f32.mxu1 %vm208_vm1, %v2142_v57 }
 0x6ca   :  { %6352 = vmatmul.mubr.msk.f32.vlgmr.msra.gmra.mrb[22].mxu1 %vm208_vm1, %v2143_v52 }
 0x6cb   :  { %6691 = vmatpush3.bf16.msra.mxu1 %v6688_v61 }
 0x6cc   :  { %6693 = vmatprep.subr.bf16.mxu1 %v6692_v58 }
 0x6cf   :  { %6695 = vmatpush3.bf16.msra.mxu1 %v6692_v58 }
 0x6d0   :  { %6697 = vmatprep.subr.bf16.mxu1 %v6696_v2 }
 0x6d3   :  { %6699 = vmatpush3.bf16.msra.mxu1 %v6696_v2  ;;  %v7753_v2 = vld [vmem:[%s8254_s10] ss:$0 sm:$0xff] }
 0x6d4   :  { %6701 = vmatprep.subr.bf16.mxu1 %v6700_v10 }
 0x6d7   :  { %6703 = vmatpush3.bf16.msra.mxu1 %v6700_v10 }
 0x760   :  { %v6338_v8 = vpop.f32.mrb[24].mxu0 }
 0x761   :  { %v2220_v59 = vpop.f32.mrb[25].mxu0  ;;  %v2479_v60 = vsel %vm74_vm0, %v6338_v8, 0.0 }
 0x762   :  { %v2472_v6 = vsel %vm74_vm0, %v2220_v59, 0.0 }
 0x768   :  { %v6348_v9 = vpop.f32.mrb[26].mxu0 }
 0x769   :  { %v2382_v11 = vpop.f32.mrb[27].mxu0  ;;  %v2482_v15 = vsel %vm74_vm0, %v6348_v9, 0.0 }
 0x76a   :  { %v2475_v18 = vsel %vm74_vm0, %v2382_v11, 0.0 }
 0x76c   :  { %v6343_v3 = vpop.f32.mrb[20].mxu1 }
 0x76d   :  { %v2480_v7 = vsel %vm74_vm0, %v6343_v3, 0.0  ;;  %v2301_v12 = vpop.f32.mrb[21].mxu1 }
 0x76e   :  { %v2481_v13 = vadd.f32 %v2480_v7, %v2479_v60  ;;  %v2473_v14 = vsel %vm74_vm0, %v2301_v12, 0.0 }
 0x76f   :  { %v2474_v16 = vadd.f32 %v2473_v14, %v2472_v6 }
 0x770   :  { %v2483_v19 = vadd.f32 %v2482_v15, %v2481_v13 }
 0x771   :  { %v2476_v20 = vadd.f32 %v2475_v18, %v2474_v16 }
 0x794   :  { %v6364_v56 = vpop.f32.mrb[28].mxu0 }
 0x795   :  { %v2671_v21 = vadd.f32 %v6364_v56, %v7736_v17  ;;  %v2665_v22 = vpop.f32.mrb[29].mxu0 }
 0x796   :  { %v2666_v24 = vadd.f32 %v7736_v17, %v2665_v22 }
 0x797   :  { %v2690_v25 = vmul.f32 0.70710677, %v2671_v21  ;;  %v2685_v53 = vmul.f32 0.5, %v2671_v21 }
 0x798   :  { %v2689_v26 = vmul.f32 0.70710677, %v2666_v24  ;;  %v2684_v43 = vmul.f32 0.5, %v2666_v24 }
 0x799   :  { %7113 = verf.f32 %v2690_v25 }
 0x79a   :  { %7115 = verf.f32 %v2689_v26 }
 0x79d   :  { %v6353_v62 = vpop.f32.mrb[22].mxu1 }
 0x79e   :  { %v2484_v28 = vsel %vm74_vm0, %v6353_v62, 0.0  ;;  %v2463_v29 = vpop.f32.mrb[23].mxu1 }
 0x79f   :  { %v2485_v30 = vadd.f32 %v2484_v28, %v2483_v19  ;;  %v2477_v32 = vsel %vm74_vm0, %v2463_v29, 0.0 }
 0x7a0   :  { %v2478_v33 = vadd.f32 %v2477_v32, %v2476_v20  ;;  %v5841_v32 = vld [vmem:[%s8245_s1 + $0x28] sm:$0xff] }
 0x7a1   :  { %v2496_v34 = vadd.f32 %v7609_v50, %v2485_v30  ;;  %v5840_v30 = vld [vmem:[%s8245_s1 + $0x20] sm:$0xff] }
 0x7a2   :  { %v2495_v35 = vadd.f32 %v7609_v50, %v2478_v33  ;;  %v6704_v33 = vpack.c.bf16 %v5841_v32, %v5840_v30 }
 0x7a3   :  { %v7114_v36 = vpop.eup %7113  ;;  %v2500_v39 = vadd.f32 %v7221_v37, %v2496_v34  ;;  %v5842_v34 = vld [vmem:[%s8245_s1 + $0x30] sm:$0xff] }
 0x7a4   :  { %v7116_v40 = vpop.eup %7115  ;;  %v2698_v54 = vadd.f32 1.0, %v7114_v36  ;;  %v2499_v42 = vadd.f32 %v7222_v41, %v2495_v35  ;;  %6705 = vmatprep.subr.bf16.mxu0 %v6704_v33  ;;  %v5843_v35 = vld [vmem:[%s8245_s1 + $0x38] sm:$0xff] }
 0x7a5   :  { %v2697_v44 = vadd.f32 1.0, %v7116_v40  ;;  %v2512_v47 = vsel %vm74_vm0, %v2500_v39, 0.0  ;;  %6707 = vmatpush3.bf16.msra.mxu0 %v6704_v33  ;;  %v6708_v36 = vpack.c.bf16 %v5843_v35, %v5842_v34 }
 0x7a6   :  { %2513 = vadd.xlane.f32.xlu0 %v2512_v47  ;;  %v2509_v48 = vsel %vm74_vm0, %v2499_v42, 0.0  ;;  %v2702_v57 = vmul.f32 %v2698_v54, %v2685_v53 }
 0x7a7   :  { %v2701_v51 = vmul.f32 %v2697_v44, %v2684_v43  ;;  %2510 = vadd.xlane.f32.xlu1 %v2509_v48  ;;  %6709 = vmatprep.subr.bf16.mxu0 %v6708_v36  ;;  %v7791_v48 = vld [vmem:[%s8255_s11] ss:$0 sm:$0xff] }
 0x7a9   :  { %6384 = vmatprep.mubr.msk.f32.mxu1 %vm2720_vm4, %v2701_v51  ;;  %6711 = vmatpush3.bf16.msra.mxu0 %v6708_v36 }
 0x7aa   :  { %6385 = vmatmul.mubr.msk.f32.vlgmr.msra.gmra.mrb[24].mxu1 %vm2720_vm4, %v2702_v57 }
 0x833   :  { %v2514_v50 = vpop.xlane.xlu0 %2513 }
 0x834   :  { %v2519_v52 = vmul.f32 0.03125, %v2514_v50  ;;  %v2511_v49 = vpop.xlane.xlu1 %2510 }
 0x835   :  { %v2518_v46 = vmul.f32 0.03125, %v2511_v49 }
 0x836   :  { %v2523_v61 = vsub.f32 %v2500_v39, %v2519_v52 }
 0x837   :  { %v2522_v63 = vsub.f32 %v2499_v42, %v2518_v46 }
 0x838   :  { %v2527_v0 = vmul.f32 %v2523_v61, %v2523_v61 }
 0x839   :  { %v2526_v58 = vmul.f32 %v2522_v63, %v2522_v63 }
 0x83a   :  { %v2537_v5 = vsel %vm74_vm0, %v2527_v0, 0.0 }
 0x83b   :  { %2538 = vadd.xlane.f32.xlu0 %v2537_v5  ;;  %v2534_v1 = vsel %vm74_vm0, %v2526_v58, 0.0 }
 0x83c   :  { %2535 = vadd.xlane.f32.xlu1 %v2534_v1 }
 0x87d   :  { %v6386_v4 = vpop.f32.mrb[24].mxu1 }
 0x87e   :  { %v2805_v55 = vadd.f32 %v6386_v4, %v7753_v2  ;;  %v2799_v10 = vpop.f32.mrb[25].mxu1 }
 0x87f   :  { %v2800_v8 = vadd.f32 %v7753_v2, %v2799_v10 }
 0x880   :  { %v2819_v59 = vadd.f32 %v2805_v55, %v7697_v45 }
 0x881   :  { %v2818_v9 = vadd.f32 %v2800_v8, %v7687_v38 }
 0x882   :  { %v2827_v11 = vsel %vm74_vm0, %v2819_v59, 0.0 }
 0x883   :  { %2828 = vadd.xlane.f32.xlu0 %v2827_v11  ;;  %v2824_v3 = vsel %vm74_vm0, %v2818_v9, 0.0  ;;  %v7816_v11 = vld [vmem:[%s8246_s2 + $0x1] ss:$0 sm:$0xff] }
 0x884   :  { %2825 = vadd.xlane.f32.xlu1 %v2824_v3 }
 0x8c8   :  { %v2539_v60 = vpop.xlane.xlu0 %2538 }
 0x8c9   :  { %v2543_v7 = vmul.f32 0.03125, %v2539_v60  ;;  %v2536_v12 = vpop.xlane.xlu1 %2535 }
 0x8ca   :  { %v2542_v6 = vmul.f32 0.03125, %v2536_v12 }
 0x8cb   :  { %v2547_v13 = vadd.f32 1e-12, %v2543_v7 }
 0x8cc   :  { %v2546_v14 = vadd.f32 1e-12, %v2542_v6 }
 0x8cd   :  { %7117 = vrsqrt.f32 %v2547_v13 }
 0x8ce   :  { %7119 = vrsqrt.f32 %v2546_v14 }
 0x8d7   :  { %v7118_v15 = vpop.eup %7117 }
 0x8d8   :  { %v7120_v16 = vpop.eup %7119  ;;  %v2555_v18 = vmul.f32 %v7118_v15, %v2523_v61  ;;  %v7797_v61 = vld [vmem:[%s8256_s12] ss:$0 sm:$0xff] }
 0x8d9   :  { %v2554_v45 = vmul.f32 %v7120_v16, %v2522_v63 }
 0x8da   :  { %v2565_v38 = vmul.f32 %v7676_v27, %v2555_v18 }
 0x8db   :  { %v2564_v19 = vmul.f32 %v7676_v27, %v2554_v45 }
 0x8dc   :  { %v7767_v56 = vadd.f32 %v7682_v31, %v2565_v38 }
 0x8dd   :  { %v7764_v20 = vadd.f32 %v7682_v31, %v2564_v19 }
 0x8df   :  { %6365 = vmatprep.mubr.msk.f32.mxu0 %vm74_vm0, %v7764_v20 }
 0x8e0   :  { %6366 = vmatmul.mubr.msk.f32.gmra.mrb[30].mxu0 %vm74_vm0, %v7767_v56 }
 0x910   :  { %v2829_v21 = vpop.xlane.xlu0 %2828 }
 0x911   :  { %v2837_v22 = vmul.f32 0.03125, %v2829_v21  ;;  %v2826_v24 = vpop.xlane.xlu1 %2825 }
 0x912   :  { %v2836_v25 = vmul.f32 0.03125, %v2826_v24 }
 0x913   :  { %v2841_v26 = vsub.f32 %v2819_v59, %v2837_v22 }
 0x914   :  { %v2840_v62 = vsub.f32 %v2818_v9, %v2836_v25 }
 0x915   :  { %v2845_v28 = vmul.f32 %v2841_v26, %v2841_v26 }
 0x916   :  { %v2844_v27 = vmul.f32 %v2840_v62, %v2840_v62 }
 0x917   :  { %v2851_v29 = vsel %vm74_vm0, %v2845_v28, 0.0 }
 0x918   :  { %2852 = vadd.xlane.f32.xlu0 %v2851_v29  ;;  %v2848_v31 = vsel %vm74_vm0, %v2844_v27, 0.0 }
 0x919   :  { %2849 = vadd.xlane.f32.xlu1 %v2848_v31 }
 0x9a5   :  { %v2853_v37 = vpop.xlane.xlu0 %2852 }
 0x9a6   :  { %v2861_v39 = vmul.f32 0.03125, %v2853_v37  ;;  %v2850_v40 = vpop.xlane.xlu1 %2849 }
 0x9a7   :  { %v2860_v54 = vmul.f32 0.03125, %v2850_v40 }
 0x9a8   :  { %v2865_v41 = vadd.f32 1e-12, %v2861_v39 }
 0x9a9   :  { %v2864_v42 = vadd.f32 1e-12, %v2860_v54 }
 0x9aa   :  { %7121 = vrsqrt.f32 %v2865_v41 }
 0x9ab   :  { %7123 = vrsqrt.f32 %v2864_v42 }
 0x9b3   :  { %v6367_v43 = vpop.f32.mrb[30].mxu0 }
 0x9b4   :  { %v7122_v44 = vpop.eup %7121  ;;  %v2681_v47 = vadd.f32 %v6367_v43, %v7736_v17  ;;  %v2675_v53 = vpop.f32.mrb[31].mxu0 }
 0x9b5   :  { %v7124_v51 = vpop.eup %7123  ;;  %v2873_v57 = vmul.f32 %v7122_v44, %v2841_v26  ;;  %v2676_v50 = vadd.f32 %v7736_v17, %v2675_v53 }
 0x9b6   :  { %v2692_v52 = vmul.f32 0.70710677, %v2681_v47  ;;  %v2872_v49 = vmul.f32 %v7124_v51, %v2840_v62  ;;  %v2687_v8 = vmul.f32 0.5, %v2681_v47 }
 0x9b7   :  { %v2691_v46 = vmul.f32 0.70710677, %v2676_v50  ;;  %v2883_v63 = vmul.f32 %v7791_v48, %v2873_v57  ;;  %v2686_v55 = vmul.f32 0.5, %v2676_v50 }
 0x9b8   :  { %7125 = verf.f32 %v2692_v52  ;;  %v2882_v0 = vmul.f32 %v7791_v48, %v2872_v49 }
 0x9b9   :  { %7127 = verf.f32 %v2691_v46  ;;  %v7805_v5 = vadd.f32 %v7797_v61, %v2883_v63 }
 0x9ba   :  { %v7802_v58 = vadd.f32 %v7797_v61, %v2882_v0 }
 0x9bc   :  { %6398 = vmatprep.mubr.msk.f32.mxu0 %vm74_vm0, %v7802_v58 }
 0x9bd   :  { %6399 = vmatmul.mubr.msk.f32.vlgmr.msra.gmra.mrb[32].mxu0 %vm74_vm0, %v7805_v5 }
 0x9c2   :  { %v7126_v17 = vpop.eup %7125 }
 0x9c3   :  { %v7128_v1 = vpop.eup %7127  ;;  %v2700_v4 = vadd.f32 1.0, %v7126_v17 }
 0x9c4   :  { %v2699_v10 = vadd.f32 1.0, %v7128_v1 }
 0x9c5   :  { %v2704_v9 = vmul.f32 %v2700_v4, %v2687_v8 }
 0x9c6   :  { %v2703_v59 = vmul.f32 %v2699_v10, %v2686_v55 }
 0x9c8   :  { %6387 = vmatprep.mubr.msk.f32.mxu1 %vm2720_vm4, %v2703_v59 }
 0x9c9   :  { %6388 = vmatmul.mubr.msk.f32.gmra.mrb[26].mxu1 %vm2720_vm4, %v2704_v9 }
 0xa90   :  { %v6400_v3 = vpop.f32.mrb[32].mxu0 }
 0xa91   :  { %v2993_v60 = vadd.f32 %v6400_v3, %v7816_v11  ;;  %v2987_v7 = vpop.f32.mrb[33].mxu0 }
 0xa92   :  { %v2988_v12 = vadd.f32 %v7816_v11, %v2987_v7 }
 0xa93   :  { %v7842_v27 = vmul.f32 0.35355338, %v2993_v60 }
 0xa94   :  { %v6935_v6 = vpack.i.bf16 %v2993_v60, %v2988_v12  ;;  %v7854_v32 = vmul.f32 0.35355338, %v2988_v12 }
 0xa9c   :  { %v6389_v13 = vpop.f32.mrb[26].mxu1 }
 0xa9d   :  { %v2815_v14 = vadd.f32 %v6389_v13, %v7753_v2  ;;  %v2809_v15 = vpop.f32.mrb[27].mxu1 }
 0xa9e   :  { %v2810_v16 = vadd.f32 %v7753_v2, %v2809_v15 }
 0xa9f   :  { %v2821_v18 = vadd.f32 %v2815_v14, %v7767_v56 }
 0xaa0   :  { %v2820_v45 = vadd.f32 %v2810_v16, %v7764_v20 }
 0xaa1   :  { %v2833_v38 = vsel %vm74_vm0, %v2821_v18, 0.0 }
 0xaa2   :  { %2834 = vadd.xlane.f32.xlu0 %v2833_v38  ;;  %v2830_v19 = vsel %vm74_vm0, %v2820_v45, 0.0 }
 0xaa3   :  { %2831 = vadd.xlane.f32.xlu1 %v2830_v19 }
 0xab4   :  { %6936 = vrot.lane.b32.xlu1 %v6935_v6, %s7275_s15 }
 0xab8   :  { %6941 = vrot.lane.b32.xlu0 %v6935_v6, %s7277_s17  ;;  %6946 = vrot.lane.b32.xlu1 %v6935_v6, %s7274_s14 }
 0xb2f   :  { %v2835_v21 = vpop.xlane.xlu0 %2834 }
 0xb30   :  { %v2839_v22 = vmul.f32 0.03125, %v2835_v21  ;;  %v2832_v24 = vpop.xlane.xlu1 %2831 }
 0xb31   :  { %v2838_v28 = vmul.f32 0.03125, %v2832_v24 }
 0xb32   :  { %v7829_v2 = vsub.f32 %v2821_v18, %v2839_v22 }
 0xb33   :  { %v7831_v56 = vpop.permute.xlu0 %6941  ;;  %v2842_v29 = vsub.f32 %v2820_v45, %v2838_v28 }
 0xb34   :  { %v6937_v20 = vpop.permute.xlu1 %6936  ;;  %v2847_v25 = vmul.f32 %v7829_v2, %v7829_v2 }
 0xb35   :  { %6956 = vrot.lane.b32.xlu1 %v6937_v20, %s7276_s16  ;;  %v2846_v31 = vmul.f32 %v2842_v29, %v2842_v29 }
 0xb36   :  { %v2857_v26 = vsel %vm74_vm0, %v2847_v25, 0.0 }
 0xb37   :  { %2858 = vadd.xlane.f32.xlu0 %v2857_v26  ;;  %v2854_v30 = vsel %vm74_vm0, %v2846_v31, 0.0 }
 0xb38   :  { %v7836_v62 = vpop.permute.xlu1 %6946 }
 0xb4d   :  { %6951 = vrot.lane.b32.xlu0 %v6935_v6, %s7276_s16 }
 0xb51   :  { %6966 = vrot.lane.b32.xlu0 %v7836_v62, %s7276_s16 }
 0xb55   :  { %3014 = vrot.lane.b32.xlu0 %v7842_v27, %s7275_s15 }
 0xb59   :  { %3018 = vrot.lane.b32.xlu0 %v7842_v27, %s7277_s17  ;;  %2855 = vadd.xlane.f32.xlu1 %v2854_v30 }
 0xb5d   :  { %3022 = vrot.lane.b32.xlu0 %v7842_v27, %s7274_s14 }
 0xb61   :  { %6971 = vrot.lane.b32.xlu0 %v6935_v6, %s7278_s20 }
 0xb6a   :  { %6961 = vrot.lane.b32.xlu1 %v7831_v56, %s7276_s16 }
 0xb6e   :  { %3012 = vrot.lane.b32.xlu1 %v7854_v32, %s7275_s15 }
 0xb72   :  { %3016 = vrot.lane.b32.xlu1 %v7854_v32, %s7277_s17 }
 0xb76   :  { %3020 = vrot.lane.b32.xlu1 %v7854_v32, %s7274_s14 }
 0xb7a   :  { %6976 = vrot.lane.b32.xlu1 %v6937_v20, %s7278_s20 }
 0xba7   :  { %v6957_v33 = vpop.permute.xlu1 %6956 }
 0xba8   :  { %v6959_v34 = vunpack.i.h.bf16 %v6957_v33  ;;  %v6958_v35 = vunpack.i.l.bf16 %v6957_v33 }
 0xbaa   :  { %v6718_v36 = vpack.c.bf16 %v6959_v34, %v6958_v35 }
 0xbac   :  { %6720 = vmatprep.subr.msk.bf16.mxu1 %vm7406_vm2, %v6718_v36 }
 0xbad   :  { %6723 = vmatpush3.bf16.xpose.msk.msra.mxu1 %vm7406_vm2, %v6718_v36 }
 0xbc4   :  { %v2859_v37 = vpop.xlane.xlu0 %2858 }
 0xbc5   :  { %v2863_v53 = vmul.f32 0.03125, %v2859_v37 }
 0xbc7   :  { %v2867_v51 = vadd.f32 1e-12, %v2863_v53 }
 0xbc8   :  { %v6952_v39 = vpop.permute.xlu0 %6951 }
 0xbc9   :  { %v6954_v40 = vunpack.i.h.bf16 %v6952_v39  ;;  %v6953_v54 = vunpack.i.l.bf16 %v6952_v39  ;;  %7129 = vrsqrt.f32 %v2867_v51 }
 0xbcb   :  { %v6712_v41 = vpack.c.bf16 %v6954_v40, %v6953_v54 }
 0xbcc   :  { %v6967_v42 = vpop.permute.xlu0 %6966 }
 0xbcd   :  { %v6969_v43 = vunpack.i.h.bf16 %v6967_v42  ;;  %v6968_v44 = vunpack.i.l.bf16 %v6967_v42  ;;  %6714 = vmatprep.subr.msk.bf16.mxu0 %vm7406_vm2, %v6712_v41 }
 0xbce   :  { %6717 = vmatpush3.bf16.xpose.msk.msra.mxu0 %vm7406_vm2, %v6712_v41 }
 0xbcf   :  { %v6730_v47 = vpack.c.bf16 %v6969_v43, %v6968_v44 }
 0xbd0   :  { %v3015_v52 = vpop.permute.xlu0 %3014 }
 0xbd1   :  { %6732 = vmatprep.subr.msk.bf16.mxu1 %vm7406_vm2, %v6730_v47 }
 0xbd3   :  { %v7130_v55 = vpop.eup %7129 }
 0xbd4   :  { %v3019_v1 = vpop.permute.xlu0 %3018  ;;  %v2875_v8 = vmul.f32 %v7130_v55, %v7829_v2 }
 0xbd6   :  { %v2885_v7 = vmul.f32 %v7791_v48, %v2875_v8 }
 0xbd8   :  { %v3023_v59 = vpop.permute.xlu0 %3022  ;;  %v7888_v18 = vadd.f32 %v7797_v61, %v2885_v7 }
 0xbdc   :  { %v6972_v6 = vpop.permute.xlu0 %6971 }
 0xbdd   :  { %v6974_v45 = vunpack.i.h.bf16 %v6972_v6  ;;  %v6973_v38 = vunpack.i.l.bf16 %v6972_v6 }
 0xbe6   :  { %v2856_v57 = vpop.xlane.xlu1 %2855 }
 0xbe7   :  { %v2862_v50 = vmul.f32 0.03125, %v2856_v57 }
 0xbe9   :  { %v2866_v49 = vadd.f32 1e-12, %v2862_v50 }
 0xbea   :  { %v6962_v46 = vpop.permute.xlu1 %6961 }
 0xbeb   :  { %7131 = vrsqrt.f32 %v2866_v49  ;;  %v6964_v63 = vunpack.i.h.bf16 %v6962_v46  ;;  %v6963_v0 = vunpack.i.l.bf16 %v6962_v46 }
 0xbed   :  { %v6724_v17 = vpack.c.bf16 %v6964_v63, %v6963_v0 }
 0xbee   :  { %v3013_v4 = vpop.permute.xlu1 %3012 }
 0xbef   :  { %6415 = vmatprep.mubr.msk.f32.mxu1 %vm208_vm1, %v3013_v4  ;;  %6726 = vmatprep.subr.msk.bf16.mxu0 %vm7406_vm2, %v6724_v17 }
 0xbf0   :  { %6416 = vmatmul.mubr.msk.f32.vlgmr.msra.gmra.mrb[28].mxu1 %vm208_vm1, %v3015_v52 }
 0xbf1   :  { %6735 = vmatpush3.bf16.xpose.msk.msra.mxu1 %vm7406_vm2, %v6730_v47 }
 0xbf2   :  { %v3017_v10 = vpop.permute.xlu1 %3016 }
 0xbf5   :  { %v7132_v9 = vpop.eup %7131 }
 0xbf6   :  { %v3021_v3 = vpop.permute.xlu1 %3020  ;;  %v2874_v60 = vmul.f32 %v7132_v9, %v2842_v29 }
 0xbf7   :  { %6429 = vmatprep.mubr.msk.f32.mxu1 %vm208_vm1, %v3021_v3 }
 0xbf8   :  { %6430 = vmatmul.mubr.msk.f32.vlgmr.msra.gmra.mrb[30].mxu1 %vm208_vm1, %v3023_v59  ;;  %v2884_v12 = vmul.f32 %v7791_v48, %v2874_v60  ;;  %v6736_v48 = vpack.c.bf16 %v6974_v45, %v6973_v38 }
 0xbfa   :  { %v6977_v13 = vpop.permute.xlu1 %6976  ;;  %v7885_v14 = vadd.f32 %v7797_v61, %v2884_v12 }
 0xbfb   :  { %v6979_v15 = vunpack.i.h.bf16 %v6977_v13  ;;  %v6978_v16 = vunpack.i.l.bf16 %v6977_v13 }
 0xbfc   :  { %6401 = vmatprep.mubr.msk.f32.mxu0 %vm74_vm0, %v7885_v14 }
 0xbfd   :  { %v6740_v19 = vpack.c.bf16 %v6979_v15, %v6978_v16  ;;  %6402 = vmatmul.mubr.msk.f32.gmra.mrb[34].mxu0 %vm74_vm0, %v7888_v18 }
 0xbfe   :  { %6408 = vmatprep.mubr.msk.f32.mxu0 %vm208_vm1, %v7854_v32 }
 0xbff   :  { %6741 = vmatprep.subr.bf16.mxu1 %v6740_v19 }
 0xc00   :  { %6743 = vmatpush3.bf16.msra.mxu1 %v6740_v19 }
 0xc01   :  { %6409 = vmatmul.mubr.msk.f32.vlgmr.msra.gmra.mrb[36].mxu0 %vm208_vm1, %v7842_v27 }
 0xc02   :  { %6729 = vmatpush3.bf16.xpose.msk.msra.mxu0 %vm7406_vm2, %v6724_v17  ;;  %6422 = vmatprep.mubr.msk.f32.mxu0 %vm208_vm1, %v3017_v10 }
 0xc03   :  { %6737 = vmatprep.subr.bf16.mxu0 %v6736_v48 }
 0xc09   :  { %6423 = vmatmul.mubr.msk.f32.vlgmr.msra.gmra.mrb[38].mxu0 %vm208_vm1, %v3019_v1 }
 0xc0a   :  { %6739 = vmatpush3.bf16.msra.mxu0 %v6736_v48 }
 0xcc3   :  { %v6417_v61 = vpop.f32.mrb[28].mxu1 }
 0xcc4   :  { %v3203_v21 = vpop.f32.mrb[29].mxu1  ;;  %v3395_v22 = vsel %vm553_vm3, %v6417_v61, -inf }
 0xcc5   :  { %3396 = vmax.xlane.f32.xlu1 %v3395_v22  ;;  %v3392_v24 = vsel %vm553_vm3, %v3203_v21, -inf }
 0xcc6   :  { %3393 = vmax.xlane.f32.xlu0 %v3392_v24 }
 0xccb   :  { %v6431_v2 = vpop.f32.mrb[30].mxu1 }
 0xccc   :  { %v3377_v20 = vpop.f32.mrb[31].mxu1  ;;  %v3407_v25 = vsel %vm553_vm3, %v6431_v2, -inf }
 0xccd   :  { %3408 = vmax.xlane.f32.xlu1 %v3407_v25  ;;  %v3404_v26 = vsel %vm553_vm3, %v3377_v20, -inf }
 0xcce   :  { %3405 = vmax.xlane.f32.xlu0 %v3404_v26 }
 0xcd0   :  { %v6403_v28 = vpop.f32.mrb[34].mxu0 }
 0xcd1   :  { %v7907_v27 = vadd.f32 %v6403_v28, %v7816_v11  ;;  %v2997_v29 = vpop.f32.mrb[35].mxu0 }
 0xcd2   :  { %v7910_v31 = vadd.f32 %v7816_v11, %v2997_v29 }
 0xcd4   :  { %v6410_v30 = vpop.f32.mrb[36].mxu0  ;;  %v7914_v32 = vpack.i.bf16 %v7907_v27, %v7910_v31 }
 0xcd5   :  { %v3116_v33 = vpop.f32.mrb[37].mxu0  ;;  %v3389_v34 = vsel %vm553_vm3, %v6410_v30, -inf }
 0xcd6   :  { %3390 = vmax.xlane.f32.xlu0 %v3389_v34  ;;  %v3386_v35 = vsel %vm553_vm3, %v3116_v33, -inf  ;;  %v7958_v34 = vmul.f32 0.35355338, %v7910_v31  ;;  %v7979_v31 = vld [vmem:[%s8247_s3 + $0x38] sm:$0xff] }
 0xcd7   :  { %3387 = vmax.xlane.f32.xlu1 %v3386_v35 }
 0xcdc   :  { %v6424_v36 = vpop.f32.mrb[38].mxu0 }
 0xcdd   :  { %v3290_v37 = vpop.f32.mrb[39].mxu0  ;;  %v3401_v39 = vsel %vm553_vm3, %v6424_v36, -inf }
 0xcde   :  { %3402 = vmax.xlane.f32.xlu1 %v3401_v39  ;;  %v3398_v11 = vsel %vm553_vm3, %v3290_v37, -inf  ;;  %v7996_v39 = vld [vmem:[%s8247_s3 + $0x20] sm:$0xff] }
 0xcdf   :  { %3399 = vmax.xlane.f32.xlu0 %v3398_v11 }
 0xcef   :  { %6981 = vrot.lane.b32.xlu1 %v7831_v56, %s7278_s20 }
 0xcf3   :  { %6991 = vrot.lane.b32.xlu1 %v7914_v32, %s7275_s15 }
 0xcf5   :  { %6986 = vrot.lane.b32.xlu0 %v7836_v62, %s7278_s20 }
 0xcf7   :  { %7001 = vrot.lane.b32.xlu1 %v7914_v32, %s7274_s14 }
 0xcf9   :  { %6996 = vrot.lane.b32.xlu0 %v7914_v32, %s7277_s17 }
 0xcfb   :  { %7006 = vrot.lane.b32.xlu1 %v7914_v32, %s7276_s16 }
 0xd52   :  { %v3397_v40 = vpop.xlane.xlu1 %3396 }
 0xd53   :  { %v3413_v54 = vsub.f32 %v6417_v61, %v3397_v40  ;;  %v3394_v41 = vpop.xlane.xlu0 %3393 }
 0xd54   :  { %v3412_v42 = vsub.f32 %v3203_v21, %v3394_v41 }
 0xd55   :  { %v3424_v56 = vmul.f32 1.442695, %v3413_v54 }
 0xd56   :  { %v3422_v43 = vmul.f32 1.442695, %v3412_v42 }
 0xd57   :  { %7133 = vpow2.f32 %v3424_v56 }
 0xd58   :  { %7135 = vpow2.f32 %v3422_v43 }
 0xd5a   :  { %v3409_v44 = vpop.xlane.xlu1 %3408 }
 0xd5b   :  { %v3417_v47 = vsub.f32 %v6431_v2, %v3409_v44  ;;  %v3406_v62 = vpop.xlane.xlu0 %3405 }
 0xd5c   :  { %v3416_v53 = vsub.f32 %v3377_v20, %v3406_v62 }
 0xd5d   :  { %v3432_v51 = vmul.f32 1.442695, %v3417_v47 }
 0xd5e   :  { %v3430_v57 = vmul.f32 1.442695, %v3416_v53 }
 0xd5f   :  { %7137 = vpow2.f32 %v3432_v51 }
 0xd60   :  { %7139 = vpow2.f32 %v3430_v57 }
 0xd61   :  { %v7134_v50 = vpop.eup %7133 }
 0xd62   :  { %v7136_v52 = vpop.eup %7135  ;;  %v3443_v49 = vsel %vm553_vm3, %v7134_v50, 0.0 }
 0xd63   :  { %6443 = vmatprep.mubr.msk.f32.mxu1 %vm553_vm3, %v7136_v52  ;;  %v3391_v46 = vpop.xlane.xlu0 %3390  ;;  %3444 = vadd.xlane.f32.xlu0 %v3443_v49  ;;  %v3440_v4 = vsel %vm553_vm3, %v7136_v52, 0.0 }
 0xd64   :  { %v3411_v63 = vsub.f32 %v6410_v30, %v3391_v46  ;;  %v3388_v0 = vpop.xlane.xlu1 %3387  ;;  %6444 = vmatmul.mubr.msk.f32.vlgmr.msra.gmra.mrb[32].mxu1 %vm553_vm3, %v7134_v50 }
 0xd65   :  { %v3410_v17 = vsub.f32 %v3116_v33, %v3388_v0 }
 0xd66   :  { %v3420_v1 = vmul.f32 1.442695, %v3411_v63 }
 0xd67   :  { %v3418_v55 = vmul.f32 1.442695, %v3410_v17  ;;  %3441 = vadd.xlane.f32.xlu0 %v3440_v4 }
 0xd68   :  { %7141 = vpow2.f32 %v3420_v1 }
 0xd69   :  { %v7138_v10 = vpop.eup %7137  ;;  %7143 = vpow2.f32 %v3418_v55 }
 0xd6a   :  { %v7140_v8 = vpop.eup %7139  ;;  %v3455_v59 = vsel %vm553_vm3, %v7138_v10, 0.0 }
 0xd6b   :  { %v3403_v9 = vpop.xlane.xlu1 %3402  ;;  %6457 = vmatprep.mubr.msk.f32.mxu1 %vm553_vm3, %v7140_v8  ;;  %3456 = vadd.xlane.f32.xlu0 %v3455_v59  ;;  %v3452_v3 = vsel %vm553_vm3, %v7140_v8, 0.0 }
 0xd6c   :  { %v3415_v60 = vsub.f32 %v6424_v36, %v3403_v9  ;;  %v3400_v7 = vpop.xlane.xlu0 %3399  ;;  %3453 = vadd.xlane.f32.xlu1 %v3452_v3  ;;  %v7970_v36 = vld [vmem:[%s8247_s3 + $0x28] sm:$0xff] }
 0xd6d   :  { %v3414_v12 = vsub.f32 %v3290_v37, %v3400_v7  ;;  %v7982_v37 = vmul.f32 0.35355338, %v7907_v27  ;;  %v8003_v27 = vld [vmem:[%s8247_s3 + $0x30] sm:$0xff] }
 0xd6e   :  { %v3428_v6 = vmul.f32 1.442695, %v3415_v60 }
 0xd6f   :  { %v3426_v13 = vmul.f32 1.442695, %v3414_v12  ;;  %v6982_v15 = vpop.permute.xlu1 %6981 }
 0xd70   :  { %7145 = vpow2.f32 %v3428_v6  ;;  %v6984_v16 = vunpack.i.h.bf16 %v6982_v15  ;;  %v6983_v45 = vunpack.i.l.bf16 %v6982_v15  ;;  %v6987_v38 = vpop.permute.xlu0 %6986 }
 0xd71   :  { %7147 = vpow2.f32 %v3426_v13  ;;  %v6989_v19 = vunpack.i.h.bf16 %v6987_v38  ;;  %v6988_v48 = vunpack.i.l.bf16 %v6987_v38 }
 0xd72   :  { %v7142_v61 = vpop.eup %7141  ;;  %v6744_v21 = vpack.c.bf16 %v6984_v16, %v6983_v45 }
 0xd73   :  { %v7144_v22 = vpop.eup %7143  ;;  %v6748_v24 = vpack.c.bf16 %v6989_v19, %v6988_v48  ;;  %v7939_v2 = vpop.permute.xlu1 %6991  ;;  %v3437_v20 = vsel %vm553_vm3, %v7142_v61, 0.0 }
 0xd74   :  { %6745 = vmatprep.subr.bf16.mxu0 %v6744_v21  ;;  %v7942_v25 = vpop.permute.xlu0 %6996  ;;  %6436 = vmatprep.mubr.msk.f32.mxu0 %vm553_vm3, %v7144_v22  ;;  %v3434_v26 = vsel %vm553_vm3, %v7144_v22, 0.0 }
 0xd75   :  { %3438 = vadd.xlane.f32.xlu1 %v3437_v20  ;;  %6749 = vmatprep.subr.bf16.mxu1 %v6748_v24 }
 0xd76   :  { %6437 = vmatmul.mubr.msk.f32.vlgmr.msra.gmra.mrb[40].mxu0 %vm553_vm3, %v7142_v61  ;;  %3435 = vadd.xlane.f32.xlu0 %v3434_v26 }
 0xd77   :  { %6747 = vmatpush3.bf16.msra.mxu0 %v6744_v21  ;;  %6751 = vmatpush3.bf16.msra.mxu1 %v6748_v24  ;;  %v7947_v28 = vpop.permute.xlu1 %7001 }
 0xd78   :  { %6465 = vmatprep.subr.mxu1 %v7970_v36  ;;  %6460 = vmatprep.subr.mxu0 %v7996_v39 }
 0xd7a   :  { %v7146_v29 = vpop.eup %7145  ;;  %6458 = vmatmul.mubr.msk.f32.vlgmr.msra.gmra.mrb[34].mxu1 %vm553_vm3, %v7138_v10 }
 0xd7b   :  { %v7148_v30 = vpop.eup %7147  ;;  %v3449_v33 = vsel %vm553_vm3, %v7146_v29, 0.0  ;;  %6466 = vmatpush3.msra.mxu1 %v7970_v36  ;;  %v7007_v54 = vpop.permute.xlu1 %7006 }
 0xd7c   :  { %3450 = vadd.xlane.f32.xlu0 %v3449_v33  ;;  %6450 = vmatprep.mubr.msk.f32.mxu0 %vm553_vm3, %v7148_v30  ;;  %v3446_v35 = vsel %vm553_vm3, %v7148_v30, 0.0  ;;  %v7009_v10 = vunpack.i.h.bf16 %v7007_v54  ;;  %v7008_v8 = vunpack.i.l.bf16 %v7007_v54 }
 0xd7d   :  { %6451 = vmatmul.mubr.msk.f32.vlgmr.msra.gmra.mrb[42].mxu0 %vm553_vm3, %v7146_v29  ;;  %6475 = vmatprep.subr.mxu1 %v7979_v31 }
 0xd7e   :  { %6461 = vmatpush3.msra.mxu0 %v7996_v39  ;;  %v6752_v13 = vpack.c.bf16 %v7009_v10, %v7008_v8 }
 0xd7f   :  { %6470 = vmatprep.subr.mxu0 %v8003_v27 }
 0xd86   :  { %7016 = vrot.lane.b32.xlu1 %v7942_v25, %s7276_s16 }
 0xd92   :  { %7011 = vrot.lane.b32.xlu0 %v7939_v2, %s7276_s16 }
 0xd96   :  { %4167 = vrot.lane.b32.xlu0 %v7958_v34, %s7275_s15 }
 0xd9a   :  { %4171 = vrot.lane.b32.xlu0 %v7958_v34, %s7277_s17 }
 0xd9e   :  { %4175 = vrot.lane.b32.xlu0 %v7958_v34, %s7274_s14 }
 0xdaa   :  { %3447 = vadd.xlane.f32.xlu1 %v3446_v35 }
 0xdbb   :  { %7021 = vrot.lane.b32.xlu1 %v7947_v28, %s7276_s16 }
 0xdbf   :  { %4169 = vrot.lane.b32.xlu1 %v7982_v37, %s7275_s15 }
 0xdc3   :  { %4173 = vrot.lane.b32.xlu1 %v7982_v37, %s7277_s17 }
 0xdc7   :  { %4177 = vrot.lane.b32.xlu1 %v7982_v37, %s7274_s14 }
 0xdcb   :  { %7026 = vrot.lane.b32.xlu1 %v7914_v32, %s7278_s20 }
 0xdf0   :  { %v3445_v11 = vpop.xlane.xlu0 %3444 }
 0xdf4   :  { %v3442_v40 = vpop.xlane.xlu0 %3441 }
 0xdf5   :  { %7149 = vrcp.f32 %v3442_v40 }
 0xdf6   :  { %7151 = vrcp.f32 %v3445_v11 }
 0xdf8   :  { %v3457_v32 = vpop.xlane.xlu0 %3456 }
 0xdf9   :  { %v3454_v41 = vpop.xlane.xlu1 %3453 }
 0xdff   :  { %v7150_v53 = vpop.eup %7149 }
 0xe00   :  { %v7152_v49 = vpop.eup %7151 }
 0xe02   :  { %v3439_v56 = vpop.xlane.xlu1 %3438 }
 0xe03   :  { %v3436_v42 = vpop.xlane.xlu0 %3435 }
 0xe04   :  { %7153 = vrcp.f32 %v3436_v42 }
 0xe05   :  { %7155 = vrcp.f32 %v3439_v56 }
 0xe06   :  { %v8006_v44 = vpop.permute.xlu1 %7016  ;;  %7157 = vrcp.f32 %v3454_v41 }
 0xe07   :  { %7159 = vrcp.f32 %v3457_v32  ;;  %v7019_v20 = vunpack.i.h.bf16 %v8006_v44  ;;  %v7018_v26 = vunpack.i.l.bf16 %v8006_v44 }
 0xe09   :  { %v3451_v43 = vpop.xlane.xlu0 %3450  ;;  %v6764_v54 = vpack.c.bf16 %v7019_v20, %v7018_v26 }
 0xe0d   :  { %v7012_v47 = vpop.permute.xlu0 %7011 }
 0xe0e   :  { %v7014_v51 = vunpack.i.h.bf16 %v7012_v47  ;;  %v7013_v57 = vunpack.i.l.bf16 %v7012_v47  ;;  %v7154_v55 = vpop.eup %7153 }
 0xe0f   :  { %v7156_v3 = vpop.eup %7155 }
 0xe10   :  { %v6758_v0 = vpack.c.bf16 %v7014_v51, %v7013_v57  ;;  %v7158_v6 = vpop.eup %7157 }
 0xe11   :  { %v4168_v15 = vpop.permute.xlu0 %4167  ;;  %v7160_v19 = vpop.eup %7159 }
 0xe15   :  { %v4172_v40 = vpop.permute.xlu0 %4171 }
 0xe19   :  { %v4176_v56 = vpop.permute.xlu0 %4175 }
 0xe37   :  { %v6445_v62 = vpop.f32.mrb[32].mxu1  ;;  %v3448_v50 = vpop.xlane.xlu1 %3447 }
 0xe38   :  { %v3623_v52 = vpop.f32.mrb[33].mxu1  ;;  %v3817_v63 = vmul.f32 %v7152_v49, %v6445_v62  ;;  %7161 = vrcp.f32 %v3448_v50 }
 0xe39   :  { %v3816_v46 = vmul.f32 %v7150_v53, %v3623_v52  ;;  %7163 = vrcp.f32 %v3451_v43 }
 0xe3b   :  { %6467 = vmatprep.mubr.msk.f32.mxu1 %vm208_vm1, %v3816_v46  ;;  %v7022_v17 = vpop.permute.xlu1 %7021 }
 0xe3c   :  { %6468 = vmatmul.mubr.msk.f32.vlgmr.msra.gmra.mrb[36].mxu1 %vm208_vm1, %v3817_v63  ;;  %v7024_v16 = vunpack.i.h.bf16 %v7022_v17  ;;  %v7023_v45 = vunpack.i.l.bf16 %v7022_v17 }
 0xe3d   :  { %6476 = vmatpush3.msra.mxu1 %v7979_v31 }
 0xe3e   :  { %6760 = vmatprep.subr.msk.bf16.mxu1 %vm7406_vm2, %v6758_v0  ;;  %v6770_v33 = vpack.c.bf16 %v7024_v16, %v7023_v45 }
 0xe3f   :  { %v4170_v1 = vpop.permute.xlu1 %4169 }
 0xe42   :  { %v7162_v24 = vpop.eup %7161 }
 0xe43   :  { %v4174_v59 = vpop.permute.xlu1 %4173  ;;  %v7164_v30 = vpop.eup %7163 }
 0xe47   :  { %v4178_v61 = vpop.permute.xlu1 %4177 }
 0xe49   :  { %v6438_v4 = vpop.f32.mrb[40].mxu0 }
 0xe4a   :  { %v3536_v9 = vpop.f32.mrb[41].mxu0  ;;  %v3815_v7 = vmul.f32 %v7156_v3, %v6438_v4 }
 0xe4b   :  { %v3814_v60 = vmul.f32 %v7154_v55, %v3536_v9  ;;  %v7027_v32 = vpop.permute.xlu1 %7026 }
 0xe4c   :  { %v7029_v41 = vunpack.i.h.bf16 %v7027_v32  ;;  %v7028_v42 = vunpack.i.l.bf16 %v7027_v32 }
 0xe4d   :  { %v6459_v12 = vpop.f32.mrb[34].mxu1  ;;  %6462 = vmatprep.mubr.msk.f32.mxu0 %vm208_vm1, %v3814_v60 }
 0xe4e   :  { %v3797_v38 = vpop.f32.mrb[35].mxu1  ;;  %6463 = vmatmul.mubr.msk.f32.vlgmr.msra.gmra.mrb[44].mxu0 %vm208_vm1, %v3815_v7  ;;  %v3821_v21 = vmul.f32 %v7160_v19, %v6459_v12  ;;  %v6776_v43 = vpack.c.bf16 %v7029_v41, %v7028_v42 }
 0xe4f   :  { %v3820_v48 = vmul.f32 %v7158_v6, %v3797_v38  ;;  %6471 = vmatpush3.msra.mxu0 %v8003_v27 }
 0xe50   :  { %6754 = vmatprep.subr.msk.bf16.mxu0 %vm7406_vm2, %v6752_v13  ;;  %v6452_v22 = vpop.f32.mrb[42].mxu0 }
 0xe51   :  { %6477 = vmatprep.mubr.msk.f32.mxu1 %vm208_vm1, %v3820_v48  ;;  %v3710_v29 = vpop.f32.mrb[43].mxu0  ;;  %v3819_v11 = vmul.f32 %v7164_v30, %v6452_v22 }
 0xe52   :  { %v3818_v35 = vmul.f32 %v7162_v24, %v3710_v29  ;;  %6478 = vmatmul.mubr.msk.f32.vlgmr.msra.gmra.mrb[38].mxu1 %vm208_vm1, %v3821_v21 }
 0xe53   :  { %6763 = vmatpush3.bf16.xpose.msk.msra.mxu1 %vm7406_vm2, %v6758_v0  ;;  %6491 = vmatprep.mubr.msk.f32.mxu1 %vm208_vm1, %v4168_v15 }
 0xe54   :  { %6772 = vmatprep.subr.msk.bf16.mxu1 %vm7406_vm2, %v6770_v33  ;;  %6472 = vmatprep.mubr.msk.f32.mxu0 %vm208_vm1, %v3818_v35 }
 0xe55   :  { %6473 = vmatmul.mubr.msk.f32.vlgmr.msra.gmra.mrb[46].mxu0 %vm208_vm1, %v3819_v11 }
 0xe56   :  { %6757 = vmatpush3.bf16.xpose.msk.msra.mxu0 %vm7406_vm2, %v6752_v13  ;;  %6484 = vmatprep.mubr.msk.f32.mxu0 %vm208_vm1, %v7958_v34 }
 0xe57   :  { %6766 = vmatprep.subr.msk.bf16.mxu0 %vm7406_vm2, %v6764_v54 }
 0xe5a   :  { %6492 = vmatmul.mubr.msk.f32.vlgmr.msra.gmra.mrb[40].mxu1 %vm208_vm1, %v4170_v1 }
 0xe5b   :  { %6775 = vmatpush3.bf16.xpose.msk.msra.mxu1 %vm7406_vm2, %v6770_v33  ;;  %6505 = vmatprep.mubr.msk.f32.mxu1 %vm208_vm1, %v4176_v56 }
 0xe5d   :  { %6485 = vmatmul.mubr.msk.f32.vlgmr.msra.gmra.mrb[48].mxu0 %vm208_vm1, %v7982_v37 }
 0xe5e   :  { %6769 = vmatpush3.bf16.xpose.msk.msra.mxu0 %vm7406_vm2, %v6764_v54  ;;  %6498 = vmatprep.mubr.msk.f32.mxu0 %vm208_vm1, %v4172_v40 }
 0xe5f   :  { %6777 = vmatprep.subr.bf16.mxu0 %v6776_v43 }
 0xe62   :  { %6506 = vmatmul.mubr.msk.f32.vlgmr.msra.gmra.mrb[42].mxu1 %vm208_vm1, %v4178_v61 }
 0xe65   :  { %6499 = vmatmul.mubr.msk.f32.vlgmr.msra.gmra.mrb[50].mxu0 %vm208_vm1, %v4174_v59 }
 0xe66   :  { %6779 = vmatpush3.bf16.msra.mxu0 %v6776_v43 }
 0xf0f   :  { %v6469_v34 = vpop.f32.mrb[36].mxu1 }
 0xf10   :  { %v3980_v44 = vpop.f32.mrb[37].mxu1  ;;  %v4159_v62 = vsel %vm74_vm0, %v6469_v34, 0.0 }
 0xf11   :  { %v4152_v37 = vsel %vm74_vm0, %v3980_v44, 0.0 }
 0xf21   :  { %v6464_v47 = vpop.f32.mrb[44].mxu0 }
 0xf22   :  { %v4158_v53 = vsel %vm74_vm0, %v6464_v47, 0.0  ;;  %v3899_v51 = vpop.f32.mrb[45].mxu0 }
 0xf23   :  { %v4160_v23 = vadd.f32 %v4159_v62, %v4158_v53  ;;  %v4151_v57 = vsel %vm74_vm0, %v3899_v51, 0.0 }
 0xf24   :  { %v4153_v50 = vadd.f32 %v4152_v37, %v4151_v57 }
 0xf25   :  { %v6479_v52 = vpop.f32.mrb[38].mxu1 }
 0xf26   :  { %v4142_v49 = vpop.f32.mrb[39].mxu1  ;;  %v4163_v4 = vsel %vm74_vm0, %v6479_v52, 0.0 }
 0xf27   :  { %v4156_v10 = vsel %vm74_vm0, %v4142_v49, 0.0 }
 0xf28   :  { %v6474_v46 = vpop.f32.mrb[46].mxu0 }
 0xf29   :  { %v4161_v63 = vsel %vm74_vm0, %v6474_v46, 0.0  ;;  %v4061_v0 = vpop.f32.mrb[47].mxu0 }
 0xf2a   :  { %v4162_v17 = vadd.f32 %v4161_v63, %v4160_v23  ;;  %v4154_v1 = vsel %vm74_vm0, %v4061_v0, 0.0 }
 0xf2b   :  { %v4155_v55 = vadd.f32 %v4154_v1, %v4153_v50 }
 0xf2c   :  { %v8054_v8 = vadd.f32 %v4163_v4, %v4162_v17 }
 0xf2d   :  { %v8056_v59 = vadd.f32 %v4156_v10, %v4155_v55  ;;  %v6493_v9 = vpop.f32.mrb[40].mxu1  ;;  %v8083_v55 = vld [vmem:[%s8248_s4 + $0x1] ss:$0 sm:$0xff] }
 0xf2e   :  { %v4358_v3 = vpop.f32.mrb[41].mxu1  ;;  %v4550_v60 = vsel %vm553_vm3, %v6493_v9, -inf }
 0xf2f   :  { %4551 = vmax.xlane.f32.xlu0 %v4550_v60  ;;  %v4547_v6 = vsel %vm553_vm3, %v4358_v3, -inf  ;;  %v5328_v60 = vadd.f32 %v8083_v55, %v8054_v8 }
 0xf30   :  { %v6486_v7 = vpop.f32.mrb[48].mxu0 }
 0xf31   :  { %v4271_v12 = vpop.f32.mrb[49].mxu0  ;;  %v4544_v61 = vsel %vm553_vm3, %v6486_v7, -inf }
 0xf32   :  { %v4541_v48 = vsel %vm553_vm3, %v4271_v12, -inf }
 0xf33   :  { %4548 = vmax.xlane.f32.xlu0 %v4547_v6 }
 0xf35   :  { %v6507_v13 = vpop.f32.mrb[42].mxu1 }
 0xf36   :  { %v4532_v15 = vpop.f32.mrb[43].mxu1  ;;  %v4562_v16 = vsel %vm553_vm3, %v6507_v13, -inf }
 0xf37   :  { %4563 = vmax.xlane.f32.xlu0 %v4562_v16  ;;  %v4559_v45 = vsel %vm553_vm3, %v4532_v15, -inf }
 0xf38   :  { %4560 = vmax.xlane.f32.xlu1 %v4559_v45  ;;  %v6500_v38 = vpop.f32.mrb[50].mxu0 }
 0xf39   :  { %v8062_v19 = vpop.f32.mrb[51].mxu0  ;;  %v4556_v21 = vsel %vm553_vm3, %v6500_v38, -inf }
 0xf3a   :  { %v4553_v22 = vsel %vm553_vm3, %v8062_v19, -inf }
 0xf3b   :  { %4542 = vmax.xlane.f32.xlu0 %v4541_v48 }
 0xf3c   :  { %4545 = vmax.xlane.f32.xlu1 %v4544_v61 }
 0xf3f   :  { %4557 = vmax.xlane.f32.xlu0 %v4556_v21 }
 0xf4d   :  { %7036 = vrot.lane.b32.xlu1 %v7942_v25, %s7278_s20 }
 0xf55   :  { %7031 = vrot.lane.b32.xlu0 %v7939_v2, %s7278_s20 }
 0xf71   :  { %4554 = vmax.xlane.f32.xlu1 %v4553_v22 }
 0xf82   :  { %7041 = vrot.lane.b32.xlu1 %v7947_v28, %s7278_s20 }
 0xfbc   :  { %v4552_v24 = vpop.xlane.xlu0 %4551 }
 0xfbd   :  { %v4568_v20 = vsub.f32 %v6493_v9, %v4552_v24 }
 0xfbf   :  { %v4579_v26 = vmul.f32 1.442695, %v4568_v20 }
 0xfc0   :  { %v4549_v29 = vpop.xlane.xlu0 %4548 }
 0xfc1   :  { %7165 = vpow2.f32 %v4579_v26  ;;  %v4567_v30 = vsub.f32 %v4358_v3, %v4549_v29 }
 0xfc3   :  { %v4577_v33 = vmul.f32 1.442695, %v4567_v30 }
 0xfc4   :  { %v4564_v35 = vpop.xlane.xlu0 %4563 }
 0xfc5   :  { %7167 = vpow2.f32 %v4577_v33  ;;  %v4561_v25 = vpop.xlane.xlu1 %4560  ;;  %v4572_v42 = vsub.f32 %v6507_v13, %v4564_v35  ;;  %v8095_v13 = vadd.f32 %v5328_v60, %v7805_v5 }
 0xfc6   :  { %v4571_v11 = vsub.f32 %v4532_v15, %v4561_v25 }
 0xfc7   :  { %v4587_v23 = vmul.f32 1.442695, %v4572_v42  ;;  %v5342_v15 = vsel %vm74_vm0, %v8095_v13, 0.0 }
 0xfc8   :  { %v4543_v40 = vpop.xlane.xlu0 %4542  ;;  %v4585_v43 = vmul.f32 1.442695, %v4571_v11 }
 0xfc9   :  { %v4565_v2 = vsub.f32 %v4271_v12, %v4543_v40  ;;  %v4546_v54 = vpop.xlane.xlu1 %4545 }
 0xfca   :  { %v4566_v32 = vsub.f32 %v6486_v7, %v4546_v54 }
 0xfcb   :  { %v7166_v41 = vpop.eup %7165  ;;  %v4573_v56 = vmul.f32 1.442695, %v4565_v2 }
 0xfcc   :  { %v4575_v28 = vmul.f32 1.442695, %v4566_v32  ;;  %v4558_v34 = vpop.xlane.xlu0 %4557  ;;  %v4598_v44 = vsel %vm553_vm3, %v7166_v41, 0.0 }
 0xfcd   :  { %7169 = vpow2.f32 %v4573_v56  ;;  %v4570_v47 = vsub.f32 %v6500_v38, %v4558_v34  ;;  %4599 = vadd.xlane.f32.xlu0 %v4598_v44  ;;  %v7037_v62 = vpop.permute.xlu1 %7036 }
 0xfce   :  { %7171 = vpow2.f32 %v4575_v28  ;;  %v7039_v53 = vunpack.i.h.bf16 %v7037_v62  ;;  %v7038_v51 = vunpack.i.l.bf16 %v7037_v62 }
 0xfcf   :  { %v7168_v37 = vpop.eup %7167  ;;  %v4583_v57 = vmul.f32 1.442695, %v4570_v47  ;;  %7173 = vpow2.f32 %v4585_v43 }
 0xfd0   :  { %v6784_v50 = vpack.c.bf16 %v7039_v53, %v7038_v51  ;;  %6519 = vmatprep.mubr.msk.f32.mxu1 %vm553_vm3, %v7168_v37  ;;  %v7032_v52 = vpop.permute.xlu0 %7031  ;;  %v4595_v49 = vsel %vm553_vm3, %v7168_v37, 0.0 }
 0xfd1   :  { %7175 = vpow2.f32 %v4583_v57  ;;  %v7034_v46 = vunpack.i.h.bf16 %v7032_v52  ;;  %v7033_v63 = vunpack.i.l.bf16 %v7032_v52  ;;  %4596 = vadd.xlane.f32.xlu0 %v4595_v49 }
 0xfd2   :  { %6785 = vmatprep.subr.bf16.mxu0 %v6784_v50  ;;  %7177 = vpow2.f32 %v4587_v23 }
 0xfd3   :  { %v6780_v0 = vpack.c.bf16 %v7034_v46, %v7033_v63 }
 0xfd5   :  { %6781 = vmatprep.subr.bf16.mxu1 %v6780_v0 }
 0xfd6   :  { %6783 = vmatpush3.bf16.msra.mxu1 %v6780_v0 }
 0xfd7   :  { %v7170_v17 = vpop.eup %7169 }
 0xfd8   :  { %v7172_v1 = vpop.eup %7171  ;;  %6512 = vmatprep.mubr.msk.f32.mxu0 %vm553_vm3, %v7170_v17  ;;  %v4589_v4 = vsel %vm553_vm3, %v7170_v17, 0.0 }
 0xfd9   :  { %4590 = vadd.xlane.f32.xlu0 %v4589_v4  ;;  %6513 = vmatmul.mubr.msk.f32.vlgmr.msra.gmra.mrb[52].mxu0 %vm553_vm3, %v7172_v1  ;;  %v4592_v10 = vsel %vm553_vm3, %v7172_v1, 0.0  ;;  %v7174_v9 = vpop.eup %7173 }
 0xfda   :  { %6520 = vmatmul.mubr.msk.f32.vlgmr.msra.gmra.mrb[44].mxu1 %vm553_vm3, %v7166_v41  ;;  %6787 = vmatpush3.bf16.msra.mxu0 %v6784_v50  ;;  %v4607_v24 = vsel %vm553_vm3, %v7174_v9, 0.0 }
 0xfdb   :  { %v7176_v3 = vpop.eup %7175  ;;  %6533 = vmatprep.mubr.msk.f32.mxu1 %vm553_vm3, %v7174_v9  ;;  %4593 = vadd.xlane.f32.xlu1 %v4592_v10 }
 0xfdc   :  { %v4604_v7 = vsel %vm553_vm3, %v7176_v3, 0.0  ;;  %6536 = vmatprep.subr.mxu0 %v7996_v39  ;;  %v7178_v12 = vpop.eup %7177 }
 0xfdd   :  { %4605 = vadd.xlane.f32.xlu0 %v4604_v7  ;;  %v4610_v6 = vsel %vm553_vm3, %v7178_v12, 0.0 }
 0xfe1   :  { %4611 = vadd.xlane.f32.xlu0 %v4610_v6 }
 0xfe5   :  { %5343 = vadd.xlane.f32.xlu0 %v5342_v15 }
 0xffe   :  { %v4555_v16 = vpop.xlane.xlu1 %4554 }
 0xfff   :  { %v4569_v45 = vsub.f32 %v8062_v19, %v4555_v16  ;;  %v5327_v19 = vadd.f32 %v8083_v55, %v8056_v59 }
0x1001   :  { %v4581_v8 = vmul.f32 1.442695, %v4569_v45 }
0x1002   :  { %v7042_v38 = vpop.permute.xlu1 %7041 }
0x1003   :  { %7179 = vpow2.f32 %v4581_v8  ;;  %v7044_v48 = vunpack.i.h.bf16 %v7042_v38  ;;  %v7043_v61 = vunpack.i.l.bf16 %v7042_v38 }
0x1005   :  { %v6788_v21 = vpack.c.bf16 %v7044_v48, %v7043_v61 }
0x1007   :  { %6789 = vmatprep.subr.bf16.mxu1 %v6788_v21 }
0x1008   :  { %6791 = vmatpush3.bf16.msra.mxu1 %v6788_v21 }
0x1009   :  { %6541 = vmatprep.subr.mxu1 %v7970_v36 }
0x100b   :  { %6534 = vmatmul.mubr.msk.f32.vlgmr.msra.gmra.mrb[46].mxu1 %vm553_vm3, %v7178_v12 }
0x100c   :  { %6542 = vmatpush3.msra.mxu1 %v7970_v36  ;;  %v8113_v36 = vadd.f32 %v5327_v19, %v7802_v58 }
0x100d   :  { %v7180_v5 = vpop.eup %7179  ;;  %6551 = vmatprep.subr.mxu1 %v7979_v31 }
0x100e   :  { %6526 = vmatprep.mubr.msk.f32.mxu0 %vm553_vm3, %v7180_v5  ;;  %v4601_v22 = vsel %vm553_vm3, %v7180_v5, 0.0  ;;  %v5339_v59 = vsel %vm74_vm0, %v8113_v36, 0.0 }
0x100f   :  { %4602 = vadd.xlane.f32.xlu1 %v4601_v22  ;;  %6527 = vmatmul.mubr.msk.f32.vlgmr.msra.gmra.mrb[54].mxu0 %vm553_vm3, %v7176_v3 }
0x1010   :  { %6537 = vmatpush3.msra.mxu0 %v7996_v39 }
0x1011   :  { %6546 = vmatprep.subr.mxu0 %v8003_v27 }
0x1013   :  { %4608 = vadd.xlane.f32.xlu1 %v4607_v24 }
0x1017   :  { %5340 = vadd.xlane.f32.xlu1 %v5339_v59 }
0x105a   :  { %v4600_v20 = vpop.xlane.xlu0 %4599 }
0x105e   :  { %v4597_v26 = vpop.xlane.xlu0 %4596 }
0x105f   :  { %7181 = vrcp.f32 %v4597_v26 }
0x1066   :  { %v4591_v29 = vpop.xlane.xlu0 %4590 }
0x1067   :  { %7183 = vrcp.f32 %v4591_v29 }
0x1068   :  { %v4594_v30 = vpop.xlane.xlu1 %4593 }
0x1069   :  { %7185 = vrcp.f32 %v4594_v30  ;;  %v7182_v39 = vpop.eup %7181 }
0x106a   :  { %7187 = vrcp.f32 %v4600_v20  ;;  %v4606_v43 = vpop.xlane.xlu0 %4605 }
0x106e   :  { %v4612_v34 = vpop.xlane.xlu0 %4611 }
0x1071   :  { %v7184_v35 = vpop.eup %7183 }
0x1072   :  { %v5344_v12 = vpop.xlane.xlu0 %5343 }
0x1073   :  { %v7186_v58 = vpop.eup %7185  ;;  %v5352_v8 = vmul.f32 0.03125, %v5344_v12  ;;  %v5942_v12 = vld [vmem:[%s8253_s9 + $0x60] sm:$0xff] }
0x1074   :  { %v7188_v54 = vpop.eup %7187 }
0x1075   :  { %v5356_v59 = vsub.f32 %v8095_v13, %v5352_v8 }
0x109c   :  { %v4603_v56 = vpop.xlane.xlu1 %4602 }
0x10a0   :  { %v4609_v28 = vpop.xlane.xlu1 %4608 }
0x10a1   :  { %7189 = vrcp.f32 %v4609_v28 }
0x10a2   :  { %7191 = vrcp.f32 %v4612_v34 }
0x10a3   :  { %7193 = vrcp.f32 %v4603_v56 }
0x10a4   :  { %7195 = vrcp.f32 %v4606_v43  ;;  %v5341_v6 = vpop.xlane.xlu1 %5340 }
0x10a5   :  { %v5351_v61 = vmul.f32 0.03125, %v5341_v6  ;;  %v5943_v6 = vld [vmem:[%s8253_s9 + $0x68] sm:$0xff] }
0x10a7   :  { %v5355_v26 = vsub.f32 %v8113_v36, %v5351_v61  ;;  %v5930_v36 = vld [vmem:[%s8251_s7 + $0x30] sm:$0xff] }
0x10ab   :  { %v7190_v47 = vpop.eup %7189 }
0x10ac   :  { %v6514_v33 = vpop.f32.mrb[52].mxu0  ;;  %v7192_v53 = vpop.eup %7191 }
0x10ad   :  { %v6521_v25 = vpop.f32.mrb[44].mxu1  ;;  %v4691_v11 = vpop.f32.mrb[53].mxu0  ;;  %v4970_v32 = vmul.f32 %v7186_v58, %v6514_v33 }
0x10ae   :  { %v4969_v40 = vmul.f32 %v7184_v35, %v4691_v11  ;;  %v4778_v2 = vpop.f32.mrb[45].mxu1  ;;  %v4972_v42 = vmul.f32 %v7188_v54, %v6521_v25  ;;  %v5360_v35 = vmul.f32 %v5356_v59, %v5356_v59  ;;  %v5359_v11 = vmul.f32 %v5355_v26, %v5355_v26 }
0x10af   :  { %v4971_v41 = vmul.f32 %v7182_v39, %v4778_v2 }
0x10b0   :  { %6538 = vmatprep.mubr.msk.f32.mxu0 %vm208_vm1, %v4969_v40  ;;  %v5366_v13 = vsel %vm74_vm0, %v5360_v35, 0.0  ;;  %v5363_v58 = vsel %vm74_vm0, %v5359_v11, 0.0  ;;  %v5931_v40 = vld [vmem:[%s8251_s7 + $0x38] sm:$0xff] }
0x10b1   :  { %6543 = vmatprep.mubr.msk.f32.mxu1 %vm208_vm1, %v4971_v41  ;;  %6539 = vmatmul.mubr.msk.f32.vlgmr.msra.gmra.mrb[56].mxu0 %vm208_vm1, %v4970_v32  ;;  %v6796_v2 = vpack.c.bf16 %v5931_v40, %v5930_v36 }
0x10b2   :  { %6544 = vmatmul.mubr.msk.f32.vlgmr.msra.gmra.mrb[48].mxu1 %vm208_vm1, %v4972_v42  ;;  %6547 = vmatpush3.msra.mxu0 %v8003_v27  ;;  %v7194_v27 = vpop.eup %7193 }
0x10b3   :  { %6552 = vmatpush3.msra.mxu1 %v7979_v31  ;;  %v7196_v31 = vpop.eup %7195 }
0x10de   :  { %v6535_v44 = vpop.f32.mrb[46].mxu1 }
0x10df   :  { %v4952_v62 = vpop.f32.mrb[47].mxu1  ;;  %v4976_v37 = vmul.f32 %v7192_v53, %v6535_v44 }
0x10e0   :  { %v4975_v51 = vmul.f32 %v7190_v47, %v4952_v62 }
0x10e2   :  { %v6528_v23 = vpop.f32.mrb[54].mxu0  ;;  %6553 = vmatprep.mubr.msk.f32.mxu1 %vm208_vm1, %v4975_v51 }
0x10e3   :  { %v4865_v57 = vpop.f32.mrb[55].mxu0  ;;  %6554 = vmatmul.mubr.msk.f32.vlgmr.msra.gmra.mrb[50].mxu1 %vm208_vm1, %v4976_v37  ;;  %v4974_v52 = vmul.f32 %v7196_v31, %v6528_v23  ;;  %v5926_v31 = vld [vmem:[%s8249_s5 + $0x1] ss:$0 sm:$0xff] }
0x10e4   :  { %v4973_v50 = vmul.f32 %v7194_v27, %v4865_v57 }
0x10e6   :  { %6548 = vmatprep.mubr.msk.f32.mxu0 %vm208_vm1, %v4973_v50 }
0x10e7   :  { %6549 = vmatmul.mubr.msk.f32.vlgmr.msra.gmra.mrb[58].mxu0 %vm208_vm1, %v4974_v52 }
0x1184   :  { %v6540_v49 = vpop.f32.mrb[56].mxu0 }
0x1185   :  { %v5312_v46 = vsel %vm74_vm0, %v6540_v49, 0.0  ;;  %v6545_v63 = vpop.f32.mrb[48].mxu1  ;;  %v5053_v0 = vpop.f32.mrb[57].mxu0 }
0x1186   :  { %v5313_v17 = vsel %vm74_vm0, %v6545_v63, 0.0  ;;  %v5305_v1 = vsel %vm74_vm0, %v5053_v0, 0.0  ;;  %v5134_v4 = vpop.f32.mrb[49].mxu1 }
0x1187   :  { %v5314_v10 = vadd.f32 %v5313_v17, %v5312_v46  ;;  %v5306_v9 = vsel %vm74_vm0, %v5134_v4, 0.0  ;;  %v5927_v46 = vld [vmem:[%s8250_s6 + $0x1] ss:$0 sm:$0xff] }
0x1188   :  { %v5307_v3 = vadd.f32 %v5306_v9, %v5305_v1  ;;  %v5938_v4 = vld [vmem:[%s8253_s9 + $0x40] sm:$0xff] }
0x11b6   :  { %v6555_v60 = vpop.f32.mrb[50].mxu1 }
0x11b7   :  { %v5296_v7 = vpop.f32.mrb[51].mxu1  ;;  %v5317_v21 = vsel %vm74_vm0, %v6555_v60, 0.0  ;;  %v5941_v60 = vld [vmem:[%s8253_s9 + $0x58] sm:$0xff] }
0x11b8   :  { %v5310_v19 = vsel %vm74_vm0, %v5296_v7, 0.0 }
0x11ba   :  { %v6550_v15 = vpop.f32.mrb[58].mxu0 }
0x11bb   :  { %v5315_v16 = vsel %vm74_vm0, %v6550_v15, 0.0  ;;  %v5215_v45 = vpop.f32.mrb[59].mxu0  ;;  %v6808_v15 = vpack.c.bf16 %v5943_v6, %v5942_v12 }
0x11bc   :  { %v5316_v38 = vadd.f32 %v5315_v16, %v5314_v10  ;;  %v5308_v48 = vsel %vm74_vm0, %v5215_v45, 0.0  ;;  %v5939_v10 = vld [vmem:[%s8253_s9 + $0x48] sm:$0xff]  ;;  %v5944_v16 = vld [vmem:[%s8253_s9 + $0x70] sm:$0xff]  ;;  %v5945_v45 = vld [vmem:[%s8253_s9 + $0x78] sm:$0xff] }
0x11bd   :  { %v5309_v5 = vadd.f32 %v5308_v48, %v5307_v3  ;;  %v6800_v9 = vpack.c.bf16 %v5939_v10, %v5938_v4  ;;  %v5940_v3 = vld [vmem:[%s8253_s9 + $0x50] sm:$0xff]  ;;  %v6812_v8 = vpack.c.bf16 %v5945_v45, %v5944_v16 }
0x11be   :  { %v5318_v22 = vadd.f32 %v5317_v21, %v5316_v38  ;;  %v6804_v7 = vpack.c.bf16 %v5941_v60, %v5940_v3 }
0x11bf   :  { %v5311_v24 = vadd.f32 %v5310_v19, %v5309_v5  ;;  %6801 = vmatprep.subr.bf16.mxu1 %v6800_v9 }
0x11c0   :  { %v5330_v20 = vadd.f32 %v8083_v55, %v5318_v22  ;;  %6803 = vmatpush3.bf16.msra.mxu1 %v6800_v9 }
0x11c1   :  { %v5329_v29 = vadd.f32 %v8083_v55, %v5311_v24  ;;  %6805 = vmatprep.subr.bf16.mxu1 %v6804_v7 }
0x11c2   :  { %v5334_v30 = vadd.f32 %v5330_v20, %v7888_v18  ;;  %v5928_v18 = vld [vmem:[%s8251_s7 + $0x20] sm:$0xff] }
0x11c3   :  { %v5333_v39 = vadd.f32 %v5329_v29, %v7885_v14  ;;  %v5929_v14 = vld [vmem:[%s8251_s7 + $0x28] sm:$0xff] }
0x11c4   :  { %v5348_v33 = vsel %vm74_vm0, %v5334_v30, 0.0  ;;  %v6792_v55 = vpack.c.bf16 %v5929_v14, %v5928_v18  ;;  %6807 = vmatpush3.bf16.msra.mxu1 %v6804_v7 }
0x11c5   :  { %5349 = vadd.xlane.f32.xlu0 %v5348_v33  ;;  %v5345_v25 = vsel %vm74_vm0, %v5333_v39, 0.0  ;;  %6809 = vmatprep.subr.bf16.mxu1 %v6808_v15  ;;  %v5933_v33 = vld [vmem:[%s8252_s8 + $0x1] ss:$0 sm:$0xff] }
0x11c6   :  { %5346 = vadd.xlane.f32.xlu1 %v5345_v25  ;;  %6793 = vmatprep.subr.bf16.mxu0 %v6792_v55 }
0x11c7   :  { %6795 = vmatpush3.bf16.msra.mxu0 %v6792_v55 }
0x11c8   :  { %6797 = vmatprep.subr.bf16.mxu0 %v6796_v2  ;;  %6811 = vmatpush3.bf16.msra.mxu1 %v6808_v15 }
0x11c9   :  { %5367 = vadd.xlane.f32.xlu0 %v5366_v13  ;;  %6813 = vmatprep.subr.bf16.mxu1 %v6812_v8 }
0x11ca   :  { %5364 = vadd.xlane.f32.xlu1 %v5363_v58 }
0x11cb   :  { %6799 = vmatpush3.bf16.msra.mxu0 %v6796_v2 }
0x11cc   :  { %6815 = vmatpush3.bf16.msra.mxu1 %v6812_v8 }
0x1252   :  { %v5350_v54 = vpop.xlane.xlu0 %5349 }
0x1253   :  { %v5354_v32 = vmul.f32 0.03125, %v5350_v54  ;;  %v5347_v41 = vpop.xlane.xlu1 %5346 }
0x1254   :  { %v5353_v42 = vmul.f32 0.03125, %v5347_v41 }
0x1255   :  { %v5358_v56 = vsub.f32 %v5334_v30, %v5354_v32 }
0x1256   :  { %v5357_v43 = vsub.f32 %v5333_v39, %v5353_v42  ;;  %v5368_v28 = vpop.xlane.xlu0 %5367 }
0x1257   :  { %v5376_v34 = vmul.f32 0.03125, %v5368_v28  ;;  %v5365_v44 = vpop.xlane.xlu1 %5364  ;;  %v5362_v47 = vmul.f32 %v5358_v56, %v5358_v56 }
0x1258   :  { %v5375_v62 = vmul.f32 0.03125, %v5365_v44  ;;  %v5361_v53 = vmul.f32 %v5357_v43, %v5357_v43 }
0x1259   :  { %v5380_v51 = vadd.f32 1e-12, %v5376_v34  ;;  %v5372_v37 = vsel %vm74_vm0, %v5362_v47, 0.0 }
0x125a   :  { %v5379_v23 = vadd.f32 1e-12, %v5375_v62  ;;  %5373 = vadd.xlane.f32.xlu0 %v5372_v37  ;;  %v5369_v27 = vsel %vm74_vm0, %v5361_v53, 0.0 }
0x125b   :  { %7197 = vrsqrt.f32 %v5380_v51  ;;  %5370 = vadd.xlane.f32.xlu1 %v5369_v27 }
0x125c   :  { %7199 = vrsqrt.f32 %v5379_v23 }
0x1265   :  { %v7198_v57 = vpop.eup %7197 }
0x1266   :  { %v7200_v50 = vpop.eup %7199  ;;  %v5388_v52 = vmul.f32 %v7198_v57, %v5356_v59 }
0x1267   :  { %v5387_v49 = vmul.f32 %v7200_v50, %v5355_v26 }
0x1268   :  { %v5398_v63 = vmul.f32 %v5926_v31, %v5388_v52 }
0x1269   :  { %v5397_v0 = vmul.f32 %v5926_v31, %v5387_v49 }
0x126a   :  { %v8167_v1 = vadd.f32 %v5927_v46, %v5398_v63 }
0x126b   :  { %v8165_v17 = vadd.f32 %v5927_v46, %v5397_v0 }
0x126d   :  { %6564 = vmatprep.mubr.msk.f32.mxu0 %vm74_vm0, %v8165_v17 }
0x126e   :  { %6565 = vmatmul.mubr.msk.f32.vlgmr.msra.gmra.mrb[60].mxu0 %vm74_vm0, %v8167_v1 }
0x12e7   :  { %v5374_v38 = vpop.xlane.xlu0 %5373 }
0x12e8   :  { %v5378_v48 = vmul.f32 0.03125, %v5374_v38  ;;  %v5371_v61 = vpop.xlane.xlu1 %5370 }
0x12e9   :  { %v5377_v21 = vmul.f32 0.03125, %v5371_v61 }
0x12ea   :  { %v5382_v5 = vadd.f32 1e-12, %v5378_v48 }
0x12eb   :  { %v5381_v19 = vadd.f32 1e-12, %v5377_v21 }
0x12ec   :  { %7201 = vrsqrt.f32 %v5382_v5 }
0x12ed   :  { %7203 = vrsqrt.f32 %v5381_v19 }
0x12f6   :  { %v7202_v22 = vpop.eup %7201 }
0x12f7   :  { %v7204_v24 = vpop.eup %7203  ;;  %v5390_v59 = vmul.f32 %v7202_v22, %v5358_v56 }
0x12f8   :  { %v5389_v20 = vmul.f32 %v7204_v24, %v5357_v43 }
0x12f9   :  { %v5400_v26 = vmul.f32 %v5926_v31, %v5390_v59 }
0x12fa   :  { %v5399_v29 = vmul.f32 %v5926_v31, %v5389_v20  ;;  %v5947_v31 = vld [vmem:[%s8254_s10 + $0x1] ss:$0 sm:$0xff] }
0x12fb   :  { %v5410_v39 = vadd.f32 %v5927_v46, %v5400_v26 }
0x12fc   :  { %v5409_v30 = vadd.f32 %v5927_v46, %v5399_v29 }
0x12fe   :  { %6567 = vmatprep.mubr.msk.f32.mxu0 %vm74_vm0, %v5409_v30 }
0x12ff   :  { %6568 = vmatmul.mubr.msk.f32.gmra.mrb[62].mxu0 %vm74_vm0, %v5410_v39 }
0x1341   :  { %v6566_v35 = vpop.f32.mrb[60].mxu0 }
0x1342   :  { %v5508_v25 = vadd.f32 %v6566_v35, %v5933_v33  ;;  %v5502_v11 = vpop.f32.mrb[61].mxu0 }
0x1343   :  { %v5503_v13 = vadd.f32 %v5933_v33, %v5502_v11 }
0x1344   :  { %v5526_v58 = vmul.f32 0.70710677, %v5508_v25  ;;  %v5522_v54 = vmul.f32 0.5, %v5508_v25 }
0x1345   :  { %v5525_v18 = vmul.f32 0.70710677, %v5503_v13  ;;  %v5521_v40 = vmul.f32 0.5, %v5503_v13 }
0x1346   :  { %7205 = verf.f32 %v5526_v58 }
0x1347   :  { %7207 = verf.f32 %v5525_v18 }
0x1350   :  { %v7206_v14 = vpop.eup %7205 }
0x1351   :  { %v7208_v55 = vpop.eup %7207  ;;  %v5534_v36 = vadd.f32 1.0, %v7206_v14 }
0x1352   :  { %v5533_v2 = vadd.f32 1.0, %v7208_v55 }
0x1353   :  { %v5538_v41 = vmul.f32 %v5534_v36, %v5522_v54  ;;  %v5954_v36 = vld [vmem:[%s8255_s11 + $0x1] ss:$0 sm:$0xff]  ;;  %s7279_s11 = smov [#allocation5]  }
0x1354   :  { %v5537_v32 = vmul.f32 %v5533_v2, %v5521_v40 }
0x1356   :  { %6586 = vmatprep.mubr.msk.f32.mxu1 %vm2720_vm4, %v5537_v32  ;;  %v5955_v32 = vld [vmem:[%s8256_s12 + $0x1] ss:$0 sm:$0xff]  ;;  %s5744_s12 = sshll.u32 %s7279_s11, 4  ;;  %s5745_s12 = int_to_ptr.vmem [resolvable:$true] %s5744_s12 }
0x1357   :  { %6587 = vmatmul.mubr.msk.f32.vlgmr.msra.gmra.mrb[52].mxu1 %vm2720_vm4, %v5538_v41  ;;  %s7245_s26 = scalar_lea.vmem %s5745_s12, 512  ;;  %p7250_p9 = scmp.lt.s32.totalorder %s5745_s12, %s5745_s12 }
0x1358   :  { %p7246_p8 = scmp.ne.s32.totalorder %s5745_s12, %s7245_s26  ;;  %p7251_p10 = scmp.lt.s32.totalorder %s7245_s26, %s7245_s26 }
0x135a   :  { %p7252_p11 = por %p7251_p10, %p7250_p9 }
0x135c   :  { %p7253_p12 = pnand %p7252_p11, %p7246_p8 }
0x13d2   :  { %v6569_v42 = vpop.f32.mrb[62].mxu0 }
0x13d3   :  { %v5518_v56 = vadd.f32 %v6569_v42, %v5933_v33  ;;  %v5512_v43 = vpop.f32.mrb[63].mxu0 }
0x13d4   :  { %v5513_v28 = vadd.f32 %v5933_v33, %v5512_v43 }
0x13d5   :  { %v5528_v34 = vmul.f32 0.70710677, %v5518_v56  ;;  %v5524_v23 = vmul.f32 0.5, %v5518_v56 }
0x13d6   :  { %v5527_v44 = vmul.f32 0.70710677, %v5513_v28  ;;  %v5523_v51 = vmul.f32 0.5, %v5513_v28 }
0x13d7   :  { %7209 = verf.f32 %v5528_v34 }
0x13d8   :  { %7211 = verf.f32 %v5527_v44 }
0x13e1   :  { %v7210_v47 = vpop.eup %7209 }
0x13e2   :  { %v7212_v62 = vpop.eup %7211  ;;  %v5536_v53 = vadd.f32 1.0, %v7210_v47 }
0x13e3   :  { %v5535_v37 = vadd.f32 1.0, %v7212_v62 }
0x13e4   :  { %v5540_v57 = vmul.f32 %v5536_v53, %v5524_v23 }
0x13e5   :  { %v5539_v27 = vmul.f32 %v5535_v37, %v5523_v51 }
0x13e7   :  { %6589 = vmatprep.mubr.msk.f32.mxu1 %vm2720_vm4, %v5539_v27 }
0x13e8   :  { %6590 = vmatmul.mubr.msk.f32.gmra.mrb[54].mxu1 %vm2720_vm4, %v5540_v57 }
0x142a   :  { %v6588_v50 = vpop.f32.mrb[52].mxu1 }
0x142b   :  { %v5642_v52 = vadd.f32 %v6588_v50, %v5947_v31  ;;  %v5636_v49 = vpop.f32.mrb[53].mxu1 }
0x142c   :  { %v5637_v46 = vadd.f32 %v5947_v31, %v5636_v49 }
0x142d   :  { %v5656_v63 = vadd.f32 %v5642_v52, %v8167_v1 }
0x142e   :  { %v5655_v0 = vadd.f32 %v5637_v46, %v8165_v17 }
0x142f   :  { %v5666_v4 = vsel %vm74_vm0, %v5656_v63, 0.0 }
0x1430   :  { %5667 = vadd.xlane.f32.xlu0 %v5666_v4  ;;  %v5663_v10 = vsel %vm74_vm0, %v5655_v0, 0.0 }
0x1431   :  { %5664 = vadd.xlane.f32.xlu1 %v5663_v10 }
0x14bb   :  { %v6591_v9 = vpop.f32.mrb[54].mxu1 }
0x14bc   :  { %v5652_v3 = vadd.f32 %v6591_v9, %v5947_v31  ;;  %v5646_v60 = vpop.f32.mrb[55].mxu1 }
0x14bd   :  { %v5647_v7 = vadd.f32 %v5947_v31, %v5646_v60  ;;  %v5668_v12 = vpop.xlane.xlu0 %5667 }
0x14be   :  { %v5658_v6 = vadd.f32 %v5652_v3, %v5410_v39  ;;  %v5676_v15 = vmul.f32 0.03125, %v5668_v12  ;;  %v5665_v16 = vpop.xlane.xlu1 %5664 }
0x14bf   :  { %v5657_v45 = vadd.f32 %v5647_v7, %v5409_v30  ;;  %v5675_v8 = vmul.f32 0.03125, %v5665_v16 }
0x14c0   :  { %v5680_v38 = vsub.f32 %v5656_v63, %v5676_v15  ;;  %v5672_v1 = vsel %vm74_vm0, %v5658_v6, 0.0 }
0x14c1   :  { %v5679_v17 = vsub.f32 %v5655_v0, %v5675_v8  ;;  %5673 = vadd.xlane.f32.xlu0 %v5672_v1  ;;  %v5669_v48 = vsel %vm74_vm0, %v5657_v45, 0.0 }
0x14c2   :  { %5670 = vadd.xlane.f32.xlu1 %v5669_v48  ;;  %v5684_v61 = vmul.f32 %v5680_v38, %v5680_v38 }
0x14c3   :  { %v5683_v21 = vmul.f32 %v5679_v17, %v5679_v17 }
0x14c4   :  { %v5690_v5 = vsel %vm74_vm0, %v5684_v61, 0.0 }
0x14c5   :  { %5691 = vadd.xlane.f32.xlu0 %v5690_v5  ;;  %v5687_v19 = vsel %vm74_vm0, %v5683_v21, 0.0 }
0x14c6   :  { %5688 = vadd.xlane.f32.xlu1 %v5687_v19 }
0x154e   :  { %v5674_v22 = vpop.xlane.xlu0 %5673 }
0x154f   :  { %v5678_v24 = vmul.f32 0.03125, %v5674_v22  ;;  %v5671_v59 = vpop.xlane.xlu1 %5670 }
0x1550   :  { %v5677_v20 = vmul.f32 0.03125, %v5671_v59 }
0x1551   :  { %v5682_v26 = vsub.f32 %v5658_v6, %v5678_v24 }
0x1552   :  { %v5681_v29 = vsub.f32 %v5657_v45, %v5677_v20  ;;  %v5692_v30 = vpop.xlane.xlu0 %5691 }
0x1553   :  { %v5700_v39 = vmul.f32 0.03125, %v5692_v30  ;;  %v5689_v33 = vpop.xlane.xlu1 %5688  ;;  %v5686_v35 = vmul.f32 %v5682_v26, %v5682_v26 }
0x1554   :  { %v5699_v25 = vmul.f32 0.03125, %v5689_v33  ;;  %v5685_v11 = vmul.f32 %v5681_v29, %v5681_v29 }
0x1555   :  { %v5704_v13 = vadd.f32 1e-12, %v5700_v39  ;;  %v5696_v58 = vsel %vm74_vm0, %v5686_v35, 0.0 }
0x1556   :  { %v5703_v18 = vadd.f32 1e-12, %v5699_v25  ;;  %5697 = vadd.xlane.f32.xlu0 %v5696_v58  ;;  %v5693_v14 = vsel %vm74_vm0, %v5685_v11, 0.0 }
0x1557   :  { %7213 = vrsqrt.f32 %v5704_v13  ;;  %5694 = vadd.xlane.f32.xlu1 %v5693_v14 }
0x1558   :  { %7215 = vrsqrt.f32 %v5703_v18 }
0x1561   :  { %v7214_v55 = vpop.eup %7213 }
0x1562   :  { %v7216_v40 = vpop.eup %7215  ;;  %v5712_v2 = vmul.f32 %v7214_v55, %v5680_v38 }
0x1563   :  { %v5711_v54 = vmul.f32 %v7216_v40, %v5679_v17 }
0x1564   :  { %v5722_v41 = vmul.f32 %v5954_v36, %v5712_v2 }
0x1565   :  { %v5721_v42 = vmul.f32 %v5954_v36, %v5711_v54 }
0x1566   :  { %v5732_v56 = vadd.f32 %v5955_v32, %v5722_v41 }
0x1567   :  { %v5731_v43 = vadd.f32 %v5955_v32, %v5721_v42 }
0x1568   :  { %5736 = vst.msk [vmem:[#allocation5 + $0x8] sm:$0xff] %vm74_vm0, %v5732_v56 }
0x1569   :  { %5735 = vst.msk [vmem:[#allocation5] sm:$0xff] %vm74_vm0, %v5731_v43 }
0x15e3   :  { %v5698_v28 = vpop.xlane.xlu0 %5697 }
0x15e4   :  { %v5702_v34 = vmul.f32 0.03125, %v5698_v28  ;;  %v5695_v44 = vpop.xlane.xlu1 %5694 }
0x15e5   :  { %v5701_v47 = vmul.f32 0.03125, %v5695_v44 }
0x15e6   :  { %v5706_v62 = vadd.f32 1e-12, %v5702_v34 }
0x15e7   :  { %v5705_v53 = vadd.f32 1e-12, %v5701_v47 }
0x15e8   :  { %7217 = vrsqrt.f32 %v5706_v62 }
0x15e9   :  { %7219 = vrsqrt.f32 %v5705_v53 }
0x15f2   :  { %v7218_v51 = vpop.eup %7217 }
0x15f3   :  { %v7220_v37 = vpop.eup %7219  ;;  %v5714_v23 = vmul.f32 %v7218_v51, %v5682_v26 }
0x15f4   :  { %v5713_v27 = vmul.f32 %v7220_v37, %v5681_v29 }
0x15f5   :  { %v5724_v57 = vmul.f32 %v5954_v36, %v5714_v23 }
0x15f6   :  { %v5723_v31 = vmul.f32 %v5954_v36, %v5713_v27 }
0x15f7   :  { %v5734_v50 = vadd.f32 %v5955_v32, %v5724_v57 }
0x15f8   :  { %v5733_v52 = vadd.f32 %v5955_v32, %v5723_v31 }
0x15f9   :  { %5738 = vst.msk [vmem:[#allocation5 + $0x18] sm:$0xff] %vm74_vm0, %v5734_v50 }
0x15fa   :  { %5737 = vst.msk [vmem:[#allocation5 + $0x10] sm:$0xff] %vm74_vm0, %v5733_v52 }
0x15fb   :  { %7256 = shalt.err (!%p7253_p12)
}
0x15fc   :  { %s7257_s21 = scalar_lea.hbm %s8257_s13, 512 }
0x15fd   :  { %p7258_p13 = scmp.ne.s32.totalorder %s8257_s13, %s7257_s21  ;;  %p7261_p0 = scmp.lt.u32.totalorder %s7257_s21, %s8257_s13 }
0x15ff   :  { %p7263_p1 = pnand %p7261_p0, %p7258_p13 }
0x1601   :  { %7266 = shalt.err (!%p7263_p1)
}
0x1602   :  { %5750 = dma.vmem_to_hbm [thread:$0]  %s5745_s12, 512, %s8257_s13, [#allocation4], %s7272_s18, %s7272_s18, %s7273_s19  }
0x1603   :  { %7269 = dma.done.wait [#allocation4], 512  }
0x1604   :  { %7270 = vsyncadd [#allocation4], 4294966784 }
0x1605   :  { %5754 = vsyncpa [#allocation3], 1 }
0x1606   :  { %5755 = vsyncpa [#allocation4], 1 }

</bundles_post_ra>
